<compile_context>
chip_gen: v7x
topology: tpu7x:2x2x1
jax: 0.10.0
libtpu: 0.0.40
codegen_flags: <defaults>
</compile_context>

<pallas_src>
import functools
import math

import jax
import jax.numpy as jnp
from jax import lax
from jax.experimental import pallas as pl
from jax.experimental.pallas import tpu as pltpu

# ----------------------- configuration (small, deterministic) -----------------------
SRC_PAD_IDX = 1
TRG_PAD_IDX = 1
ENC_VOCAB = 32
DEC_VOCAB = 32
MAXLEN = 16
D_MODEL = 32
N_LAYERS = 2
N_HEADS = 4
D_FF = 64
BATCH = 2
SEQ = 8          # src and trg lengths kept equal (original MHA uses q's seq_len for k/v)
D_K = D_MODEL // N_HEADS
LN_EPS = 1e-6
ROWS = BATCH * SEQ


# ============================ fused whole-model kernel ===============================

def _transformer_kernel(
    # per-batch activations / masks ([SEQ, D] / [SEQ, SEQ] blocks)
    x_enc_ref, x_dec_ref, src_m_ref, trg_m_ref, st_m_ref,
    # encoder layer params (stacked over N_LAYERS)
    e_wqkv, e_bqkv, e_wo, e_bo, e_w1, e_b1, e_w2, e_b2,
    # decoder self-attention params
    ds_wqkv, ds_bqkv, ds_wo, ds_bo,
    # decoder cross-attention params
    dc_wq, dc_bq, dc_wkv, dc_bkv, dc_wo, dc_bo,
    # decoder FFN params
    d_w1, d_b1, d_w2, d_b2,
    # output projection
    ow_ref, ob_ref,
    # output
    o_ref,
):
    f32 = jnp.float32
    scale = f32(1.0 / math.sqrt(D_K))

    # Masks loaded once, reused across all heads & layers (VMEM-resident).
    src_m = src_m_ref[...]      # [S, S] int32
    trg_m = trg_m_ref[...]
    st_m = st_m_ref[...]

    def ln(x):
        # custom LayerNorm: alpha=1, beta=0, unbiased=False variance, eps=1e-6
        mu = jnp.mean(x, axis=-1, keepdims=True)
        cx = x - mu
        var = jnp.mean(cx * cx, axis=-1, keepdims=True)
        return cx * lax.rsqrt(var + LN_EPS)

    def qkt(a, b):
        # a @ b.T via MXU trans_b contraction (no explicit XLU transpose)
        return lax.dot_general(a, b, (((1,), (1,)), ((), ())),
                               preferred_element_type=f32)

    def heads_attention(q_all, k_all, v_all, mask2d):
        # q_all/k_all/v_all: [S, D];  mask2d: [S, S]
        is_masked = (mask2d == 0)                      # hoisted out of head loop
        per_head = []
        for h in range(N_HEADS):                       # N_HEADS=4, unrolled
            c0 = h * D_K
            qh = q_all[:, c0:c0 + D_K]                 # [S, dk] lane-contiguous slice
            kh = k_all[:, c0:c0 + D_K]
            vh = v_all[:, c0:c0 + D_K]
            logits = qkt(qh, kh) * scale
            # PyTorch quirk preserved: masked logits set to 1e-9 (NOT -inf)
            logits = jnp.where(is_masked, f32(1e-9), logits)
            logits = logits - jnp.max(logits, axis=-1, keepdims=True)
            p = jnp.exp(logits)
            p = p / jnp.sum(p, axis=-1, keepdims=True)
            per_head.append(jnp.dot(p, vh, preferred_element_type=f32))
        return jnp.concatenate(per_head, axis=-1)      # [S, D] lane-dense

    def self_mha(x, wqkv, bqkv, wo, bo, mask2d):
        # fused Q|K|V projection: one [S, D] @ [D, 3D] matmul
        qkv = jnp.dot(x, wqkv, preferred_element_type=f32) + bqkv
        q = qkv[:, 0:D_MODEL]
        k = qkv[:, D_MODEL:2 * D_MODEL]
        v = qkv[:, 2 * D_MODEL:3 * D_MODEL]
        a = heads_attention(q, k, v, mask2d)
        return jnp.dot(a, wo, preferred_element_type=f32) + bo

    def cross_mha(xq, xkv, wq, bq, wkv, bkv, wo, bo, mask2d):
        q = jnp.dot(xq, wq, preferred_element_type=f32) + bq          # [S, D]
        kv = jnp.dot(xkv, wkv, preferred_element_type=f32) + bkv      # [S, 2D]
        k = kv[:, 0:D_MODEL]
        v = kv[:, D_MODEL:2 * D_MODEL]
        a = heads_attention(q, k, v, mask2d)
        return jnp.dot(a, wo, preferred_element_type=f32) + bo

    def ffn(x, w1, b1, w2, b2):
        h = jnp.maximum(jnp.dot(x, w1, preferred_element_type=f32) + b1, 0.0)
        return jnp.dot(h, w2, preferred_element_type=f32) + b2

    # --------------------------------- encoder -----------------------------------
    x = x_enc_ref[...]                                             # [S, D]
    for l in range(N_LAYERS):                                      # N_LAYERS=2, unrolled
        attn = self_mha(x, e_wqkv[l], e_bqkv[l], e_wo[l], e_bo[l], src_m)
        x = ln((x + attn) + x)          # norm1(2x + attn) quirk preserved
        ff = ffn(x, e_w1[l], e_b1[l], e_w2[l], e_b2[l])
        x = ln((x + ff) + x)            # norm2(2x + ff) quirk preserved
    enc_out = x

    # --------------------------------- decoder -----------------------------------
    y = x_dec_ref[...]                                             # [S, D]
    for l in range(N_LAYERS):
        a = self_mha(y, ds_wqkv[l], ds_bqkv[l], ds_wo[l], ds_bo[l], trg_m)
        q = ln(a + y)                   # norm1(attn + dec), no extra residual (per spec)
        c = cross_mha(q, enc_out, dc_wq[l], dc_bq[l], dc_wkv[l], dc_bkv[l],
                      dc_wo[l], dc_bo[l], st_m)
        q = ln((q + c) + q)             # norm2(2q + cross) quirk preserved
        ff = ffn(q, d_w1[l], d_b1[l], d_w2[l], d_b2[l])
        q = ln((q + ff) + q)            # norm3(2q + ff) quirk preserved
        y = q

    # ------------------------------ output projection ----------------------------
    o_ref[...] = jnp.dot(y, ow_ref[...], preferred_element_type=f32) + ob_ref[...]


# ================================ model (JAX glue) ===================================

def sinusoidal_pe(maxlen, d_model):
    pos = jnp.arange(maxlen, dtype=jnp.float32)[:, None]
    i = jnp.arange(0, d_model, 2, dtype=jnp.float32)
    angle = pos / jnp.power(10000.0, i / d_model)
    pe = jnp.zeros((maxlen, d_model), jnp.float32)
    pe = pe.at[:, 0::2].set(jnp.sin(angle))
    pe = pe.at[:, 1::2].set(jnp.cos(angle))
    return pe  # [maxlen, d_model]


def embed(p, ids):
    tok = p["emb"][ids]                         # embedding gather (glue, not hot path)
    s = ids.shape[1]
    return tok + p["pe"][None, :s, :]           # dropout = identity


def make_masks(src, trg):
    sv = (src != SRC_PAD_IDX)                   # [B, S]
    tv = (trg != TRG_PAD_IDX)
    src_mask = sv[:, :, None] & sv[:, None, :]                      # [B, Sq, Sk]
    tril = jnp.tril(jnp.ones((SEQ, SEQ), dtype=bool))
    trg_mask = (tv[:, :, None] & tv[:, None, :]) & tril[None]       # [B, Sq, Sk]
    st_mask = tv[:, :, None] & sv[:, None, :]                       # q=trg, k=src
    to2d = lambda m: m.reshape(ROWS, SEQ).astype(jnp.int32)
    return to2d(src_mask), to2d(trg_mask), to2d(st_mask)


def _const_index_map(b, *, nd):
    return (0,) * nd


@jax.jit
def transformer_fwd(params, src, trg):
    # glue: embedding gather + positional add + mask construction (tiny; not hot path)
    x_enc = embed(params["enc_emb"], src).reshape(ROWS, D_MODEL)
    x_dec = embed(params["dec_emb"], trg).reshape(ROWS, D_MODEL)
    src_m, trg_m, st_m = make_masks(src, trg)

    ep = params["enc"]
    dp = params["dec"]

    weights = (
        ep["wqkv"], ep["bqkv"], ep["wo"], ep["bo"],
        ep["w1"], ep["b1"], ep["w2"], ep["b2"],
        dp["s_wqkv"], dp["s_bqkv"], dp["s_wo"], dp["s_bo"],
        dp["c_wq"], dp["c_bq"], dp["c_wkv"], dp["c_bkv"], dp["c_wo"], dp["c_bo"],
        dp["w1"], dp["b1"], dp["w2"], dp["b2"],
        params["out_w"], params["out_b"],
    )

    # Per-batch activation / mask tiles; weights are whole-array blocks with a
    # constant index_map (fetched once, reused across the batch grid).
    act_spec = pl.BlockSpec((SEQ, D_MODEL), lambda b: (b, 0))
    msk_spec = pl.BlockSpec((SEQ, SEQ), lambda b: (b, 0))
    weight_specs = [
        pl.BlockSpec(tuple(w.shape), functools.partial(_const_index_map, nd=w.ndim))
        for w in weights
    ]

    grid_spec = pltpu.PrefetchScalarGridSpec(
        num_scalar_prefetch=0,
        grid=(BATCH,),
        in_specs=[act_spec, act_spec, msk_spec, msk_spec, msk_spec] + weight_specs,
        out_specs=pl.BlockSpec((SEQ, DEC_VOCAB), lambda b: (b, 0)),
    )

    out = pl.pallas_call(
        _transformer_kernel,
        out_shape=jax.ShapeDtypeStruct((ROWS, DEC_VOCAB), jnp.float32),
        grid_spec=grid_spec,
        compiler_params=pltpu.CompilerParams(
            dimension_semantics=("parallel",),
        ),
    )(x_enc, x_dec, src_m, trg_m, st_m, *weights)
    return out.reshape(BATCH, SEQ, DEC_VOCAB)


# ================================ parameter init =====================================

def init_linear(key, din, dout):
    bound = 1.0 / math.sqrt(din)
    kw, kb = jax.random.split(key)
    w = jax.random.uniform(kw, (din, dout), jnp.float32, -bound, bound)
    b = jax.random.uniform(kb, (1, dout), jnp.float32, -bound, bound)
    return w, b


def init_mha_self(key, d):
    ks = jax.random.split(key, 4)
    wq, bq = init_linear(ks[0], d, d)
    wk, bk = init_linear(ks[1], d, d)
    wv, bv = init_linear(ks[2], d, d)
    wo, bo = init_linear(ks[3], d, d)
    return dict(wqkv=jnp.concatenate([wq, wk, wv], axis=1),   # [D, 3D]
                bqkv=jnp.concatenate([bq, bk, bv], axis=1),   # [1, 3D]
                wo=wo, bo=bo)


def init_mha_cross(key, d):
    ks = jax.random.split(key, 4)
    wq, bq = init_linear(ks[0], d, d)
    wk, bk = init_linear(ks[1], d, d)
    wv, bv = init_linear(ks[2], d, d)
    wo, bo = init_linear(ks[3], d, d)
    return dict(wq=wq, bq=bq,
                wkv=jnp.concatenate([wk, wv], axis=1),        # [D, 2D]
                bkv=jnp.concatenate([bk, bv], axis=1),        # [1, 2D]
                wo=wo, bo=bo)


def init_enc_layer(key, d, f):
    k1, k2, k3 = jax.random.split(key, 3)
    mha = init_mha_self(k1, d)
    w1, b1 = init_linear(k2, d, f)
    w2, b2 = init_linear(k3, f, d)
    return dict(**mha, w1=w1, b1=b1, w2=w2, b2=b2)


def init_dec_layer(key, d, f):
    k1, k2, k3, k4 = jax.random.split(key, 4)
    s = init_mha_self(k1, d)
    c = init_mha_cross(k2, d)
    w1, b1 = init_linear(k3, d, f)
    w2, b2 = init_linear(k4, f, d)
    return dict(s_wqkv=s["wqkv"], s_bqkv=s["bqkv"], s_wo=s["wo"], s_bo=s["bo"],
                c_wq=c["wq"], c_bq=c["bq"], c_wkv=c["wkv"], c_bkv=c["bkv"],
                c_wo=c["wo"], c_bo=c["bo"],
                w1=w1, b1=b1, w2=w2, b2=b2)


def stack_layers(layers):
    # stack per-layer param pytrees along a leading [N_LAYERS, ...] axis
    return jax.tree_util.tree_map(lambda *xs: jnp.stack(xs, axis=0), *layers)


def init_embedding(key, vocab, d_model, pad_idx):
    emb = jax.random.normal(key, (vocab, d_model), jnp.float32)
    emb = emb.at[pad_idx].set(0.0)   # padding_idx=1 (TokenEmbedding)
    return dict(emb=emb, pe=sinusoidal_pe(MAXLEN, d_model))


def init_params(key):
    keys = jax.random.split(key, 2 * N_LAYERS + 3)
    enc_layers = [init_enc_layer(keys[2 + i], D_MODEL, D_FF) for i in range(N_LAYERS)]
    dec_layers = [init_dec_layer(keys[2 + N_LAYERS + i], D_MODEL, D_FF)
                  for i in range(N_LAYERS)]
    ow, ob = init_linear(keys[-1], D_MODEL, DEC_VOCAB)
    return dict(
        enc_emb=init_embedding(keys[0], ENC_VOCAB, D_MODEL, SRC_PAD_IDX),
        dec_emb=init_embedding(keys[1], DEC_VOCAB, D_MODEL, TRG_PAD_IDX),
        enc=stack_layers(enc_layers),
        dec=stack_layers(dec_layers),
        out_w=ow, out_b=ob,
    )


# ===================================== main ==========================================

if __name__ == "__main__":
    root = jax.random.PRNGKey(0)
    kp, ks, kt = jax.random.split(root, 3)

    params = init_params(kp)
    src = jax.random.randint(ks, (BATCH, SEQ), 0, ENC_VOCAB, dtype=jnp.int32)
    trg = jax.random.randint(kt, (BATCH, SEQ), 0, DEC_VOCAB, dtype=jnp.int32)

    out = jax.block_until_ready(transformer_fwd(params, src, trg))
    assert out.shape == (BATCH, SEQ, DEC_VOCAB), out.shape
    assert bool(jnp.all(jnp.isfinite(out)))
    print("KERNEL_OK")
</pallas_src>

<mosaic_0001>
module attributes {stable_mosaic.version = 11 : i64} {
  func.func @_transformer_kernel(%arg0: i32, %arg1: memref<8x32xf32, #tpu.memory_space<vmem>>, %arg2: memref<8x32xf32, #tpu.memory_space<vmem>>, %arg3: memref<8x8xi32, #tpu.memory_space<vmem>>, %arg4: memref<8x8xi32, #tpu.memory_space<vmem>>, %arg5: memref<8x8xi32, #tpu.memory_space<vmem>>, %arg6: memref<2x32x96xf32, #tpu.memory_space<vmem>>, %arg7: memref<2x1x96xf32, #tpu.memory_space<vmem>>, %arg8: memref<2x32x32xf32, #tpu.memory_space<vmem>>, %arg9: memref<2x1x32xf32, #tpu.memory_space<vmem>>, %arg10: memref<2x32x64xf32, #tpu.memory_space<vmem>>, %arg11: memref<2x1x64xf32, #tpu.memory_space<vmem>>, %arg12: memref<2x64x32xf32, #tpu.memory_space<vmem>>, %arg13: memref<2x1x32xf32, #tpu.memory_space<vmem>>, %arg14: memref<2x32x96xf32, #tpu.memory_space<vmem>>, %arg15: memref<2x1x96xf32, #tpu.memory_space<vmem>>, %arg16: memref<2x32x32xf32, #tpu.memory_space<vmem>>, %arg17: memref<2x1x32xf32, #tpu.memory_space<vmem>>, %arg18: memref<2x32x32xf32, #tpu.memory_space<vmem>>, %arg19: memref<2x1x32xf32, #tpu.memory_space<vmem>>, %arg20: memref<2x32x64xf32, #tpu.memory_space<vmem>>, %arg21: memref<2x1x64xf32, #tpu.memory_space<vmem>>, %arg22: memref<2x32x32xf32, #tpu.memory_space<vmem>>, %arg23: memref<2x1x32xf32, #tpu.memory_space<vmem>>, %arg24: memref<2x32x64xf32, #tpu.memory_space<vmem>>, %arg25: memref<2x1x64xf32, #tpu.memory_space<vmem>>, %arg26: memref<2x64x32xf32, #tpu.memory_space<vmem>>, %arg27: memref<2x1x32xf32, #tpu.memory_space<vmem>>, %arg28: memref<32x32xf32, #tpu.memory_space<vmem>>, %arg29: memref<1x32xf32, #tpu.memory_space<vmem>>, %arg30: memref<8x32xf32, #tpu.memory_space<vmem>>) attributes {dimension_semantics = [#tpu.dimension_semantics<parallel>], iteration_bounds = array<i64: 2>, scalar_prefetch = 0 : i64, scratch_operands = 0 : i64, tpu.core_type = #tpu.core_type<tc>, window_params = [{transform_indices = @transform_0, window_bounds = array<i64: 8, 32>}, {transform_indices = @transform_1, window_bounds = array<i64: 8, 32>}, {transform_indices = @transform_2, window_bounds = array<i64: 8, 8>}, {transform_indices = @transform_3, window_bounds = array<i64: 8, 8>}, {transform_indices = @transform_4, window_bounds = array<i64: 8, 8>}, {pipeline_mode = #tpu.pipeline_mode<synchronous>, transform_indices = @transform_5, window_bounds = array<i64: 2, 32, 96>}, {pipeline_mode = #tpu.pipeline_mode<synchronous>, transform_indices = @transform_6, window_bounds = array<i64: 2, 1, 96>}, {pipeline_mode = #tpu.pipeline_mode<synchronous>, transform_indices = @transform_7, window_bounds = array<i64: 2, 32, 32>}, {pipeline_mode = #tpu.pipeline_mode<synchronous>, transform_indices = @transform_8, window_bounds = array<i64: 2, 1, 32>}, {pipeline_mode = #tpu.pipeline_mode<synchronous>, transform_indices = @transform_9, window_bounds = array<i64: 2, 32, 64>}, {pipeline_mode = #tpu.pipeline_mode<synchronous>, transform_indices = @transform_10, window_bounds = array<i64: 2, 1, 64>}, {pipeline_mode = #tpu.pipeline_mode<synchronous>, transform_indices = @transform_11, window_bounds = array<i64: 2, 64, 32>}, {pipeline_mode = #tpu.pipeline_mode<synchronous>, transform_indices = @transform_12, window_bounds = array<i64: 2, 1, 32>}, {pipeline_mode = #tpu.pipeline_mode<synchronous>, transform_indices = @transform_13, window_bounds = array<i64: 2, 32, 96>}, {pipeline_mode = #tpu.pipeline_mode<synchronous>, transform_indices = @transform_14, window_bounds = array<i64: 2, 1, 96>}, {pipeline_mode = #tpu.pipeline_mode<synchronous>, transform_indices = @transform_15, window_bounds = array<i64: 2, 32, 32>}, {pipeline_mode = #tpu.pipeline_mode<synchronous>, transform_indices = @transform_16, window_bounds = array<i64: 2, 1, 32>}, {pipeline_mode = #tpu.pipeline_mode<synchronous>, transform_indices = @transform_17, window_bounds = array<i64: 2, 32, 32>}, {pipeline_mode = #tpu.pipeline_mode<synchronous>, transform_indices = @transform_18, window_bounds = array<i64: 2, 1, 32>}, {pipeline_mode = #tpu.pipeline_mode<synchronous>, transform_indices = @transform_19, window_bounds = array<i64: 2, 32, 64>}, {pipeline_mode = #tpu.pipeline_mode<synchronous>, transform_indices = @transform_20, window_bounds = array<i64: 2, 1, 64>}, {pipeline_mode = #tpu.pipeline_mode<synchronous>, transform_indices = @transform_21, window_bounds = array<i64: 2, 32, 32>}, {pipeline_mode = #tpu.pipeline_mode<synchronous>, transform_indices = @transform_22, window_bounds = array<i64: 2, 1, 32>}, {pipeline_mode = #tpu.pipeline_mode<synchronous>, transform_indices = @transform_23, window_bounds = array<i64: 2, 32, 64>}, {pipeline_mode = #tpu.pipeline_mode<synchronous>, transform_indices = @transform_24, window_bounds = array<i64: 2, 1, 64>}, {pipeline_mode = #tpu.pipeline_mode<synchronous>, transform_indices = @transform_25, window_bounds = array<i64: 2, 64, 32>}, {pipeline_mode = #tpu.pipeline_mode<synchronous>, transform_indices = @transform_26, window_bounds = array<i64: 2, 1, 32>}, {pipeline_mode = #tpu.pipeline_mode<synchronous>, transform_indices = @transform_27, window_bounds = array<i64: 32, 32>}, {pipeline_mode = #tpu.pipeline_mode<synchronous>, transform_indices = @transform_28, window_bounds = array<i64: 1, 32>}, {transform_indices = @transform_29, window_bounds = array<i64: 8, 32>}]} {
    %c0 = arith.constant 0 : index
    %c0_0 = arith.constant 0 : index
    %0 = vector.load %arg3[%c0, %c0_0] : memref<8x8xi32, #tpu.memory_space<vmem>>, vector<8x8xi32>
    %c0_1 = arith.constant 0 : index
    %c0_2 = arith.constant 0 : index
    %1 = vector.load %arg4[%c0_1, %c0_2] : memref<8x8xi32, #tpu.memory_space<vmem>>, vector<8x8xi32>
    %c0_3 = arith.constant 0 : index
    %c0_4 = arith.constant 0 : index
    %2 = vector.load %arg5[%c0_3, %c0_4] : memref<8x8xi32, #tpu.memory_space<vmem>>, vector<8x8xi32>
    %c0_5 = arith.constant 0 : index
    %c0_6 = arith.constant 0 : index
    %3 = vector.load %arg1[%c0_5, %c0_6] : memref<8x32xf32, #tpu.memory_space<vmem>>, vector<8x32xf32>
    %c0_7 = arith.constant 0 : index
    %c0_8 = arith.constant 0 : index
    %c0_9 = arith.constant 0 : index
    %4 = vector.load %arg6[%c0_7, %c0_8, %c0_9] : memref<2x32x96xf32, #tpu.memory_space<vmem>>, vector<1x32x96xf32>
    %5 = vector.shape_cast %4 : vector<1x32x96xf32> to vector<32x96xf32>
    %c0_10 = arith.constant 0 : index
    %c0_11 = arith.constant 0 : index
    %c0_12 = arith.constant 0 : index
    %6 = vector.load %arg7[%c0_10, %c0_11, %c0_12] : memref<2x1x96xf32, #tpu.memory_space<vmem>>, vector<1x1x96xf32>
    %7 = vector.shape_cast %6 : vector<1x1x96xf32> to vector<1x96xf32>
    %c0_13 = arith.constant 0 : index
    %c0_14 = arith.constant 0 : index
    %c0_15 = arith.constant 0 : index
    %8 = vector.load %arg8[%c0_13, %c0_14, %c0_15] : memref<2x32x32xf32, #tpu.memory_space<vmem>>, vector<1x32x32xf32>
    %9 = vector.shape_cast %8 : vector<1x32x32xf32> to vector<32x32xf32>
    %c0_16 = arith.constant 0 : index
    %c0_17 = arith.constant 0 : index
    %c0_18 = arith.constant 0 : index
    %10 = vector.load %arg9[%c0_16, %c0_17, %c0_18] : memref<2x1x32xf32, #tpu.memory_space<vmem>>, vector<1x1x32xf32>
    %11 = vector.shape_cast %10 : vector<1x1x32xf32> to vector<1x32xf32>
    %cst = arith.constant dense<0.000000e+00> : vector<8x96xf32>
    %12 = tpu.matmul %3, %5, %cst {dimension_numbers = #tpu.dot_dimension_numbers<[1], [0], [0], [1], [0, 0, 1, 1], [], []>} : vector<8x32xf32>, vector<32x96xf32>, vector<8x96xf32> -> vector<8x96xf32>
    %13 = vector.broadcast %7 : vector<1x96xf32> to vector<8x96xf32>
    %14 = arith.addf %12, %13 : vector<8x96xf32>
    %15 = vector.extract_strided_slice %14 {offsets = [0, 0], sizes = [8, 32], strides = [1, 1]} : vector<8x96xf32> to vector<8x32xf32>
    %16 = vector.extract_strided_slice %14 {offsets = [0, 32], sizes = [8, 32], strides = [1, 1]} : vector<8x96xf32> to vector<8x32xf32>
    %17 = vector.extract_strided_slice %14 {offsets = [0, 64], sizes = [8, 32], strides = [1, 1]} : vector<8x96xf32> to vector<8x32xf32>
    %c0_i32 = arith.constant 0 : i32
    %18 = vector.broadcast %c0_i32 : i32 to vector<8x8xi32>
    %19 = arith.cmpi eq, %0, %18 : vector<8x8xi32>
    %20 = vector.extract_strided_slice %15 {offsets = [0, 0], sizes = [8, 8], strides = [1, 1]} : vector<8x32xf32> to vector<8x8xf32>
    %21 = vector.extract_strided_slice %16 {offsets = [0, 0], sizes = [8, 8], strides = [1, 1]} : vector<8x32xf32> to vector<8x8xf32>
    %22 = vector.extract_strided_slice %17 {offsets = [0, 0], sizes = [8, 8], strides = [1, 1]} : vector<8x32xf32> to vector<8x8xf32>
    %cst_19 = arith.constant dense<0.000000e+00> : vector<8x8xf32>
    %23 = tpu.matmul %20, %21, %cst_19 {dimension_numbers = #tpu.dot_dimension_numbers<[1], [1], [0], [0], [0, 0, 1, 0], [], []>} : vector<8x8xf32>, vector<8x8xf32>, vector<8x8xf32> -> vector<8x8xf32>
    %cst_20 = arith.constant 0.353553385 : f32
    %24 = vector.broadcast %cst_20 : f32 to vector<8x8xf32>
    %25 = arith.mulf %23, %24 : vector<8x8xf32>
    %cst_21 = arith.constant 9.99999971E-10 : f32
    %26 = vector.broadcast %cst_21 : f32 to vector<8x8xf32>
    %27 = arith.select %19, %26, %25 : vector<8x8xi1>, vector<8x8xf32>
    %cst_22 = arith.constant dense<0xFF800000> : vector<8xf32>
    %28 = vector.multi_reduction <maximumf>, %27, %cst_22 [1] : vector<8x8xf32> to vector<8xf32>
    %29 = vector.shape_cast %28 : vector<8xf32> to vector<8x1xf32>
    %30 = vector.broadcast %29 : vector<8x1xf32> to vector<8x8xf32>
    %31 = arith.subf %27, %30 : vector<8x8xf32>
    %32 = math.exp %31 : vector<8x8xf32>
    %cst_23 = arith.constant dense<0.000000e+00> : vector<8xf32>
    %33 = vector.multi_reduction <add>, %32, %cst_23 [1] : vector<8x8xf32> to vector<8xf32>
    %34 = vector.shape_cast %33 : vector<8xf32> to vector<8x1xf32>
    %35 = vector.broadcast %34 : vector<8x1xf32> to vector<8x8xf32>
    %36 = arith.divf %32, %35 : vector<8x8xf32>
    %cst_24 = arith.constant dense<0.000000e+00> : vector<8x8xf32>
    %37 = tpu.matmul %36, %22, %cst_24 {dimension_numbers = #tpu.dot_dimension_numbers<[1], [0], [0], [1], [0, 0, 1, 1], [], []>} : vector<8x8xf32>, vector<8x8xf32>, vector<8x8xf32> -> vector<8x8xf32>
    %38 = vector.extract_strided_slice %15 {offsets = [0, 8], sizes = [8, 8], strides = [1, 1]} : vector<8x32xf32> to vector<8x8xf32>
    %39 = vector.extract_strided_slice %16 {offsets = [0, 8], sizes = [8, 8], strides = [1, 1]} : vector<8x32xf32> to vector<8x8xf32>
    %40 = vector.extract_strided_slice %17 {offsets = [0, 8], sizes = [8, 8], strides = [1, 1]} : vector<8x32xf32> to vector<8x8xf32>
    %cst_25 = arith.constant dense<0.000000e+00> : vector<8x8xf32>
    %41 = tpu.matmul %38, %39, %cst_25 {dimension_numbers = #tpu.dot_dimension_numbers<[1], [1], [0], [0], [0, 0, 1, 0], [], []>} : vector<8x8xf32>, vector<8x8xf32>, vector<8x8xf32> -> vector<8x8xf32>
    %cst_26 = arith.constant 0.353553385 : f32
    %42 = vector.broadcast %cst_26 : f32 to vector<8x8xf32>
    %43 = arith.mulf %41, %42 : vector<8x8xf32>
    %cst_27 = arith.constant 9.99999971E-10 : f32
    %44 = vector.broadcast %cst_27 : f32 to vector<8x8xf32>
    %45 = arith.select %19, %44, %43 : vector<8x8xi1>, vector<8x8xf32>
    %cst_28 = arith.constant dense<0xFF800000> : vector<8xf32>
    %46 = vector.multi_reduction <maximumf>, %45, %cst_28 [1] : vector<8x8xf32> to vector<8xf32>
    %47 = vector.shape_cast %46 : vector<8xf32> to vector<8x1xf32>
    %48 = vector.broadcast %47 : vector<8x1xf32> to vector<8x8xf32>
    %49 = arith.subf %45, %48 : vector<8x8xf32>
    %50 = math.exp %49 : vector<8x8xf32>
    %cst_29 = arith.constant dense<0.000000e+00> : vector<8xf32>
    %51 = vector.multi_reduction <add>, %50, %cst_29 [1] : vector<8x8xf32> to vector<8xf32>
    %52 = vector.shape_cast %51 : vector<8xf32> to vector<8x1xf32>
    %53 = vector.broadcast %52 : vector<8x1xf32> to vector<8x8xf32>
    %54 = arith.divf %50, %53 : vector<8x8xf32>
    %cst_30 = arith.constant dense<0.000000e+00> : vector<8x8xf32>
    %55 = tpu.matmul %54, %40, %cst_30 {dimension_numbers = #tpu.dot_dimension_numbers<[1], [0], [0], [1], [0, 0, 1, 1], [], []>} : vector<8x8xf32>, vector<8x8xf32>, vector<8x8xf32> -> vector<8x8xf32>
    %56 = vector.extract_strided_slice %15 {offsets = [0, 16], sizes = [8, 8], strides = [1, 1]} : vector<8x32xf32> to vector<8x8xf32>
    %57 = vector.extract_strided_slice %16 {offsets = [0, 16], sizes = [8, 8], strides = [1, 1]} : vector<8x32xf32> to vector<8x8xf32>
    %58 = vector.extract_strided_slice %17 {offsets = [0, 16], sizes = [8, 8], strides = [1, 1]} : vector<8x32xf32> to vector<8x8xf32>
    %cst_31 = arith.constant dense<0.000000e+00> : vector<8x8xf32>
    %59 = tpu.matmul %56, %57, %cst_31 {dimension_numbers = #tpu.dot_dimension_numbers<[1], [1], [0], [0], [0, 0, 1, 0], [], []>} : vector<8x8xf32>, vector<8x8xf32>, vector<8x8xf32> -> vector<8x8xf32>
    %cst_32 = arith.constant 0.353553385 : f32
    %60 = vector.broadcast %cst_32 : f32 to vector<8x8xf32>
    %61 = arith.mulf %59, %60 : vector<8x8xf32>
    %cst_33 = arith.constant 9.99999971E-10 : f32
    %62 = vector.broadcast %cst_33 : f32 to vector<8x8xf32>
    %63 = arith.select %19, %62, %61 : vector<8x8xi1>, vector<8x8xf32>
    %cst_34 = arith.constant dense<0xFF800000> : vector<8xf32>
    %64 = vector.multi_reduction <maximumf>, %63, %cst_34 [1] : vector<8x8xf32> to vector<8xf32>
    %65 = vector.shape_cast %64 : vector<8xf32> to vector<8x1xf32>
    %66 = vector.broadcast %65 : vector<8x1xf32> to vector<8x8xf32>
    %67 = arith.subf %63, %66 : vector<8x8xf32>
    %68 = math.exp %67 : vector<8x8xf32>
    %cst_35 = arith.constant dense<0.000000e+00> : vector<8xf32>
    %69 = vector.multi_reduction <add>, %68, %cst_35 [1] : vector<8x8xf32> to vector<8xf32>
    %70 = vector.shape_cast %69 : vector<8xf32> to vector<8x1xf32>
    %71 = vector.broadcast %70 : vector<8x1xf32> to vector<8x8xf32>
    %72 = arith.divf %68, %71 : vector<8x8xf32>
    %cst_36 = arith.constant dense<0.000000e+00> : vector<8x8xf32>
    %73 = tpu.matmul %72, %58, %cst_36 {dimension_numbers = #tpu.dot_dimension_numbers<[1], [0], [0], [1], [0, 0, 1, 1], [], []>} : vector<8x8xf32>, vector<8x8xf32>, vector<8x8xf32> -> vector<8x8xf32>
    %74 = vector.extract_strided_slice %15 {offsets = [0, 24], sizes = [8, 8], strides = [1, 1]} : vector<8x32xf32> to vector<8x8xf32>
    %75 = vector.extract_strided_slice %16 {offsets = [0, 24], sizes = [8, 8], strides = [1, 1]} : vector<8x32xf32> to vector<8x8xf32>
    %76 = vector.extract_strided_slice %17 {offsets = [0, 24], sizes = [8, 8], strides = [1, 1]} : vector<8x32xf32> to vector<8x8xf32>
    %cst_37 = arith.constant dense<0.000000e+00> : vector<8x8xf32>
    %77 = tpu.matmul %74, %75, %cst_37 {dimension_numbers = #tpu.dot_dimension_numbers<[1], [1], [0], [0], [0, 0, 1, 0], [], []>} : vector<8x8xf32>, vector<8x8xf32>, vector<8x8xf32> -> vector<8x8xf32>
    %cst_38 = arith.constant 0.353553385 : f32
    %78 = vector.broadcast %cst_38 : f32 to vector<8x8xf32>
    %79 = arith.mulf %77, %78 : vector<8x8xf32>
    %cst_39 = arith.constant 9.99999971E-10 : f32
    %80 = vector.broadcast %cst_39 : f32 to vector<8x8xf32>
    %81 = arith.select %19, %80, %79 : vector<8x8xi1>, vector<8x8xf32>
    %cst_40 = arith.constant dense<0xFF800000> : vector<8xf32>
    %82 = vector.multi_reduction <maximumf>, %81, %cst_40 [1] : vector<8x8xf32> to vector<8xf32>
    %83 = vector.shape_cast %82 : vector<8xf32> to vector<8x1xf32>
    %84 = vector.broadcast %83 : vector<8x1xf32> to vector<8x8xf32>
    %85 = arith.subf %81, %84 : vector<8x8xf32>
    %86 = math.exp %85 : vector<8x8xf32>
    %cst_41 = arith.constant dense<0.000000e+00> : vector<8xf32>
    %87 = vector.multi_reduction <add>, %86, %cst_41 [1] : vector<8x8xf32> to vector<8xf32>
    %88 = vector.shape_cast %87 : vector<8xf32> to vector<8x1xf32>
    %89 = vector.broadcast %88 : vector<8x1xf32> to vector<8x8xf32>
    %90 = arith.divf %86, %89 : vector<8x8xf32>
    %cst_42 = arith.constant dense<0.000000e+00> : vector<8x8xf32>
    %91 = tpu.matmul %90, %76, %cst_42 {dimension_numbers = #tpu.dot_dimension_numbers<[1], [0], [0], [1], [0, 0, 1, 1], [], []>} : vector<8x8xf32>, vector<8x8xf32>, vector<8x8xf32> -> vector<8x8xf32>
    %92 = tpu.concatenate %37, %55, %73, %91 in 1 : vector<8x8xf32>, vector<8x8xf32>, vector<8x8xf32>, vector<8x8xf32> -> vector<8x32xf32>
    %cst_43 = arith.constant dense<0.000000e+00> : vector<8x32xf32>
    %93 = tpu.matmul %92, %9, %cst_43 {dimension_numbers = #tpu.dot_dimension_numbers<[1], [0], [0], [1], [0, 0, 1, 1], [], []>} : vector<8x32xf32>, vector<32x32xf32>, vector<8x32xf32> -> vector<8x32xf32>
    %94 = vector.broadcast %11 : vector<1x32xf32> to vector<8x32xf32>
    %95 = arith.addf %93, %94 : vector<8x32xf32>
    %96 = arith.addf %3, %95 : vector<8x32xf32>
    %97 = arith.addf %96, %3 : vector<8x32xf32>
    %cst_44 = arith.constant dense<0.000000e+00> : vector<8xf32>
    %98 = vector.multi_reduction <add>, %97, %cst_44 [1] : vector<8x32xf32> to vector<8xf32>
    %99 = vector.shape_cast %98 : vector<8xf32> to vector<8x1xf32>
    %cst_45 = arith.constant 3.200000e+01 : f32
    %100 = vector.broadcast %cst_45 : f32 to vector<8x1xf32>
    %101 = arith.divf %99, %100 : vector<8x1xf32>
    %102 = vector.broadcast %101 : vector<8x1xf32> to vector<8x32xf32>
    %103 = arith.subf %97, %102 : vector<8x32xf32>
    %104 = arith.mulf %103, %103 : vector<8x32xf32>
    %cst_46 = arith.constant dense<0.000000e+00> : vector<8xf32>
    %105 = vector.multi_reduction <add>, %104, %cst_46 [1] : vector<8x32xf32> to vector<8xf32>
    %106 = vector.shape_cast %105 : vector<8xf32> to vector<8x1xf32>
    %cst_47 = arith.constant 3.200000e+01 : f32
    %107 = vector.broadcast %cst_47 : f32 to vector<8x1xf32>
    %108 = arith.divf %106, %107 : vector<8x1xf32>
    %cst_48 = arith.constant 9.99999997E-7 : f32
    %109 = vector.broadcast %cst_48 : f32 to vector<8x1xf32>
    %110 = arith.addf %108, %109 : vector<8x1xf32>
    %111 = math.rsqrt %110 : vector<8x1xf32>
    %112 = vector.broadcast %111 : vector<8x1xf32> to vector<8x32xf32>
    %113 = arith.mulf %103, %112 : vector<8x32xf32>
    %c0_49 = arith.constant 0 : index
    %c0_50 = arith.constant 0 : index
    %c0_51 = arith.constant 0 : index
    %114 = vector.load %arg10[%c0_49, %c0_50, %c0_51] : memref<2x32x64xf32, #tpu.memory_space<vmem>>, vector<1x32x64xf32>
    %115 = vector.shape_cast %114 : vector<1x32x64xf32> to vector<32x64xf32>
    %c0_52 = arith.constant 0 : index
    %c0_53 = arith.constant 0 : index
    %c0_54 = arith.constant 0 : index
    %116 = vector.load %arg11[%c0_52, %c0_53, %c0_54] : memref<2x1x64xf32, #tpu.memory_space<vmem>>, vector<1x1x64xf32>
    %117 = vector.shape_cast %116 : vector<1x1x64xf32> to vector<1x64xf32>
    %c0_55 = arith.constant 0 : index
    %c0_56 = arith.constant 0 : index
    %c0_57 = arith.constant 0 : index
    %118 = vector.load %arg12[%c0_55, %c0_56, %c0_57] : memref<2x64x32xf32, #tpu.memory_space<vmem>>, vector<1x64x32xf32>
    %119 = vector.shape_cast %118 : vector<1x64x32xf32> to vector<64x32xf32>
    %c0_58 = arith.constant 0 : index
    %c0_59 = arith.constant 0 : index
    %c0_60 = arith.constant 0 : index
    %120 = vector.load %arg13[%c0_58, %c0_59, %c0_60] : memref<2x1x32xf32, #tpu.memory_space<vmem>>, vector<1x1x32xf32>
    %121 = vector.shape_cast %120 : vector<1x1x32xf32> to vector<1x32xf32>
    %cst_61 = arith.constant dense<0.000000e+00> : vector<8x64xf32>
    %122 = tpu.matmul %113, %115, %cst_61 {dimension_numbers = #tpu.dot_dimension_numbers<[1], [0], [0], [1], [0, 0, 1, 1], [], []>} : vector<8x32xf32>, vector<32x64xf32>, vector<8x64xf32> -> vector<8x64xf32>
    %123 = vector.broadcast %117 : vector<1x64xf32> to vector<8x64xf32>
    %124 = arith.addf %122, %123 : vector<8x64xf32>
    %cst_62 = arith.constant 0.000000e+00 : f32
    %125 = vector.broadcast %cst_62 : f32 to vector<8x64xf32>
    %126 = arith.maximumf %124, %125 : vector<8x64xf32>
    %cst_63 = arith.constant dense<0.000000e+00> : vector<8x32xf32>
    %127 = tpu.matmul %126, %119, %cst_63 {dimension_numbers = #tpu.dot_dimension_numbers<[1], [0], [0], [1], [0, 0, 1, 1], [], []>} : vector<8x64xf32>, vector<64x32xf32>, vector<8x32xf32> -> vector<8x32xf32>
    %128 = vector.broadcast %121 : vector<1x32xf32> to vector<8x32xf32>
    %129 = arith.addf %127, %128 : vector<8x32xf32>
    %130 = arith.addf %113, %129 : vector<8x32xf32>
    %131 = arith.addf %130, %113 : vector<8x32xf32>
    %cst_64 = arith.constant dense<0.000000e+00> : vector<8xf32>
    %132 = vector.multi_reduction <add>, %131, %cst_64 [1] : vector<8x32xf32> to vector<8xf32>
    %133 = vector.shape_cast %132 : vector<8xf32> to vector<8x1xf32>
    %cst_65 = arith.constant 3.200000e+01 : f32
    %134 = vector.broadcast %cst_65 : f32 to vector<8x1xf32>
    %135 = arith.divf %133, %134 : vector<8x1xf32>
    %136 = vector.broadcast %135 : vector<8x1xf32> to vector<8x32xf32>
    %137 = arith.subf %131, %136 : vector<8x32xf32>
    %138 = arith.mulf %137, %137 : vector<8x32xf32>
    %cst_66 = arith.constant dense<0.000000e+00> : vector<8xf32>
    %139 = vector.multi_reduction <add>, %138, %cst_66 [1] : vector<8x32xf32> to vector<8xf32>
    %140 = vector.shape_cast %139 : vector<8xf32> to vector<8x1xf32>
    %cst_67 = arith.constant 3.200000e+01 : f32
    %141 = vector.broadcast %cst_67 : f32 to vector<8x1xf32>
    %142 = arith.divf %140, %141 : vector<8x1xf32>
    %cst_68 = arith.constant 9.99999997E-7 : f32
    %143 = vector.broadcast %cst_68 : f32 to vector<8x1xf32>
    %144 = arith.addf %142, %143 : vector<8x1xf32>
    %145 = math.rsqrt %144 : vector<8x1xf32>
    %146 = vector.broadcast %145 : vector<8x1xf32> to vector<8x32xf32>
    %147 = arith.mulf %137, %146 : vector<8x32xf32>
    %c1 = arith.constant 1 : index
    %c0_69 = arith.constant 0 : index
    %c0_70 = arith.constant 0 : index
    %148 = vector.load %arg6[%c1, %c0_69, %c0_70] : memref<2x32x96xf32, #tpu.memory_space<vmem>>, vector<1x32x96xf32>
    %149 = vector.shape_cast %148 : vector<1x32x96xf32> to vector<32x96xf32>
    %c1_71 = arith.constant 1 : index
    %c0_72 = arith.constant 0 : index
    %c0_73 = arith.constant 0 : index
    %150 = vector.load %arg7[%c1_71, %c0_72, %c0_73] : memref<2x1x96xf32, #tpu.memory_space<vmem>>, vector<1x1x96xf32>
    %151 = vector.shape_cast %150 : vector<1x1x96xf32> to vector<1x96xf32>
    %c1_74 = arith.constant 1 : index
    %c0_75 = arith.constant 0 : index
    %c0_76 = arith.constant 0 : index
    %152 = vector.load %arg8[%c1_74, %c0_75, %c0_76] : memref<2x32x32xf32, #tpu.memory_space<vmem>>, vector<1x32x32xf32>
    %153 = vector.shape_cast %152 : vector<1x32x32xf32> to vector<32x32xf32>
    %c1_77 = arith.constant 1 : index
    %c0_78 = arith.constant 0 : index
    %c0_79 = arith.constant 0 : index
    %154 = vector.load %arg9[%c1_77, %c0_78, %c0_79] : memref<2x1x32xf32, #tpu.memory_space<vmem>>, vector<1x1x32xf32>
    %155 = vector.shape_cast %154 : vector<1x1x32xf32> to vector<1x32xf32>
    %cst_80 = arith.constant dense<0.000000e+00> : vector<8x96xf32>
    %156 = tpu.matmul %147, %149, %cst_80 {dimension_numbers = #tpu.dot_dimension_numbers<[1], [0], [0], [1], [0, 0, 1, 1], [], []>} : vector<8x32xf32>, vector<32x96xf32>, vector<8x96xf32> -> vector<8x96xf32>
    %157 = vector.broadcast %151 : vector<1x96xf32> to vector<8x96xf32>
    %158 = arith.addf %156, %157 : vector<8x96xf32>
    %159 = vector.extract_strided_slice %158 {offsets = [0, 0], sizes = [8, 32], strides = [1, 1]} : vector<8x96xf32> to vector<8x32xf32>
    %160 = vector.extract_strided_slice %158 {offsets = [0, 32], sizes = [8, 32], strides = [1, 1]} : vector<8x96xf32> to vector<8x32xf32>
    %161 = vector.extract_strided_slice %158 {offsets = [0, 64], sizes = [8, 32], strides = [1, 1]} : vector<8x96xf32> to vector<8x32xf32>
    %c0_i32_81 = arith.constant 0 : i32
    %162 = vector.broadcast %c0_i32_81 : i32 to vector<8x8xi32>
    %163 = arith.cmpi eq, %0, %162 : vector<8x8xi32>
    %164 = vector.extract_strided_slice %159 {offsets = [0, 0], sizes = [8, 8], strides = [1, 1]} : vector<8x32xf32> to vector<8x8xf32>
    %165 = vector.extract_strided_slice %160 {offsets = [0, 0], sizes = [8, 8], strides = [1, 1]} : vector<8x32xf32> to vector<8x8xf32>
    %166 = vector.extract_strided_slice %161 {offsets = [0, 0], sizes = [8, 8], strides = [1, 1]} : vector<8x32xf32> to vector<8x8xf32>
    %cst_82 = arith.constant dense<0.000000e+00> : vector<8x8xf32>
    %167 = tpu.matmul %164, %165, %cst_82 {dimension_numbers = #tpu.dot_dimension_numbers<[1], [1], [0], [0], [0, 0, 1, 0], [], []>} : vector<8x8xf32>, vector<8x8xf32>, vector<8x8xf32> -> vector<8x8xf32>
    %cst_83 = arith.constant 0.353553385 : f32
    %168 = vector.broadcast %cst_83 : f32 to vector<8x8xf32>
    %169 = arith.mulf %167, %168 : vector<8x8xf32>
    %cst_84 = arith.constant 9.99999971E-10 : f32
    %170 = vector.broadcast %cst_84 : f32 to vector<8x8xf32>
    %171 = arith.select %163, %170, %169 : vector<8x8xi1>, vector<8x8xf32>
    %cst_85 = arith.constant dense<0xFF800000> : vector<8xf32>
    %172 = vector.multi_reduction <maximumf>, %171, %cst_85 [1] : vector<8x8xf32> to vector<8xf32>
    %173 = vector.shape_cast %172 : vector<8xf32> to vector<8x1xf32>
    %174 = vector.broadcast %173 : vector<8x1xf32> to vector<8x8xf32>
    %175 = arith.subf %171, %174 : vector<8x8xf32>
    %176 = math.exp %175 : vector<8x8xf32>
    %cst_86 = arith.constant dense<0.000000e+00> : vector<8xf32>
    %177 = vector.multi_reduction <add>, %176, %cst_86 [1] : vector<8x8xf32> to vector<8xf32>
    %178 = vector.shape_cast %177 : vector<8xf32> to vector<8x1xf32>
    %179 = vector.broadcast %178 : vector<8x1xf32> to vector<8x8xf32>
    %180 = arith.divf %176, %179 : vector<8x8xf32>
    %cst_87 = arith.constant dense<0.000000e+00> : vector<8x8xf32>
    %181 = tpu.matmul %180, %166, %cst_87 {dimension_numbers = #tpu.dot_dimension_numbers<[1], [0], [0], [1], [0, 0, 1, 1], [], []>} : vector<8x8xf32>, vector<8x8xf32>, vector<8x8xf32> -> vector<8x8xf32>
    %182 = vector.extract_strided_slice %159 {offsets = [0, 8], sizes = [8, 8], strides = [1, 1]} : vector<8x32xf32> to vector<8x8xf32>
    %183 = vector.extract_strided_slice %160 {offsets = [0, 8], sizes = [8, 8], strides = [1, 1]} : vector<8x32xf32> to vector<8x8xf32>
    %184 = vector.extract_strided_slice %161 {offsets = [0, 8], sizes = [8, 8], strides = [1, 1]} : vector<8x32xf32> to vector<8x8xf32>
    %cst_88 = arith.constant dense<0.000000e+00> : vector<8x8xf32>
    %185 = tpu.matmul %182, %183, %cst_88 {dimension_numbers = #tpu.dot_dimension_numbers<[1], [1], [0], [0], [0, 0, 1, 0], [], []>} : vector<8x8xf32>, vector<8x8xf32>, vector<8x8xf32> -> vector<8x8xf32>
    %cst_89 = arith.constant 0.353553385 : f32
    %186 = vector.broadcast %cst_89 : f32 to vector<8x8xf32>
    %187 = arith.mulf %185, %186 : vector<8x8xf32>
    %cst_90 = arith.constant 9.99999971E-10 : f32
    %188 = vector.broadcast %cst_90 : f32 to vector<8x8xf32>
    %189 = arith.select %163, %188, %187 : vector<8x8xi1>, vector<8x8xf32>
    %cst_91 = arith.constant dense<0xFF800000> : vector<8xf32>
    %190 = vector.multi_reduction <maximumf>, %189, %cst_91 [1] : vector<8x8xf32> to vector<8xf32>
    %191 = vector.shape_cast %190 : vector<8xf32> to vector<8x1xf32>
    %192 = vector.broadcast %191 : vector<8x1xf32> to vector<8x8xf32>
    %193 = arith.subf %189, %192 : vector<8x8xf32>
    %194 = math.exp %193 : vector<8x8xf32>
    %cst_92 = arith.constant dense<0.000000e+00> : vector<8xf32>
    %195 = vector.multi_reduction <add>, %194, %cst_92 [1] : vector<8x8xf32> to vector<8xf32>
    %196 = vector.shape_cast %195 : vector<8xf32> to vector<8x1xf32>
    %197 = vector.broadcast %196 : vector<8x1xf32> to vector<8x8xf32>
    %198 = arith.divf %194, %197 : vector<8x8xf32>
    %cst_93 = arith.constant dense<0.000000e+00> : vector<8x8xf32>
    %199 = tpu.matmul %198, %184, %cst_93 {dimension_numbers = #tpu.dot_dimension_numbers<[1], [0], [0], [1], [0, 0, 1, 1], [], []>} : vector<8x8xf32>, vector<8x8xf32>, vector<8x8xf32> -> vector<8x8xf32>
    %200 = vector.extract_strided_slice %159 {offsets = [0, 16], sizes = [8, 8], strides = [1, 1]} : vector<8x32xf32> to vector<8x8xf32>
    %201 = vector.extract_strided_slice %160 {offsets = [0, 16], sizes = [8, 8], strides = [1, 1]} : vector<8x32xf32> to vector<8x8xf32>
    %202 = vector.extract_strided_slice %161 {offsets = [0, 16], sizes = [8, 8], strides = [1, 1]} : vector<8x32xf32> to vector<8x8xf32>
    %cst_94 = arith.constant dense<0.000000e+00> : vector<8x8xf32>
    %203 = tpu.matmul %200, %201, %cst_94 {dimension_numbers = #tpu.dot_dimension_numbers<[1], [1], [0], [0], [0, 0, 1, 0], [], []>} : vector<8x8xf32>, vector<8x8xf32>, vector<8x8xf32> -> vector<8x8xf32>
    %cst_95 = arith.constant 0.353553385 : f32
    %204 = vector.broadcast %cst_95 : f32 to vector<8x8xf32>
    %205 = arith.mulf %203, %204 : vector<8x8xf32>
    %cst_96 = arith.constant 9.99999971E-10 : f32
    %206 = vector.broadcast %cst_96 : f32 to vector<8x8xf32>
    %207 = arith.select %163, %206, %205 : vector<8x8xi1>, vector<8x8xf32>
    %cst_97 = arith.constant dense<0xFF800000> : vector<8xf32>
    %208 = vector.multi_reduction <maximumf>, %207, %cst_97 [1] : vector<8x8xf32> to vector<8xf32>
    %209 = vector.shape_cast %208 : vector<8xf32> to vector<8x1xf32>
    %210 = vector.broadcast %209 : vector<8x1xf32> to vector<8x8xf32>
    %211 = arith.subf %207, %210 : vector<8x8xf32>
    %212 = math.exp %211 : vector<8x8xf32>
    %cst_98 = arith.constant dense<0.000000e+00> : vector<8xf32>
    %213 = vector.multi_reduction <add>, %212, %cst_98 [1] : vector<8x8xf32> to vector<8xf32>
    %214 = vector.shape_cast %213 : vector<8xf32> to vector<8x1xf32>
    %215 = vector.broadcast %214 : vector<8x1xf32> to vector<8x8xf32>
    %216 = arith.divf %212, %215 : vector<8x8xf32>
    %cst_99 = arith.constant dense<0.000000e+00> : vector<8x8xf32>
    %217 = tpu.matmul %216, %202, %cst_99 {dimension_numbers = #tpu.dot_dimension_numbers<[1], [0], [0], [1], [0, 0, 1, 1], [], []>} : vector<8x8xf32>, vector<8x8xf32>, vector<8x8xf32> -> vector<8x8xf32>
    %218 = vector.extract_strided_slice %159 {offsets = [0, 24], sizes = [8, 8], strides = [1, 1]} : vector<8x32xf32> to vector<8x8xf32>
    %219 = vector.extract_strided_slice %160 {offsets = [0, 24], sizes = [8, 8], strides = [1, 1]} : vector<8x32xf32> to vector<8x8xf32>
    %220 = vector.extract_strided_slice %161 {offsets = [0, 24], sizes = [8, 8], strides = [1, 1]} : vector<8x32xf32> to vector<8x8xf32>
    %cst_100 = arith.constant dense<0.000000e+00> : vector<8x8xf32>
    %221 = tpu.matmul %218, %219, %cst_100 {dimension_numbers = #tpu.dot_dimension_numbers<[1], [1], [0], [0], [0, 0, 1, 0], [], []>} : vector<8x8xf32>, vector<8x8xf32>, vector<8x8xf32> -> vector<8x8xf32>
    %cst_101 = arith.constant 0.353553385 : f32
    %222 = vector.broadcast %cst_101 : f32 to vector<8x8xf32>
    %223 = arith.mulf %221, %222 : vector<8x8xf32>
    %cst_102 = arith.constant 9.99999971E-10 : f32
    %224 = vector.broadcast %cst_102 : f32 to vector<8x8xf32>
    %225 = arith.select %163, %224, %223 : vector<8x8xi1>, vector<8x8xf32>
    %cst_103 = arith.constant dense<0xFF800000> : vector<8xf32>
    %226 = vector.multi_reduction <maximumf>, %225, %cst_103 [1] : vector<8x8xf32> to vector<8xf32>
    %227 = vector.shape_cast %226 : vector<8xf32> to vector<8x1xf32>
    %228 = vector.broadcast %227 : vector<8x1xf32> to vector<8x8xf32>
    %229 = arith.subf %225, %228 : vector<8x8xf32>
    %230 = math.exp %229 : vector<8x8xf32>
    %cst_104 = arith.constant dense<0.000000e+00> : vector<8xf32>
    %231 = vector.multi_reduction <add>, %230, %cst_104 [1] : vector<8x8xf32> to vector<8xf32>
    %232 = vector.shape_cast %231 : vector<8xf32> to vector<8x1xf32>
    %233 = vector.broadcast %232 : vector<8x1xf32> to vector<8x8xf32>
    %234 = arith.divf %230, %233 : vector<8x8xf32>
    %cst_105 = arith.constant dense<0.000000e+00> : vector<8x8xf32>
    %235 = tpu.matmul %234, %220, %cst_105 {dimension_numbers = #tpu.dot_dimension_numbers<[1], [0], [0], [1], [0, 0, 1, 1], [], []>} : vector<8x8xf32>, vector<8x8xf32>, vector<8x8xf32> -> vector<8x8xf32>
    %236 = tpu.concatenate %181, %199, %217, %235 in 1 : vector<8x8xf32>, vector<8x8xf32>, vector<8x8xf32>, vector<8x8xf32> -> vector<8x32xf32>
    %cst_106 = arith.constant dense<0.000000e+00> : vector<8x32xf32>
    %237 = tpu.matmul %236, %153, %cst_106 {dimension_numbers = #tpu.dot_dimension_numbers<[1], [0], [0], [1], [0, 0, 1, 1], [], []>} : vector<8x32xf32>, vector<32x32xf32>, vector<8x32xf32> -> vector<8x32xf32>
    %238 = vector.broadcast %155 : vector<1x32xf32> to vector<8x32xf32>
    %239 = arith.addf %237, %238 : vector<8x32xf32>
    %240 = arith.addf %147, %239 : vector<8x32xf32>
    %241 = arith.addf %240, %147 : vector<8x32xf32>
    %cst_107 = arith.constant dense<0.000000e+00> : vector<8xf32>
    %242 = vector.multi_reduction <add>, %241, %cst_107 [1] : vector<8x32xf32> to vector<8xf32>
    %243 = vector.shape_cast %242 : vector<8xf32> to vector<8x1xf32>
    %cst_108 = arith.constant 3.200000e+01 : f32
    %244 = vector.broadcast %cst_108 : f32 to vector<8x1xf32>
    %245 = arith.divf %243, %244 : vector<8x1xf32>
    %246 = vector.broadcast %245 : vector<8x1xf32> to vector<8x32xf32>
    %247 = arith.subf %241, %246 : vector<8x32xf32>
    %248 = arith.mulf %247, %247 : vector<8x32xf32>
    %cst_109 = arith.constant dense<0.000000e+00> : vector<8xf32>
    %249 = vector.multi_reduction <add>, %248, %cst_109 [1] : vector<8x32xf32> to vector<8xf32>
    %250 = vector.shape_cast %249 : vector<8xf32> to vector<8x1xf32>
    %cst_110 = arith.constant 3.200000e+01 : f32
    %251 = vector.broadcast %cst_110 : f32 to vector<8x1xf32>
    %252 = arith.divf %250, %251 : vector<8x1xf32>
    %cst_111 = arith.constant 9.99999997E-7 : f32
    %253 = vector.broadcast %cst_111 : f32 to vector<8x1xf32>
    %254 = arith.addf %252, %253 : vector<8x1xf32>
    %255 = math.rsqrt %254 : vector<8x1xf32>
    %256 = vector.broadcast %255 : vector<8x1xf32> to vector<8x32xf32>
    %257 = arith.mulf %247, %256 : vector<8x32xf32>
    %c1_112 = arith.constant 1 : index
    %c0_113 = arith.constant 0 : index
    %c0_114 = arith.constant 0 : index
    %258 = vector.load %arg10[%c1_112, %c0_113, %c0_114] : memref<2x32x64xf32, #tpu.memory_space<vmem>>, vector<1x32x64xf32>
    %259 = vector.shape_cast %258 : vector<1x32x64xf32> to vector<32x64xf32>
    %c1_115 = arith.constant 1 : index
    %c0_116 = arith.constant 0 : index
    %c0_117 = arith.constant 0 : index
    %260 = vector.load %arg11[%c1_115, %c0_116, %c0_117] : memref<2x1x64xf32, #tpu.memory_space<vmem>>, vector<1x1x64xf32>
    %261 = vector.shape_cast %260 : vector<1x1x64xf32> to vector<1x64xf32>
    %c1_118 = arith.constant 1 : index
    %c0_119 = arith.constant 0 : index
    %c0_120 = arith.constant 0 : index
    %262 = vector.load %arg12[%c1_118, %c0_119, %c0_120] : memref<2x64x32xf32, #tpu.memory_space<vmem>>, vector<1x64x32xf32>
    %263 = vector.shape_cast %262 : vector<1x64x32xf32> to vector<64x32xf32>
    %c1_121 = arith.constant 1 : index
    %c0_122 = arith.constant 0 : index
    %c0_123 = arith.constant 0 : index
    %264 = vector.load %arg13[%c1_121, %c0_122, %c0_123] : memref<2x1x32xf32, #tpu.memory_space<vmem>>, vector<1x1x32xf32>
    %265 = vector.shape_cast %264 : vector<1x1x32xf32> to vector<1x32xf32>
    %cst_124 = arith.constant dense<0.000000e+00> : vector<8x64xf32>
    %266 = tpu.matmul %257, %259, %cst_124 {dimension_numbers = #tpu.dot_dimension_numbers<[1], [0], [0], [1], [0, 0, 1, 1], [], []>} : vector<8x32xf32>, vector<32x64xf32>, vector<8x64xf32> -> vector<8x64xf32>
    %267 = vector.broadcast %261 : vector<1x64xf32> to vector<8x64xf32>
    %268 = arith.addf %266, %267 : vector<8x64xf32>
    %cst_125 = arith.constant 0.000000e+00 : f32
    %269 = vector.broadcast %cst_125 : f32 to vector<8x64xf32>
    %270 = arith.maximumf %268, %269 : vector<8x64xf32>
    %cst_126 = arith.constant dense<0.000000e+00> : vector<8x32xf32>
    %271 = tpu.matmul %270, %263, %cst_126 {dimension_numbers = #tpu.dot_dimension_numbers<[1], [0], [0], [1], [0, 0, 1, 1], [], []>} : vector<8x64xf32>, vector<64x32xf32>, vector<8x32xf32> -> vector<8x32xf32>
    %272 = vector.broadcast %265 : vector<1x32xf32> to vector<8x32xf32>
    %273 = arith.addf %271, %272 : vector<8x32xf32>
    %274 = arith.addf %257, %273 : vector<8x32xf32>
    %275 = arith.addf %274, %257 : vector<8x32xf32>
    %cst_127 = arith.constant dense<0.000000e+00> : vector<8xf32>
    %276 = vector.multi_reduction <add>, %275, %cst_127 [1] : vector<8x32xf32> to vector<8xf32>
    %277 = vector.shape_cast %276 : vector<8xf32> to vector<8x1xf32>
    %cst_128 = arith.constant 3.200000e+01 : f32
    %278 = vector.broadcast %cst_128 : f32 to vector<8x1xf32>
    %279 = arith.divf %277, %278 : vector<8x1xf32>
    %280 = vector.broadcast %279 : vector<8x1xf32> to vector<8x32xf32>
    %281 = arith.subf %275, %280 : vector<8x32xf32>
    %282 = arith.mulf %281, %281 : vector<8x32xf32>
    %cst_129 = arith.constant dense<0.000000e+00> : vector<8xf32>
    %283 = vector.multi_reduction <add>, %282, %cst_129 [1] : vector<8x32xf32> to vector<8xf32>
    %284 = vector.shape_cast %283 : vector<8xf32> to vector<8x1xf32>
    %cst_130 = arith.constant 3.200000e+01 : f32
    %285 = vector.broadcast %cst_130 : f32 to vector<8x1xf32>
    %286 = arith.divf %284, %285 : vector<8x1xf32>
    %cst_131 = arith.constant 9.99999997E-7 : f32
    %287 = vector.broadcast %cst_131 : f32 to vector<8x1xf32>
    %288 = arith.addf %286, %287 : vector<8x1xf32>
    %289 = math.rsqrt %288 : vector<8x1xf32>
    %290 = vector.broadcast %289 : vector<8x1xf32> to vector<8x32xf32>
    %291 = arith.mulf %281, %290 : vector<8x32xf32>
    %c0_132 = arith.constant 0 : index
    %c0_133 = arith.constant 0 : index
    %292 = vector.load %arg2[%c0_132, %c0_133] : memref<8x32xf32, #tpu.memory_space<vmem>>, vector<8x32xf32>
    %c0_134 = arith.constant 0 : index
    %c0_135 = arith.constant 0 : index
    %c0_136 = arith.constant 0 : index
    %293 = vector.load %arg14[%c0_134, %c0_135, %c0_136] : memref<2x32x96xf32, #tpu.memory_space<vmem>>, vector<1x32x96xf32>
    %294 = vector.shape_cast %293 : vector<1x32x96xf32> to vector<32x96xf32>
    %c0_137 = arith.constant 0 : index
    %c0_138 = arith.constant 0 : index
    %c0_139 = arith.constant 0 : index
    %295 = vector.load %arg15[%c0_137, %c0_138, %c0_139] : memref<2x1x96xf32, #tpu.memory_space<vmem>>, vector<1x1x96xf32>
    %296 = vector.shape_cast %295 : vector<1x1x96xf32> to vector<1x96xf32>
    %c0_140 = arith.constant 0 : index
    %c0_141 = arith.constant 0 : index
    %c0_142 = arith.constant 0 : index
    %297 = vector.load %arg16[%c0_140, %c0_141, %c0_142] : memref<2x32x32xf32, #tpu.memory_space<vmem>>, vector<1x32x32xf32>
    %298 = vector.shape_cast %297 : vector<1x32x32xf32> to vector<32x32xf32>
    %c0_143 = arith.constant 0 : index
    %c0_144 = arith.constant 0 : index
    %c0_145 = arith.constant 0 : index
    %299 = vector.load %arg17[%c0_143, %c0_144, %c0_145] : memref<2x1x32xf32, #tpu.memory_space<vmem>>, vector<1x1x32xf32>
    %300 = vector.shape_cast %299 : vector<1x1x32xf32> to vector<1x32xf32>
    %cst_146 = arith.constant dense<0.000000e+00> : vector<8x96xf32>
    %301 = tpu.matmul %292, %294, %cst_146 {dimension_numbers = #tpu.dot_dimension_numbers<[1], [0], [0], [1], [0, 0, 1, 1], [], []>} : vector<8x32xf32>, vector<32x96xf32>, vector<8x96xf32> -> vector<8x96xf32>
    %302 = vector.broadcast %296 : vector<1x96xf32> to vector<8x96xf32>
    %303 = arith.addf %301, %302 : vector<8x96xf32>
    %304 = vector.extract_strided_slice %303 {offsets = [0, 0], sizes = [8, 32], strides = [1, 1]} : vector<8x96xf32> to vector<8x32xf32>
    %305 = vector.extract_strided_slice %303 {offsets = [0, 32], sizes = [8, 32], strides = [1, 1]} : vector<8x96xf32> to vector<8x32xf32>
    %306 = vector.extract_strided_slice %303 {offsets = [0, 64], sizes = [8, 32], strides = [1, 1]} : vector<8x96xf32> to vector<8x32xf32>
    %c0_i32_147 = arith.constant 0 : i32
    %307 = vector.broadcast %c0_i32_147 : i32 to vector<8x8xi32>
    %308 = arith.cmpi eq, %1, %307 : vector<8x8xi32>
    %309 = vector.extract_strided_slice %304 {offsets = [0, 0], sizes = [8, 8], strides = [1, 1]} : vector<8x32xf32> to vector<8x8xf32>
    %310 = vector.extract_strided_slice %305 {offsets = [0, 0], sizes = [8, 8], strides = [1, 1]} : vector<8x32xf32> to vector<8x8xf32>
    %311 = vector.extract_strided_slice %306 {offsets = [0, 0], sizes = [8, 8], strides = [1, 1]} : vector<8x32xf32> to vector<8x8xf32>
    %cst_148 = arith.constant dense<0.000000e+00> : vector<8x8xf32>
    %312 = tpu.matmul %309, %310, %cst_148 {dimension_numbers = #tpu.dot_dimension_numbers<[1], [1], [0], [0], [0, 0, 1, 0], [], []>} : vector<8x8xf32>, vector<8x8xf32>, vector<8x8xf32> -> vector<8x8xf32>
    %cst_149 = arith.constant 0.353553385 : f32
    %313 = vector.broadcast %cst_149 : f32 to vector<8x8xf32>
    %314 = arith.mulf %312, %313 : vector<8x8xf32>
    %cst_150 = arith.constant 9.99999971E-10 : f32
    %315 = vector.broadcast %cst_150 : f32 to vector<8x8xf32>
    %316 = arith.select %308, %315, %314 : vector<8x8xi1>, vector<8x8xf32>
    %cst_151 = arith.constant dense<0xFF800000> : vector<8xf32>
    %317 = vector.multi_reduction <maximumf>, %316, %cst_151 [1] : vector<8x8xf32> to vector<8xf32>
    %318 = vector.shape_cast %317 : vector<8xf32> to vector<8x1xf32>
    %319 = vector.broadcast %318 : vector<8x1xf32> to vector<8x8xf32>
    %320 = arith.subf %316, %319 : vector<8x8xf32>
    %321 = math.exp %320 : vector<8x8xf32>
    %cst_152 = arith.constant dense<0.000000e+00> : vector<8xf32>
    %322 = vector.multi_reduction <add>, %321, %cst_152 [1] : vector<8x8xf32> to vector<8xf32>
    %323 = vector.shape_cast %322 : vector<8xf32> to vector<8x1xf32>
    %324 = vector.broadcast %323 : vector<8x1xf32> to vector<8x8xf32>
    %325 = arith.divf %321, %324 : vector<8x8xf32>
    %cst_153 = arith.constant dense<0.000000e+00> : vector<8x8xf32>
    %326 = tpu.matmul %325, %311, %cst_153 {dimension_numbers = #tpu.dot_dimension_numbers<[1], [0], [0], [1], [0, 0, 1, 1], [], []>} : vector<8x8xf32>, vector<8x8xf32>, vector<8x8xf32> -> vector<8x8xf32>
    %327 = vector.extract_strided_slice %304 {offsets = [0, 8], sizes = [8, 8], strides = [1, 1]} : vector<8x32xf32> to vector<8x8xf32>
    %328 = vector.extract_strided_slice %305 {offsets = [0, 8], sizes = [8, 8], strides = [1, 1]} : vector<8x32xf32> to vector<8x8xf32>
    %329 = vector.extract_strided_slice %306 {offsets = [0, 8], sizes = [8, 8], strides = [1, 1]} : vector<8x32xf32> to vector<8x8xf32>
    %cst_154 = arith.constant dense<0.000000e+00> : vector<8x8xf32>
    %330 = tpu.matmul %327, %328, %cst_154 {dimension_numbers = #tpu.dot_dimension_numbers<[1], [1], [0], [0], [0, 0, 1, 0], [], []>} : vector<8x8xf32>, vector<8x8xf32>, vector<8x8xf32> -> vector<8x8xf32>
    %cst_155 = arith.constant 0.353553385 : f32
    %331 = vector.broadcast %cst_155 : f32 to vector<8x8xf32>
    %332 = arith.mulf %330, %331 : vector<8x8xf32>
    %cst_156 = arith.constant 9.99999971E-10 : f32
    %333 = vector.broadcast %cst_156 : f32 to vector<8x8xf32>
    %334 = arith.select %308, %333, %332 : vector<8x8xi1>, vector<8x8xf32>
    %cst_157 = arith.constant dense<0xFF800000> : vector<8xf32>
    %335 = vector.multi_reduction <maximumf>, %334, %cst_157 [1] : vector<8x8xf32> to vector<8xf32>
    %336 = vector.shape_cast %335 : vector<8xf32> to vector<8x1xf32>
    %337 = vector.broadcast %336 : vector<8x1xf32> to vector<8x8xf32>
    %338 = arith.subf %334, %337 : vector<8x8xf32>
    %339 = math.exp %338 : vector<8x8xf32>
    %cst_158 = arith.constant dense<0.000000e+00> : vector<8xf32>
    %340 = vector.multi_reduction <add>, %339, %cst_158 [1] : vector<8x8xf32> to vector<8xf32>
    %341 = vector.shape_cast %340 : vector<8xf32> to vector<8x1xf32>
    %342 = vector.broadcast %341 : vector<8x1xf32> to vector<8x8xf32>
    %343 = arith.divf %339, %342 : vector<8x8xf32>
    %cst_159 = arith.constant dense<0.000000e+00> : vector<8x8xf32>
    %344 = tpu.matmul %343, %329, %cst_159 {dimension_numbers = #tpu.dot_dimension_numbers<[1], [0], [0], [1], [0, 0, 1, 1], [], []>} : vector<8x8xf32>, vector<8x8xf32>, vector<8x8xf32> -> vector<8x8xf32>
    %345 = vector.extract_strided_slice %304 {offsets = [0, 16], sizes = [8, 8], strides = [1, 1]} : vector<8x32xf32> to vector<8x8xf32>
    %346 = vector.extract_strided_slice %305 {offsets = [0, 16], sizes = [8, 8], strides = [1, 1]} : vector<8x32xf32> to vector<8x8xf32>
    %347 = vector.extract_strided_slice %306 {offsets = [0, 16], sizes = [8, 8], strides = [1, 1]} : vector<8x32xf32> to vector<8x8xf32>
    %cst_160 = arith.constant dense<0.000000e+00> : vector<8x8xf32>
    %348 = tpu.matmul %345, %346, %cst_160 {dimension_numbers = #tpu.dot_dimension_numbers<[1], [1], [0], [0], [0, 0, 1, 0], [], []>} : vector<8x8xf32>, vector<8x8xf32>, vector<8x8xf32> -> vector<8x8xf32>
    %cst_161 = arith.constant 0.353553385 : f32
    %349 = vector.broadcast %cst_161 : f32 to vector<8x8xf32>
    %350 = arith.mulf %348, %349 : vector<8x8xf32>
    %cst_162 = arith.constant 9.99999971E-10 : f32
    %351 = vector.broadcast %cst_162 : f32 to vector<8x8xf32>
    %352 = arith.select %308, %351, %350 : vector<8x8xi1>, vector<8x8xf32>
    %cst_163 = arith.constant dense<0xFF800000> : vector<8xf32>
    %353 = vector.multi_reduction <maximumf>, %352, %cst_163 [1] : vector<8x8xf32> to vector<8xf32>
    %354 = vector.shape_cast %353 : vector<8xf32> to vector<8x1xf32>
    %355 = vector.broadcast %354 : vector<8x1xf32> to vector<8x8xf32>
    %356 = arith.subf %352, %355 : vector<8x8xf32>
    %357 = math.exp %356 : vector<8x8xf32>
    %cst_164 = arith.constant dense<0.000000e+00> : vector<8xf32>
    %358 = vector.multi_reduction <add>, %357, %cst_164 [1] : vector<8x8xf32> to vector<8xf32>
    %359 = vector.shape_cast %358 : vector<8xf32> to vector<8x1xf32>
    %360 = vector.broadcast %359 : vector<8x1xf32> to vector<8x8xf32>
    %361 = arith.divf %357, %360 : vector<8x8xf32>
    %cst_165 = arith.constant dense<0.000000e+00> : vector<8x8xf32>
    %362 = tpu.matmul %361, %347, %cst_165 {dimension_numbers = #tpu.dot_dimension_numbers<[1], [0], [0], [1], [0, 0, 1, 1], [], []>} : vector<8x8xf32>, vector<8x8xf32>, vector<8x8xf32> -> vector<8x8xf32>
    %363 = vector.extract_strided_slice %304 {offsets = [0, 24], sizes = [8, 8], strides = [1, 1]} : vector<8x32xf32> to vector<8x8xf32>
    %364 = vector.extract_strided_slice %305 {offsets = [0, 24], sizes = [8, 8], strides = [1, 1]} : vector<8x32xf32> to vector<8x8xf32>
    %365 = vector.extract_strided_slice %306 {offsets = [0, 24], sizes = [8, 8], strides = [1, 1]} : vector<8x32xf32> to vector<8x8xf32>
    %cst_166 = arith.constant dense<0.000000e+00> : vector<8x8xf32>
    %366 = tpu.matmul %363, %364, %cst_166 {dimension_numbers = #tpu.dot_dimension_numbers<[1], [1], [0], [0], [0, 0, 1, 0], [], []>} : vector<8x8xf32>, vector<8x8xf32>, vector<8x8xf32> -> vector<8x8xf32>
    %cst_167 = arith.constant 0.353553385 : f32
    %367 = vector.broadcast %cst_167 : f32 to vector<8x8xf32>
    %368 = arith.mulf %366, %367 : vector<8x8xf32>
    %cst_168 = arith.constant 9.99999971E-10 : f32
    %369 = vector.broadcast %cst_168 : f32 to vector<8x8xf32>
    %370 = arith.select %308, %369, %368 : vector<8x8xi1>, vector<8x8xf32>
    %cst_169 = arith.constant dense<0xFF800000> : vector<8xf32>
    %371 = vector.multi_reduction <maximumf>, %370, %cst_169 [1] : vector<8x8xf32> to vector<8xf32>
    %372 = vector.shape_cast %371 : vector<8xf32> to vector<8x1xf32>
    %373 = vector.broadcast %372 : vector<8x1xf32> to vector<8x8xf32>
    %374 = arith.subf %370, %373 : vector<8x8xf32>
    %375 = math.exp %374 : vector<8x8xf32>
    %cst_170 = arith.constant dense<0.000000e+00> : vector<8xf32>
    %376 = vector.multi_reduction <add>, %375, %cst_170 [1] : vector<8x8xf32> to vector<8xf32>
    %377 = vector.shape_cast %376 : vector<8xf32> to vector<8x1xf32>
    %378 = vector.broadcast %377 : vector<8x1xf32> to vector<8x8xf32>
    %379 = arith.divf %375, %378 : vector<8x8xf32>
    %cst_171 = arith.constant dense<0.000000e+00> : vector<8x8xf32>
    %380 = tpu.matmul %379, %365, %cst_171 {dimension_numbers = #tpu.dot_dimension_numbers<[1], [0], [0], [1], [0, 0, 1, 1], [], []>} : vector<8x8xf32>, vector<8x8xf32>, vector<8x8xf32> -> vector<8x8xf32>
    %381 = tpu.concatenate %326, %344, %362, %380 in 1 : vector<8x8xf32>, vector<8x8xf32>, vector<8x8xf32>, vector<8x8xf32> -> vector<8x32xf32>
    %cst_172 = arith.constant dense<0.000000e+00> : vector<8x32xf32>
    %382 = tpu.matmul %381, %298, %cst_172 {dimension_numbers = #tpu.dot_dimension_numbers<[1], [0], [0], [1], [0, 0, 1, 1], [], []>} : vector<8x32xf32>, vector<32x32xf32>, vector<8x32xf32> -> vector<8x32xf32>
    %383 = vector.broadcast %300 : vector<1x32xf32> to vector<8x32xf32>
    %384 = arith.addf %382, %383 : vector<8x32xf32>
    %385 = arith.addf %384, %292 : vector<8x32xf32>
    %cst_173 = arith.constant dense<0.000000e+00> : vector<8xf32>
    %386 = vector.multi_reduction <add>, %385, %cst_173 [1] : vector<8x32xf32> to vector<8xf32>
    %387 = vector.shape_cast %386 : vector<8xf32> to vector<8x1xf32>
    %cst_174 = arith.constant 3.200000e+01 : f32
    %388 = vector.broadcast %cst_174 : f32 to vector<8x1xf32>
    %389 = arith.divf %387, %388 : vector<8x1xf32>
    %390 = vector.broadcast %389 : vector<8x1xf32> to vector<8x32xf32>
    %391 = arith.subf %385, %390 : vector<8x32xf32>
    %392 = arith.mulf %391, %391 : vector<8x32xf32>
    %cst_175 = arith.constant dense<0.000000e+00> : vector<8xf32>
    %393 = vector.multi_reduction <add>, %392, %cst_175 [1] : vector<8x32xf32> to vector<8xf32>
    %394 = vector.shape_cast %393 : vector<8xf32> to vector<8x1xf32>
    %cst_176 = arith.constant 3.200000e+01 : f32
    %395 = vector.broadcast %cst_176 : f32 to vector<8x1xf32>
    %396 = arith.divf %394, %395 : vector<8x1xf32>
    %cst_177 = arith.constant 9.99999997E-7 : f32
    %397 = vector.broadcast %cst_177 : f32 to vector<8x1xf32>
    %398 = arith.addf %396, %397 : vector<8x1xf32>
    %399 = math.rsqrt %398 : vector<8x1xf32>
    %400 = vector.broadcast %399 : vector<8x1xf32> to vector<8x32xf32>
    %401 = arith.mulf %391, %400 : vector<8x32xf32>
    %c0_178 = arith.constant 0 : index
    %c0_179 = arith.constant 0 : index
    %c0_180 = arith.constant 0 : index
    %402 = vector.load %arg18[%c0_178, %c0_179, %c0_180] : memref<2x32x32xf32, #tpu.memory_space<vmem>>, vector<1x32x32xf32>
    %403 = vector.shape_cast %402 : vector<1x32x32xf32> to vector<32x32xf32>
    %c0_181 = arith.constant 0 : index
    %c0_182 = arith.constant 0 : index
    %c0_183 = arith.constant 0 : index
    %404 = vector.load %arg19[%c0_181, %c0_182, %c0_183] : memref<2x1x32xf32, #tpu.memory_space<vmem>>, vector<1x1x32xf32>
    %405 = vector.shape_cast %404 : vector<1x1x32xf32> to vector<1x32xf32>
    %c0_184 = arith.constant 0 : index
    %c0_185 = arith.constant 0 : index
    %c0_186 = arith.constant 0 : index
    %406 = vector.load %arg20[%c0_184, %c0_185, %c0_186] : memref<2x32x64xf32, #tpu.memory_space<vmem>>, vector<1x32x64xf32>
    %407 = vector.shape_cast %406 : vector<1x32x64xf32> to vector<32x64xf32>
    %c0_187 = arith.constant 0 : index
    %c0_188 = arith.constant 0 : index
    %c0_189 = arith.constant 0 : index
    %408 = vector.load %arg21[%c0_187, %c0_188, %c0_189] : memref<2x1x64xf32, #tpu.memory_space<vmem>>, vector<1x1x64xf32>
    %409 = vector.shape_cast %408 : vector<1x1x64xf32> to vector<1x64xf32>
    %c0_190 = arith.constant 0 : index
    %c0_191 = arith.constant 0 : index
    %c0_192 = arith.constant 0 : index
    %410 = vector.load %arg22[%c0_190, %c0_191, %c0_192] : memref<2x32x32xf32, #tpu.memory_space<vmem>>, vector<1x32x32xf32>
    %411 = vector.shape_cast %410 : vector<1x32x32xf32> to vector<32x32xf32>
    %c0_193 = arith.constant 0 : index
    %c0_194 = arith.constant 0 : index
    %c0_195 = arith.constant 0 : index
    %412 = vector.load %arg23[%c0_193, %c0_194, %c0_195] : memref<2x1x32xf32, #tpu.memory_space<vmem>>, vector<1x1x32xf32>
    %413 = vector.shape_cast %412 : vector<1x1x32xf32> to vector<1x32xf32>
    %cst_196 = arith.constant dense<0.000000e+00> : vector<8x32xf32>
    %414 = tpu.matmul %401, %403, %cst_196 {dimension_numbers = #tpu.dot_dimension_numbers<[1], [0], [0], [1], [0, 0, 1, 1], [], []>} : vector<8x32xf32>, vector<32x32xf32>, vector<8x32xf32> -> vector<8x32xf32>
    %415 = vector.broadcast %405 : vector<1x32xf32> to vector<8x32xf32>
    %416 = arith.addf %414, %415 : vector<8x32xf32>
    %cst_197 = arith.constant dense<0.000000e+00> : vector<8x64xf32>
    %417 = tpu.matmul %291, %407, %cst_197 {dimension_numbers = #tpu.dot_dimension_numbers<[1], [0], [0], [1], [0, 0, 1, 1], [], []>} : vector<8x32xf32>, vector<32x64xf32>, vector<8x64xf32> -> vector<8x64xf32>
    %418 = vector.broadcast %409 : vector<1x64xf32> to vector<8x64xf32>
    %419 = arith.addf %417, %418 : vector<8x64xf32>
    %420 = vector.extract_strided_slice %419 {offsets = [0, 0], sizes = [8, 32], strides = [1, 1]} : vector<8x64xf32> to vector<8x32xf32>
    %421 = vector.extract_strided_slice %419 {offsets = [0, 32], sizes = [8, 32], strides = [1, 1]} : vector<8x64xf32> to vector<8x32xf32>
    %c0_i32_198 = arith.constant 0 : i32
    %422 = vector.broadcast %c0_i32_198 : i32 to vector<8x8xi32>
    %423 = arith.cmpi eq, %2, %422 : vector<8x8xi32>
    %424 = vector.extract_strided_slice %416 {offsets = [0, 0], sizes = [8, 8], strides = [1, 1]} : vector<8x32xf32> to vector<8x8xf32>
    %425 = vector.extract_strided_slice %420 {offsets = [0, 0], sizes = [8, 8], strides = [1, 1]} : vector<8x32xf32> to vector<8x8xf32>
    %426 = vector.extract_strided_slice %421 {offsets = [0, 0], sizes = [8, 8], strides = [1, 1]} : vector<8x32xf32> to vector<8x8xf32>
    %cst_199 = arith.constant dense<0.000000e+00> : vector<8x8xf32>
    %427 = tpu.matmul %424, %425, %cst_199 {dimension_numbers = #tpu.dot_dimension_numbers<[1], [1], [0], [0], [0, 0, 1, 0], [], []>} : vector<8x8xf32>, vector<8x8xf32>, vector<8x8xf32> -> vector<8x8xf32>
    %cst_200 = arith.constant 0.353553385 : f32
    %428 = vector.broadcast %cst_200 : f32 to vector<8x8xf32>
    %429 = arith.mulf %427, %428 : vector<8x8xf32>
    %cst_201 = arith.constant 9.99999971E-10 : f32
    %430 = vector.broadcast %cst_201 : f32 to vector<8x8xf32>
    %431 = arith.select %423, %430, %429 : vector<8x8xi1>, vector<8x8xf32>
    %cst_202 = arith.constant dense<0xFF800000> : vector<8xf32>
    %432 = vector.multi_reduction <maximumf>, %431, %cst_202 [1] : vector<8x8xf32> to vector<8xf32>
    %433 = vector.shape_cast %432 : vector<8xf32> to vector<8x1xf32>
    %434 = vector.broadcast %433 : vector<8x1xf32> to vector<8x8xf32>
    %435 = arith.subf %431, %434 : vector<8x8xf32>
    %436 = math.exp %435 : vector<8x8xf32>
    %cst_203 = arith.constant dense<0.000000e+00> : vector<8xf32>
    %437 = vector.multi_reduction <add>, %436, %cst_203 [1] : vector<8x8xf32> to vector<8xf32>
    %438 = vector.shape_cast %437 : vector<8xf32> to vector<8x1xf32>
    %439 = vector.broadcast %438 : vector<8x1xf32> to vector<8x8xf32>
    %440 = arith.divf %436, %439 : vector<8x8xf32>
    %cst_204 = arith.constant dense<0.000000e+00> : vector<8x8xf32>
    %441 = tpu.matmul %440, %426, %cst_204 {dimension_numbers = #tpu.dot_dimension_numbers<[1], [0], [0], [1], [0, 0, 1, 1], [], []>} : vector<8x8xf32>, vector<8x8xf32>, vector<8x8xf32> -> vector<8x8xf32>
    %442 = vector.extract_strided_slice %416 {offsets = [0, 8], sizes = [8, 8], strides = [1, 1]} : vector<8x32xf32> to vector<8x8xf32>
    %443 = vector.extract_strided_slice %420 {offsets = [0, 8], sizes = [8, 8], strides = [1, 1]} : vector<8x32xf32> to vector<8x8xf32>
    %444 = vector.extract_strided_slice %421 {offsets = [0, 8], sizes = [8, 8], strides = [1, 1]} : vector<8x32xf32> to vector<8x8xf32>
    %cst_205 = arith.constant dense<0.000000e+00> : vector<8x8xf32>
    %445 = tpu.matmul %442, %443, %cst_205 {dimension_numbers = #tpu.dot_dimension_numbers<[1], [1], [0], [0], [0, 0, 1, 0], [], []>} : vector<8x8xf32>, vector<8x8xf32>, vector<8x8xf32> -> vector<8x8xf32>
    %cst_206 = arith.constant 0.353553385 : f32
    %446 = vector.broadcast %cst_206 : f32 to vector<8x8xf32>
    %447 = arith.mulf %445, %446 : vector<8x8xf32>
    %cst_207 = arith.constant 9.99999971E-10 : f32
    %448 = vector.broadcast %cst_207 : f32 to vector<8x8xf32>
    %449 = arith.select %423, %448, %447 : vector<8x8xi1>, vector<8x8xf32>
    %cst_208 = arith.constant dense<0xFF800000> : vector<8xf32>
    %450 = vector.multi_reduction <maximumf>, %449, %cst_208 [1] : vector<8x8xf32> to vector<8xf32>
    %451 = vector.shape_cast %450 : vector<8xf32> to vector<8x1xf32>
    %452 = vector.broadcast %451 : vector<8x1xf32> to vector<8x8xf32>
    %453 = arith.subf %449, %452 : vector<8x8xf32>
    %454 = math.exp %453 : vector<8x8xf32>
    %cst_209 = arith.constant dense<0.000000e+00> : vector<8xf32>
    %455 = vector.multi_reduction <add>, %454, %cst_209 [1] : vector<8x8xf32> to vector<8xf32>
    %456 = vector.shape_cast %455 : vector<8xf32> to vector<8x1xf32>
    %457 = vector.broadcast %456 : vector<8x1xf32> to vector<8x8xf32>
    %458 = arith.divf %454, %457 : vector<8x8xf32>
    %cst_210 = arith.constant dense<0.000000e+00> : vector<8x8xf32>
    %459 = tpu.matmul %458, %444, %cst_210 {dimension_numbers = #tpu.dot_dimension_numbers<[1], [0], [0], [1], [0, 0, 1, 1], [], []>} : vector<8x8xf32>, vector<8x8xf32>, vector<8x8xf32> -> vector<8x8xf32>
    %460 = vector.extract_strided_slice %416 {offsets = [0, 16], sizes = [8, 8], strides = [1, 1]} : vector<8x32xf32> to vector<8x8xf32>
    %461 = vector.extract_strided_slice %420 {offsets = [0, 16], sizes = [8, 8], strides = [1, 1]} : vector<8x32xf32> to vector<8x8xf32>
    %462 = vector.extract_strided_slice %421 {offsets = [0, 16], sizes = [8, 8], strides = [1, 1]} : vector<8x32xf32> to vector<8x8xf32>
    %cst_211 = arith.constant dense<0.000000e+00> : vector<8x8xf32>
    %463 = tpu.matmul %460, %461, %cst_211 {dimension_numbers = #tpu.dot_dimension_numbers<[1], [1], [0], [0], [0, 0, 1, 0], [], []>} : vector<8x8xf32>, vector<8x8xf32>, vector<8x8xf32> -> vector<8x8xf32>
    %cst_212 = arith.constant 0.353553385 : f32
    %464 = vector.broadcast %cst_212 : f32 to vector<8x8xf32>
    %465 = arith.mulf %463, %464 : vector<8x8xf32>
    %cst_213 = arith.constant 9.99999971E-10 : f32
    %466 = vector.broadcast %cst_213 : f32 to vector<8x8xf32>
    %467 = arith.select %423, %466, %465 : vector<8x8xi1>, vector<8x8xf32>
    %cst_214 = arith.constant dense<0xFF800000> : vector<8xf32>
    %468 = vector.multi_reduction <maximumf>, %467, %cst_214 [1] : vector<8x8xf32> to vector<8xf32>
    %469 = vector.shape_cast %468 : vector<8xf32> to vector<8x1xf32>
    %470 = vector.broadcast %469 : vector<8x1xf32> to vector<8x8xf32>
    %471 = arith.subf %467, %470 : vector<8x8xf32>
    %472 = math.exp %471 : vector<8x8xf32>
    %cst_215 = arith.constant dense<0.000000e+00> : vector<8xf32>
    %473 = vector.multi_reduction <add>, %472, %cst_215 [1] : vector<8x8xf32> to vector<8xf32>
    %474 = vector.shape_cast %473 : vector<8xf32> to vector<8x1xf32>
    %475 = vector.broadcast %474 : vector<8x1xf32> to vector<8x8xf32>
    %476 = arith.divf %472, %475 : vector<8x8xf32>
    %cst_216 = arith.constant dense<0.000000e+00> : vector<8x8xf32>
    %477 = tpu.matmul %476, %462, %cst_216 {dimension_numbers = #tpu.dot_dimension_numbers<[1], [0], [0], [1], [0, 0, 1, 1], [], []>} : vector<8x8xf32>, vector<8x8xf32>, vector<8x8xf32> -> vector<8x8xf32>
    %478 = vector.extract_strided_slice %416 {offsets = [0, 24], sizes = [8, 8], strides = [1, 1]} : vector<8x32xf32> to vector<8x8xf32>
    %479 = vector.extract_strided_slice %420 {offsets = [0, 24], sizes = [8, 8], strides = [1, 1]} : vector<8x32xf32> to vector<8x8xf32>
    %480 = vector.extract_strided_slice %421 {offsets = [0, 24], sizes = [8, 8], strides = [1, 1]} : vector<8x32xf32> to vector<8x8xf32>
    %cst_217 = arith.constant dense<0.000000e+00> : vector<8x8xf32>
    %481 = tpu.matmul %478, %479, %cst_217 {dimension_numbers = #tpu.dot_dimension_numbers<[1], [1], [0], [0], [0, 0, 1, 0], [], []>} : vector<8x8xf32>, vector<8x8xf32>, vector<8x8xf32> -> vector<8x8xf32>
    %cst_218 = arith.constant 0.353553385 : f32
    %482 = vector.broadcast %cst_218 : f32 to vector<8x8xf32>
    %483 = arith.mulf %481, %482 : vector<8x8xf32>
    %cst_219 = arith.constant 9.99999971E-10 : f32
    %484 = vector.broadcast %cst_219 : f32 to vector<8x8xf32>
    %485 = arith.select %423, %484, %483 : vector<8x8xi1>, vector<8x8xf32>
    %cst_220 = arith.constant dense<0xFF800000> : vector<8xf32>
    %486 = vector.multi_reduction <maximumf>, %485, %cst_220 [1] : vector<8x8xf32> to vector<8xf32>
    %487 = vector.shape_cast %486 : vector<8xf32> to vector<8x1xf32>
    %488 = vector.broadcast %487 : vector<8x1xf32> to vector<8x8xf32>
    %489 = arith.subf %485, %488 : vector<8x8xf32>
    %490 = math.exp %489 : vector<8x8xf32>
    %cst_221 = arith.constant dense<0.000000e+00> : vector<8xf32>
    %491 = vector.multi_reduction <add>, %490, %cst_221 [1] : vector<8x8xf32> to vector<8xf32>
    %492 = vector.shape_cast %491 : vector<8xf32> to vector<8x1xf32>
    %493 = vector.broadcast %492 : vector<8x1xf32> to vector<8x8xf32>
    %494 = arith.divf %490, %493 : vector<8x8xf32>
    %cst_222 = arith.constant dense<0.000000e+00> : vector<8x8xf32>
    %495 = tpu.matmul %494, %480, %cst_222 {dimension_numbers = #tpu.dot_dimension_numbers<[1], [0], [0], [1], [0, 0, 1, 1], [], []>} : vector<8x8xf32>, vector<8x8xf32>, vector<8x8xf32> -> vector<8x8xf32>
    %496 = tpu.concatenate %441, %459, %477, %495 in 1 : vector<8x8xf32>, vector<8x8xf32>, vector<8x8xf32>, vector<8x8xf32> -> vector<8x32xf32>
    %cst_223 = arith.constant dense<0.000000e+00> : vector<8x32xf32>
    %497 = tpu.matmul %496, %411, %cst_223 {dimension_numbers = #tpu.dot_dimension_numbers<[1], [0], [0], [1], [0, 0, 1, 1], [], []>} : vector<8x32xf32>, vector<32x32xf32>, vector<8x32xf32> -> vector<8x32xf32>
    %498 = vector.broadcast %413 : vector<1x32xf32> to vector<8x32xf32>
    %499 = arith.addf %497, %498 : vector<8x32xf32>
    %500 = arith.addf %401, %499 : vector<8x32xf32>
    %501 = arith.addf %500, %401 : vector<8x32xf32>
    %cst_224 = arith.constant dense<0.000000e+00> : vector<8xf32>
    %502 = vector.multi_reduction <add>, %501, %cst_224 [1] : vector<8x32xf32> to vector<8xf32>
    %503 = vector.shape_cast %502 : vector<8xf32> to vector<8x1xf32>
    %cst_225 = arith.constant 3.200000e+01 : f32
    %504 = vector.broadcast %cst_225 : f32 to vector<8x1xf32>
    %505 = arith.divf %503, %504 : vector<8x1xf32>
    %506 = vector.broadcast %505 : vector<8x1xf32> to vector<8x32xf32>
    %507 = arith.subf %501, %506 : vector<8x32xf32>
    %508 = arith.mulf %507, %507 : vector<8x32xf32>
    %cst_226 = arith.constant dense<0.000000e+00> : vector<8xf32>
    %509 = vector.multi_reduction <add>, %508, %cst_226 [1] : vector<8x32xf32> to vector<8xf32>
    %510 = vector.shape_cast %509 : vector<8xf32> to vector<8x1xf32>
    %cst_227 = arith.constant 3.200000e+01 : f32
    %511 = vector.broadcast %cst_227 : f32 to vector<8x1xf32>
    %512 = arith.divf %510, %511 : vector<8x1xf32>
    %cst_228 = arith.constant 9.99999997E-7 : f32
    %513 = vector.broadcast %cst_228 : f32 to vector<8x1xf32>
    %514 = arith.addf %512, %513 : vector<8x1xf32>
    %515 = math.rsqrt %514 : vector<8x1xf32>
    %516 = vector.broadcast %515 : vector<8x1xf32> to vector<8x32xf32>
    %517 = arith.mulf %507, %516 : vector<8x32xf32>
    %c0_229 = arith.constant 0 : index
    %c0_230 = arith.constant 0 : index
    %c0_231 = arith.constant 0 : index
    %518 = vector.load %arg24[%c0_229, %c0_230, %c0_231] : memref<2x32x64xf32, #tpu.memory_space<vmem>>, vector<1x32x64xf32>
    %519 = vector.shape_cast %518 : vector<1x32x64xf32> to vector<32x64xf32>
    %c0_232 = arith.constant 0 : index
    %c0_233 = arith.constant 0 : index
    %c0_234 = arith.constant 0 : index
    %520 = vector.load %arg25[%c0_232, %c0_233, %c0_234] : memref<2x1x64xf32, #tpu.memory_space<vmem>>, vector<1x1x64xf32>
    %521 = vector.shape_cast %520 : vector<1x1x64xf32> to vector<1x64xf32>
    %c0_235 = arith.constant 0 : index
    %c0_236 = arith.constant 0 : index
    %c0_237 = arith.constant 0 : index
    %522 = vector.load %arg26[%c0_235, %c0_236, %c0_237] : memref<2x64x32xf32, #tpu.memory_space<vmem>>, vector<1x64x32xf32>
    %523 = vector.shape_cast %522 : vector<1x64x32xf32> to vector<64x32xf32>
    %c0_238 = arith.constant 0 : index
    %c0_239 = arith.constant 0 : index
    %c0_240 = arith.constant 0 : index
    %524 = vector.load %arg27[%c0_238, %c0_239, %c0_240] : memref<2x1x32xf32, #tpu.memory_space<vmem>>, vector<1x1x32xf32>
    %525 = vector.shape_cast %524 : vector<1x1x32xf32> to vector<1x32xf32>
    %cst_241 = arith.constant dense<0.000000e+00> : vector<8x64xf32>
    %526 = tpu.matmul %517, %519, %cst_241 {dimension_numbers = #tpu.dot_dimension_numbers<[1], [0], [0], [1], [0, 0, 1, 1], [], []>} : vector<8x32xf32>, vector<32x64xf32>, vector<8x64xf32> -> vector<8x64xf32>
    %527 = vector.broadcast %521 : vector<1x64xf32> to vector<8x64xf32>
    %528 = arith.addf %526, %527 : vector<8x64xf32>
    %cst_242 = arith.constant 0.000000e+00 : f32
    %529 = vector.broadcast %cst_242 : f32 to vector<8x64xf32>
    %530 = arith.maximumf %528, %529 : vector<8x64xf32>
    %cst_243 = arith.constant dense<0.000000e+00> : vector<8x32xf32>
    %531 = tpu.matmul %530, %523, %cst_243 {dimension_numbers = #tpu.dot_dimension_numbers<[1], [0], [0], [1], [0, 0, 1, 1], [], []>} : vector<8x64xf32>, vector<64x32xf32>, vector<8x32xf32> -> vector<8x32xf32>
    %532 = vector.broadcast %525 : vector<1x32xf32> to vector<8x32xf32>
    %533 = arith.addf %531, %532 : vector<8x32xf32>
    %534 = arith.addf %517, %533 : vector<8x32xf32>
    %535 = arith.addf %534, %517 : vector<8x32xf32>
    %cst_244 = arith.constant dense<0.000000e+00> : vector<8xf32>
    %536 = vector.multi_reduction <add>, %535, %cst_244 [1] : vector<8x32xf32> to vector<8xf32>
    %537 = vector.shape_cast %536 : vector<8xf32> to vector<8x1xf32>
    %cst_245 = arith.constant 3.200000e+01 : f32
    %538 = vector.broadcast %cst_245 : f32 to vector<8x1xf32>
    %539 = arith.divf %537, %538 : vector<8x1xf32>
    %540 = vector.broadcast %539 : vector<8x1xf32> to vector<8x32xf32>
    %541 = arith.subf %535, %540 : vector<8x32xf32>
    %542 = arith.mulf %541, %541 : vector<8x32xf32>
    %cst_246 = arith.constant dense<0.000000e+00> : vector<8xf32>
    %543 = vector.multi_reduction <add>, %542, %cst_246 [1] : vector<8x32xf32> to vector<8xf32>
    %544 = vector.shape_cast %543 : vector<8xf32> to vector<8x1xf32>
    %cst_247 = arith.constant 3.200000e+01 : f32
    %545 = vector.broadcast %cst_247 : f32 to vector<8x1xf32>
    %546 = arith.divf %544, %545 : vector<8x1xf32>
    %cst_248 = arith.constant 9.99999997E-7 : f32
    %547 = vector.broadcast %cst_248 : f32 to vector<8x1xf32>
    %548 = arith.addf %546, %547 : vector<8x1xf32>
    %549 = math.rsqrt %548 : vector<8x1xf32>
    %550 = vector.broadcast %549 : vector<8x1xf32> to vector<8x32xf32>
    %551 = arith.mulf %541, %550 : vector<8x32xf32>
    %c1_249 = arith.constant 1 : index
    %c0_250 = arith.constant 0 : index
    %c0_251 = arith.constant 0 : index
    %552 = vector.load %arg14[%c1_249, %c0_250, %c0_251] : memref<2x32x96xf32, #tpu.memory_space<vmem>>, vector<1x32x96xf32>
    %553 = vector.shape_cast %552 : vector<1x32x96xf32> to vector<32x96xf32>
    %c1_252 = arith.constant 1 : index
    %c0_253 = arith.constant 0 : index
    %c0_254 = arith.constant 0 : index
    %554 = vector.load %arg15[%c1_252, %c0_253, %c0_254] : memref<2x1x96xf32, #tpu.memory_space<vmem>>, vector<1x1x96xf32>
    %555 = vector.shape_cast %554 : vector<1x1x96xf32> to vector<1x96xf32>
    %c1_255 = arith.constant 1 : index
    %c0_256 = arith.constant 0 : index
    %c0_257 = arith.constant 0 : index
    %556 = vector.load %arg16[%c1_255, %c0_256, %c0_257] : memref<2x32x32xf32, #tpu.memory_space<vmem>>, vector<1x32x32xf32>
    %557 = vector.shape_cast %556 : vector<1x32x32xf32> to vector<32x32xf32>
    %c1_258 = arith.constant 1 : index
    %c0_259 = arith.constant 0 : index
    %c0_260 = arith.constant 0 : index
    %558 = vector.load %arg17[%c1_258, %c0_259, %c0_260] : memref<2x1x32xf32, #tpu.memory_space<vmem>>, vector<1x1x32xf32>
    %559 = vector.shape_cast %558 : vector<1x1x32xf32> to vector<1x32xf32>
    %cst_261 = arith.constant dense<0.000000e+00> : vector<8x96xf32>
    %560 = tpu.matmul %551, %553, %cst_261 {dimension_numbers = #tpu.dot_dimension_numbers<[1], [0], [0], [1], [0, 0, 1, 1], [], []>} : vector<8x32xf32>, vector<32x96xf32>, vector<8x96xf32> -> vector<8x96xf32>
    %561 = vector.broadcast %555 : vector<1x96xf32> to vector<8x96xf32>
    %562 = arith.addf %560, %561 : vector<8x96xf32>
    %563 = vector.extract_strided_slice %562 {offsets = [0, 0], sizes = [8, 32], strides = [1, 1]} : vector<8x96xf32> to vector<8x32xf32>
    %564 = vector.extract_strided_slice %562 {offsets = [0, 32], sizes = [8, 32], strides = [1, 1]} : vector<8x96xf32> to vector<8x32xf32>
    %565 = vector.extract_strided_slice %562 {offsets = [0, 64], sizes = [8, 32], strides = [1, 1]} : vector<8x96xf32> to vector<8x32xf32>
    %c0_i32_262 = arith.constant 0 : i32
    %566 = vector.broadcast %c0_i32_262 : i32 to vector<8x8xi32>
    %567 = arith.cmpi eq, %1, %566 : vector<8x8xi32>
    %568 = vector.extract_strided_slice %563 {offsets = [0, 0], sizes = [8, 8], strides = [1, 1]} : vector<8x32xf32> to vector<8x8xf32>
    %569 = vector.extract_strided_slice %564 {offsets = [0, 0], sizes = [8, 8], strides = [1, 1]} : vector<8x32xf32> to vector<8x8xf32>
    %570 = vector.extract_strided_slice %565 {offsets = [0, 0], sizes = [8, 8], strides = [1, 1]} : vector<8x32xf32> to vector<8x8xf32>
    %cst_263 = arith.constant dense<0.000000e+00> : vector<8x8xf32>
    %571 = tpu.matmul %568, %569, %cst_263 {dimension_numbers = #tpu.dot_dimension_numbers<[1], [1], [0], [0], [0, 0, 1, 0], [], []>} : vector<8x8xf32>, vector<8x8xf32>, vector<8x8xf32> -> vector<8x8xf32>
    %cst_264 = arith.constant 0.353553385 : f32
    %572 = vector.broadcast %cst_264 : f32 to vector<8x8xf32>
    %573 = arith.mulf %571, %572 : vector<8x8xf32>
    %cst_265 = arith.constant 9.99999971E-10 : f32
    %574 = vector.broadcast %cst_265 : f32 to vector<8x8xf32>
    %575 = arith.select %567, %574, %573 : vector<8x8xi1>, vector<8x8xf32>
    %cst_266 = arith.constant dense<0xFF800000> : vector<8xf32>
    %576 = vector.multi_reduction <maximumf>, %575, %cst_266 [1] : vector<8x8xf32> to vector<8xf32>
    %577 = vector.shape_cast %576 : vector<8xf32> to vector<8x1xf32>
    %578 = vector.broadcast %577 : vector<8x1xf32> to vector<8x8xf32>
    %579 = arith.subf %575, %578 : vector<8x8xf32>
    %580 = math.exp %579 : vector<8x8xf32>
    %cst_267 = arith.constant dense<0.000000e+00> : vector<8xf32>
    %581 = vector.multi_reduction <add>, %580, %cst_267 [1] : vector<8x8xf32> to vector<8xf32>
    %582 = vector.shape_cast %581 : vector<8xf32> to vector<8x1xf32>
    %583 = vector.broadcast %582 : vector<8x1xf32> to vector<8x8xf32>
    %584 = arith.divf %580, %583 : vector<8x8xf32>
    %cst_268 = arith.constant dense<0.000000e+00> : vector<8x8xf32>
    %585 = tpu.matmul %584, %570, %cst_268 {dimension_numbers = #tpu.dot_dimension_numbers<[1], [0], [0], [1], [0, 0, 1, 1], [], []>} : vector<8x8xf32>, vector<8x8xf32>, vector<8x8xf32> -> vector<8x8xf32>
    %586 = vector.extract_strided_slice %563 {offsets = [0, 8], sizes = [8, 8], strides = [1, 1]} : vector<8x32xf32> to vector<8x8xf32>
    %587 = vector.extract_strided_slice %564 {offsets = [0, 8], sizes = [8, 8], strides = [1, 1]} : vector<8x32xf32> to vector<8x8xf32>
    %588 = vector.extract_strided_slice %565 {offsets = [0, 8], sizes = [8, 8], strides = [1, 1]} : vector<8x32xf32> to vector<8x8xf32>
    %cst_269 = arith.constant dense<0.000000e+00> : vector<8x8xf32>
    %589 = tpu.matmul %586, %587, %cst_269 {dimension_numbers = #tpu.dot_dimension_numbers<[1], [1], [0], [0], [0, 0, 1, 0], [], []>} : vector<8x8xf32>, vector<8x8xf32>, vector<8x8xf32> -> vector<8x8xf32>
    %cst_270 = arith.constant 0.353553385 : f32
    %590 = vector.broadcast %cst_270 : f32 to vector<8x8xf32>
    %591 = arith.mulf %589, %590 : vector<8x8xf32>
    %cst_271 = arith.constant 9.99999971E-10 : f32
    %592 = vector.broadcast %cst_271 : f32 to vector<8x8xf32>
    %593 = arith.select %567, %592, %591 : vector<8x8xi1>, vector<8x8xf32>
    %cst_272 = arith.constant dense<0xFF800000> : vector<8xf32>
    %594 = vector.multi_reduction <maximumf>, %593, %cst_272 [1] : vector<8x8xf32> to vector<8xf32>
    %595 = vector.shape_cast %594 : vector<8xf32> to vector<8x1xf32>
    %596 = vector.broadcast %595 : vector<8x1xf32> to vector<8x8xf32>
    %597 = arith.subf %593, %596 : vector<8x8xf32>
    %598 = math.exp %597 : vector<8x8xf32>
    %cst_273 = arith.constant dense<0.000000e+00> : vector<8xf32>
    %599 = vector.multi_reduction <add>, %598, %cst_273 [1] : vector<8x8xf32> to vector<8xf32>
    %600 = vector.shape_cast %599 : vector<8xf32> to vector<8x1xf32>
    %601 = vector.broadcast %600 : vector<8x1xf32> to vector<8x8xf32>
    %602 = arith.divf %598, %601 : vector<8x8xf32>
    %cst_274 = arith.constant dense<0.000000e+00> : vector<8x8xf32>
    %603 = tpu.matmul %602, %588, %cst_274 {dimension_numbers = #tpu.dot_dimension_numbers<[1], [0], [0], [1], [0, 0, 1, 1], [], []>} : vector<8x8xf32>, vector<8x8xf32>, vector<8x8xf32> -> vector<8x8xf32>
    %604 = vector.extract_strided_slice %563 {offsets = [0, 16], sizes = [8, 8], strides = [1, 1]} : vector<8x32xf32> to vector<8x8xf32>
    %605 = vector.extract_strided_slice %564 {offsets = [0, 16], sizes = [8, 8], strides = [1, 1]} : vector<8x32xf32> to vector<8x8xf32>
    %606 = vector.extract_strided_slice %565 {offsets = [0, 16], sizes = [8, 8], strides = [1, 1]} : vector<8x32xf32> to vector<8x8xf32>
    %cst_275 = arith.constant dense<0.000000e+00> : vector<8x8xf32>
    %607 = tpu.matmul %604, %605, %cst_275 {dimension_numbers = #tpu.dot_dimension_numbers<[1], [1], [0], [0], [0, 0, 1, 0], [], []>} : vector<8x8xf32>, vector<8x8xf32>, vector<8x8xf32> -> vector<8x8xf32>
    %cst_276 = arith.constant 0.353553385 : f32
    %608 = vector.broadcast %cst_276 : f32 to vector<8x8xf32>
    %609 = arith.mulf %607, %608 : vector<8x8xf32>
    %cst_277 = arith.constant 9.99999971E-10 : f32
    %610 = vector.broadcast %cst_277 : f32 to vector<8x8xf32>
    %611 = arith.select %567, %610, %609 : vector<8x8xi1>, vector<8x8xf32>
    %cst_278 = arith.constant dense<0xFF800000> : vector<8xf32>
    %612 = vector.multi_reduction <maximumf>, %611, %cst_278 [1] : vector<8x8xf32> to vector<8xf32>
    %613 = vector.shape_cast %612 : vector<8xf32> to vector<8x1xf32>
    %614 = vector.broadcast %613 : vector<8x1xf32> to vector<8x8xf32>
    %615 = arith.subf %611, %614 : vector<8x8xf32>
    %616 = math.exp %615 : vector<8x8xf32>
    %cst_279 = arith.constant dense<0.000000e+00> : vector<8xf32>
    %617 = vector.multi_reduction <add>, %616, %cst_279 [1] : vector<8x8xf32> to vector<8xf32>
    %618 = vector.shape_cast %617 : vector<8xf32> to vector<8x1xf32>
    %619 = vector.broadcast %618 : vector<8x1xf32> to vector<8x8xf32>
    %620 = arith.divf %616, %619 : vector<8x8xf32>
    %cst_280 = arith.constant dense<0.000000e+00> : vector<8x8xf32>
    %621 = tpu.matmul %620, %606, %cst_280 {dimension_numbers = #tpu.dot_dimension_numbers<[1], [0], [0], [1], [0, 0, 1, 1], [], []>} : vector<8x8xf32>, vector<8x8xf32>, vector<8x8xf32> -> vector<8x8xf32>
    %622 = vector.extract_strided_slice %563 {offsets = [0, 24], sizes = [8, 8], strides = [1, 1]} : vector<8x32xf32> to vector<8x8xf32>
    %623 = vector.extract_strided_slice %564 {offsets = [0, 24], sizes = [8, 8], strides = [1, 1]} : vector<8x32xf32> to vector<8x8xf32>
    %624 = vector.extract_strided_slice %565 {offsets = [0, 24], sizes = [8, 8], strides = [1, 1]} : vector<8x32xf32> to vector<8x8xf32>
    %cst_281 = arith.constant dense<0.000000e+00> : vector<8x8xf32>
    %625 = tpu.matmul %622, %623, %cst_281 {dimension_numbers = #tpu.dot_dimension_numbers<[1], [1], [0], [0], [0, 0, 1, 0], [], []>} : vector<8x8xf32>, vector<8x8xf32>, vector<8x8xf32> -> vector<8x8xf32>
    %cst_282 = arith.constant 0.353553385 : f32
    %626 = vector.broadcast %cst_282 : f32 to vector<8x8xf32>
    %627 = arith.mulf %625, %626 : vector<8x8xf32>
    %cst_283 = arith.constant 9.99999971E-10 : f32
    %628 = vector.broadcast %cst_283 : f32 to vector<8x8xf32>
    %629 = arith.select %567, %628, %627 : vector<8x8xi1>, vector<8x8xf32>
    %cst_284 = arith.constant dense<0xFF800000> : vector<8xf32>
    %630 = vector.multi_reduction <maximumf>, %629, %cst_284 [1] : vector<8x8xf32> to vector<8xf32>
    %631 = vector.shape_cast %630 : vector<8xf32> to vector<8x1xf32>
    %632 = vector.broadcast %631 : vector<8x1xf32> to vector<8x8xf32>
    %633 = arith.subf %629, %632 : vector<8x8xf32>
    %634 = math.exp %633 : vector<8x8xf32>
    %cst_285 = arith.constant dense<0.000000e+00> : vector<8xf32>
    %635 = vector.multi_reduction <add>, %634, %cst_285 [1] : vector<8x8xf32> to vector<8xf32>
    %636 = vector.shape_cast %635 : vector<8xf32> to vector<8x1xf32>
    %637 = vector.broadcast %636 : vector<8x1xf32> to vector<8x8xf32>
    %638 = arith.divf %634, %637 : vector<8x8xf32>
    %cst_286 = arith.constant dense<0.000000e+00> : vector<8x8xf32>
    %639 = tpu.matmul %638, %624, %cst_286 {dimension_numbers = #tpu.dot_dimension_numbers<[1], [0], [0], [1], [0, 0, 1, 1], [], []>} : vector<8x8xf32>, vector<8x8xf32>, vector<8x8xf32> -> vector<8x8xf32>
    %640 = tpu.concatenate %585, %603, %621, %639 in 1 : vector<8x8xf32>, vector<8x8xf32>, vector<8x8xf32>, vector<8x8xf32> -> vector<8x32xf32>
    %cst_287 = arith.constant dense<0.000000e+00> : vector<8x32xf32>
    %641 = tpu.matmul %640, %557, %cst_287 {dimension_numbers = #tpu.dot_dimension_numbers<[1], [0], [0], [1], [0, 0, 1, 1], [], []>} : vector<8x32xf32>, vector<32x32xf32>, vector<8x32xf32> -> vector<8x32xf32>
    %642 = vector.broadcast %559 : vector<1x32xf32> to vector<8x32xf32>
    %643 = arith.addf %641, %642 : vector<8x32xf32>
    %644 = arith.addf %643, %551 : vector<8x32xf32>
    %cst_288 = arith.constant dense<0.000000e+00> : vector<8xf32>
    %645 = vector.multi_reduction <add>, %644, %cst_288 [1] : vector<8x32xf32> to vector<8xf32>
    %646 = vector.shape_cast %645 : vector<8xf32> to vector<8x1xf32>
    %cst_289 = arith.constant 3.200000e+01 : f32
    %647 = vector.broadcast %cst_289 : f32 to vector<8x1xf32>
    %648 = arith.divf %646, %647 : vector<8x1xf32>
    %649 = vector.broadcast %648 : vector<8x1xf32> to vector<8x32xf32>
    %650 = arith.subf %644, %649 : vector<8x32xf32>
    %651 = arith.mulf %650, %650 : vector<8x32xf32>
    %cst_290 = arith.constant dense<0.000000e+00> : vector<8xf32>
    %652 = vector.multi_reduction <add>, %651, %cst_290 [1] : vector<8x32xf32> to vector<8xf32>
    %653 = vector.shape_cast %652 : vector<8xf32> to vector<8x1xf32>
    %cst_291 = arith.constant 3.200000e+01 : f32
    %654 = vector.broadcast %cst_291 : f32 to vector<8x1xf32>
    %655 = arith.divf %653, %654 : vector<8x1xf32>
    %cst_292 = arith.constant 9.99999997E-7 : f32
    %656 = vector.broadcast %cst_292 : f32 to vector<8x1xf32>
    %657 = arith.addf %655, %656 : vector<8x1xf32>
    %658 = math.rsqrt %657 : vector<8x1xf32>
    %659 = vector.broadcast %658 : vector<8x1xf32> to vector<8x32xf32>
    %660 = arith.mulf %650, %659 : vector<8x32xf32>
    %c1_293 = arith.constant 1 : index
    %c0_294 = arith.constant 0 : index
    %c0_295 = arith.constant 0 : index
    %661 = vector.load %arg18[%c1_293, %c0_294, %c0_295] : memref<2x32x32xf32, #tpu.memory_space<vmem>>, vector<1x32x32xf32>
    %662 = vector.shape_cast %661 : vector<1x32x32xf32> to vector<32x32xf32>
    %c1_296 = arith.constant 1 : index
    %c0_297 = arith.constant 0 : index
    %c0_298 = arith.constant 0 : index
    %663 = vector.load %arg19[%c1_296, %c0_297, %c0_298] : memref<2x1x32xf32, #tpu.memory_space<vmem>>, vector<1x1x32xf32>
    %664 = vector.shape_cast %663 : vector<1x1x32xf32> to vector<1x32xf32>
    %c1_299 = arith.constant 1 : index
    %c0_300 = arith.constant 0 : index
    %c0_301 = arith.constant 0 : index
    %665 = vector.load %arg20[%c1_299, %c0_300, %c0_301] : memref<2x32x64xf32, #tpu.memory_space<vmem>>, vector<1x32x64xf32>
    %666 = vector.shape_cast %665 : vector<1x32x64xf32> to vector<32x64xf32>
    %c1_302 = arith.constant 1 : index
    %c0_303 = arith.constant 0 : index
    %c0_304 = arith.constant 0 : index
    %667 = vector.load %arg21[%c1_302, %c0_303, %c0_304] : memref<2x1x64xf32, #tpu.memory_space<vmem>>, vector<1x1x64xf32>
    %668 = vector.shape_cast %667 : vector<1x1x64xf32> to vector<1x64xf32>
    %c1_305 = arith.constant 1 : index
    %c0_306 = arith.constant 0 : index
    %c0_307 = arith.constant 0 : index
    %669 = vector.load %arg22[%c1_305, %c0_306, %c0_307] : memref<2x32x32xf32, #tpu.memory_space<vmem>>, vector<1x32x32xf32>
    %670 = vector.shape_cast %669 : vector<1x32x32xf32> to vector<32x32xf32>
    %c1_308 = arith.constant 1 : index
    %c0_309 = arith.constant 0 : index
    %c0_310 = arith.constant 0 : index
    %671 = vector.load %arg23[%c1_308, %c0_309, %c0_310] : memref<2x1x32xf32, #tpu.memory_space<vmem>>, vector<1x1x32xf32>
    %672 = vector.shape_cast %671 : vector<1x1x32xf32> to vector<1x32xf32>
    %cst_311 = arith.constant dense<0.000000e+00> : vector<8x32xf32>
    %673 = tpu.matmul %660, %662, %cst_311 {dimension_numbers = #tpu.dot_dimension_numbers<[1], [0], [0], [1], [0, 0, 1, 1], [], []>} : vector<8x32xf32>, vector<32x32xf32>, vector<8x32xf32> -> vector<8x32xf32>
    %674 = vector.broadcast %664 : vector<1x32xf32> to vector<8x32xf32>
    %675 = arith.addf %673, %674 : vector<8x32xf32>
    %cst_312 = arith.constant dense<0.000000e+00> : vector<8x64xf32>
    %676 = tpu.matmul %291, %666, %cst_312 {dimension_numbers = #tpu.dot_dimension_numbers<[1], [0], [0], [1], [0, 0, 1, 1], [], []>} : vector<8x32xf32>, vector<32x64xf32>, vector<8x64xf32> -> vector<8x64xf32>
    %677 = vector.broadcast %668 : vector<1x64xf32> to vector<8x64xf32>
    %678 = arith.addf %676, %677 : vector<8x64xf32>
    %679 = vector.extract_strided_slice %678 {offsets = [0, 0], sizes = [8, 32], strides = [1, 1]} : vector<8x64xf32> to vector<8x32xf32>
    %680 = vector.extract_strided_slice %678 {offsets = [0, 32], sizes = [8, 32], strides = [1, 1]} : vector<8x64xf32> to vector<8x32xf32>
    %c0_i32_313 = arith.constant 0 : i32
    %681 = vector.broadcast %c0_i32_313 : i32 to vector<8x8xi32>
    %682 = arith.cmpi eq, %2, %681 : vector<8x8xi32>
    %683 = vector.extract_strided_slice %675 {offsets = [0, 0], sizes = [8, 8], strides = [1, 1]} : vector<8x32xf32> to vector<8x8xf32>
    %684 = vector.extract_strided_slice %679 {offsets = [0, 0], sizes = [8, 8], strides = [1, 1]} : vector<8x32xf32> to vector<8x8xf32>
    %685 = vector.extract_strided_slice %680 {offsets = [0, 0], sizes = [8, 8], strides = [1, 1]} : vector<8x32xf32> to vector<8x8xf32>
    %cst_314 = arith.constant dense<0.000000e+00> : vector<8x8xf32>
    %686 = tpu.matmul %683, %684, %cst_314 {dimension_numbers = #tpu.dot_dimension_numbers<[1], [1], [0], [0], [0, 0, 1, 0], [], []>} : vector<8x8xf32>, vector<8x8xf32>, vector<8x8xf32> -> vector<8x8xf32>
    %cst_315 = arith.constant 0.353553385 : f32
    %687 = vector.broadcast %cst_315 : f32 to vector<8x8xf32>
    %688 = arith.mulf %686, %687 : vector<8x8xf32>
    %cst_316 = arith.constant 9.99999971E-10 : f32
    %689 = vector.broadcast %cst_316 : f32 to vector<8x8xf32>
    %690 = arith.select %682, %689, %688 : vector<8x8xi1>, vector<8x8xf32>
    %cst_317 = arith.constant dense<0xFF800000> : vector<8xf32>
    %691 = vector.multi_reduction <maximumf>, %690, %cst_317 [1] : vector<8x8xf32> to vector<8xf32>
    %692 = vector.shape_cast %691 : vector<8xf32> to vector<8x1xf32>
    %693 = vector.broadcast %692 : vector<8x1xf32> to vector<8x8xf32>
    %694 = arith.subf %690, %693 : vector<8x8xf32>
    %695 = math.exp %694 : vector<8x8xf32>
    %cst_318 = arith.constant dense<0.000000e+00> : vector<8xf32>
    %696 = vector.multi_reduction <add>, %695, %cst_318 [1] : vector<8x8xf32> to vector<8xf32>
    %697 = vector.shape_cast %696 : vector<8xf32> to vector<8x1xf32>
    %698 = vector.broadcast %697 : vector<8x1xf32> to vector<8x8xf32>
    %699 = arith.divf %695, %698 : vector<8x8xf32>
    %cst_319 = arith.constant dense<0.000000e+00> : vector<8x8xf32>
    %700 = tpu.matmul %699, %685, %cst_319 {dimension_numbers = #tpu.dot_dimension_numbers<[1], [0], [0], [1], [0, 0, 1, 1], [], []>} : vector<8x8xf32>, vector<8x8xf32>, vector<8x8xf32> -> vector<8x8xf32>
    %701 = vector.extract_strided_slice %675 {offsets = [0, 8], sizes = [8, 8], strides = [1, 1]} : vector<8x32xf32> to vector<8x8xf32>
    %702 = vector.extract_strided_slice %679 {offsets = [0, 8], sizes = [8, 8], strides = [1, 1]} : vector<8x32xf32> to vector<8x8xf32>
    %703 = vector.extract_strided_slice %680 {offsets = [0, 8], sizes = [8, 8], strides = [1, 1]} : vector<8x32xf32> to vector<8x8xf32>
    %cst_320 = arith.constant dense<0.000000e+00> : vector<8x8xf32>
    %704 = tpu.matmul %701, %702, %cst_320 {dimension_numbers = #tpu.dot_dimension_numbers<[1], [1], [0], [0], [0, 0, 1, 0], [], []>} : vector<8x8xf32>, vector<8x8xf32>, vector<8x8xf32> -> vector<8x8xf32>
    %cst_321 = arith.constant 0.353553385 : f32
    %705 = vector.broadcast %cst_321 : f32 to vector<8x8xf32>
    %706 = arith.mulf %704, %705 : vector<8x8xf32>
    %cst_322 = arith.constant 9.99999971E-10 : f32
    %707 = vector.broadcast %cst_322 : f32 to vector<8x8xf32>
    %708 = arith.select %682, %707, %706 : vector<8x8xi1>, vector<8x8xf32>
    %cst_323 = arith.constant dense<0xFF800000> : vector<8xf32>
    %709 = vector.multi_reduction <maximumf>, %708, %cst_323 [1] : vector<8x8xf32> to vector<8xf32>
    %710 = vector.shape_cast %709 : vector<8xf32> to vector<8x1xf32>
    %711 = vector.broadcast %710 : vector<8x1xf32> to vector<8x8xf32>
    %712 = arith.subf %708, %711 : vector<8x8xf32>
    %713 = math.exp %712 : vector<8x8xf32>
    %cst_324 = arith.constant dense<0.000000e+00> : vector<8xf32>
    %714 = vector.multi_reduction <add>, %713, %cst_324 [1] : vector<8x8xf32> to vector<8xf32>
    %715 = vector.shape_cast %714 : vector<8xf32> to vector<8x1xf32>
    %716 = vector.broadcast %715 : vector<8x1xf32> to vector<8x8xf32>
    %717 = arith.divf %713, %716 : vector<8x8xf32>
    %cst_325 = arith.constant dense<0.000000e+00> : vector<8x8xf32>
    %718 = tpu.matmul %717, %703, %cst_325 {dimension_numbers = #tpu.dot_dimension_numbers<[1], [0], [0], [1], [0, 0, 1, 1], [], []>} : vector<8x8xf32>, vector<8x8xf32>, vector<8x8xf32> -> vector<8x8xf32>
    %719 = vector.extract_strided_slice %675 {offsets = [0, 16], sizes = [8, 8], strides = [1, 1]} : vector<8x32xf32> to vector<8x8xf32>
    %720 = vector.extract_strided_slice %679 {offsets = [0, 16], sizes = [8, 8], strides = [1, 1]} : vector<8x32xf32> to vector<8x8xf32>
    %721 = vector.extract_strided_slice %680 {offsets = [0, 16], sizes = [8, 8], strides = [1, 1]} : vector<8x32xf32> to vector<8x8xf32>
    %cst_326 = arith.constant dense<0.000000e+00> : vector<8x8xf32>
    %722 = tpu.matmul %719, %720, %cst_326 {dimension_numbers = #tpu.dot_dimension_numbers<[1], [1], [0], [0], [0, 0, 1, 0], [], []>} : vector<8x8xf32>, vector<8x8xf32>, vector<8x8xf32> -> vector<8x8xf32>
    %cst_327 = arith.constant 0.353553385 : f32
    %723 = vector.broadcast %cst_327 : f32 to vector<8x8xf32>
    %724 = arith.mulf %722, %723 : vector<8x8xf32>
    %cst_328 = arith.constant 9.99999971E-10 : f32
    %725 = vector.broadcast %cst_328 : f32 to vector<8x8xf32>
    %726 = arith.select %682, %725, %724 : vector<8x8xi1>, vector<8x8xf32>
    %cst_329 = arith.constant dense<0xFF800000> : vector<8xf32>
    %727 = vector.multi_reduction <maximumf>, %726, %cst_329 [1] : vector<8x8xf32> to vector<8xf32>
    %728 = vector.shape_cast %727 : vector<8xf32> to vector<8x1xf32>
    %729 = vector.broadcast %728 : vector<8x1xf32> to vector<8x8xf32>
    %730 = arith.subf %726, %729 : vector<8x8xf32>
    %731 = math.exp %730 : vector<8x8xf32>
    %cst_330 = arith.constant dense<0.000000e+00> : vector<8xf32>
    %732 = vector.multi_reduction <add>, %731, %cst_330 [1] : vector<8x8xf32> to vector<8xf32>
    %733 = vector.shape_cast %732 : vector<8xf32> to vector<8x1xf32>
    %734 = vector.broadcast %733 : vector<8x1xf32> to vector<8x8xf32>
    %735 = arith.divf %731, %734 : vector<8x8xf32>
    %cst_331 = arith.constant dense<0.000000e+00> : vector<8x8xf32>
    %736 = tpu.matmul %735, %721, %cst_331 {dimension_numbers = #tpu.dot_dimension_numbers<[1], [0], [0], [1], [0, 0, 1, 1], [], []>} : vector<8x8xf32>, vector<8x8xf32>, vector<8x8xf32> -> vector<8x8xf32>
    %737 = vector.extract_strided_slice %675 {offsets = [0, 24], sizes = [8, 8], strides = [1, 1]} : vector<8x32xf32> to vector<8x8xf32>
    %738 = vector.extract_strided_slice %679 {offsets = [0, 24], sizes = [8, 8], strides = [1, 1]} : vector<8x32xf32> to vector<8x8xf32>
    %739 = vector.extract_strided_slice %680 {offsets = [0, 24], sizes = [8, 8], strides = [1, 1]} : vector<8x32xf32> to vector<8x8xf32>
    %cst_332 = arith.constant dense<0.000000e+00> : vector<8x8xf32>
    %740 = tpu.matmul %737, %738, %cst_332 {dimension_numbers = #tpu.dot_dimension_numbers<[1], [1], [0], [0], [0, 0, 1, 0], [], []>} : vector<8x8xf32>, vector<8x8xf32>, vector<8x8xf32> -> vector<8x8xf32>
    %cst_333 = arith.constant 0.353553385 : f32
    %741 = vector.broadcast %cst_333 : f32 to vector<8x8xf32>
    %742 = arith.mulf %740, %741 : vector<8x8xf32>
    %cst_334 = arith.constant 9.99999971E-10 : f32
    %743 = vector.broadcast %cst_334 : f32 to vector<8x8xf32>
    %744 = arith.select %682, %743, %742 : vector<8x8xi1>, vector<8x8xf32>
    %cst_335 = arith.constant dense<0xFF800000> : vector<8xf32>
    %745 = vector.multi_reduction <maximumf>, %744, %cst_335 [1] : vector<8x8xf32> to vector<8xf32>
    %746 = vector.shape_cast %745 : vector<8xf32> to vector<8x1xf32>
    %747 = vector.broadcast %746 : vector<8x1xf32> to vector<8x8xf32>
    %748 = arith.subf %744, %747 : vector<8x8xf32>
    %749 = math.exp %748 : vector<8x8xf32>
    %cst_336 = arith.constant dense<0.000000e+00> : vector<8xf32>
    %750 = vector.multi_reduction <add>, %749, %cst_336 [1] : vector<8x8xf32> to vector<8xf32>
    %751 = vector.shape_cast %750 : vector<8xf32> to vector<8x1xf32>
    %752 = vector.broadcast %751 : vector<8x1xf32> to vector<8x8xf32>
    %753 = arith.divf %749, %752 : vector<8x8xf32>
    %cst_337 = arith.constant dense<0.000000e+00> : vector<8x8xf32>
    %754 = tpu.matmul %753, %739, %cst_337 {dimension_numbers = #tpu.dot_dimension_numbers<[1], [0], [0], [1], [0, 0, 1, 1], [], []>} : vector<8x8xf32>, vector<8x8xf32>, vector<8x8xf32> -> vector<8x8xf32>
    %755 = tpu.concatenate %700, %718, %736, %754 in 1 : vector<8x8xf32>, vector<8x8xf32>, vector<8x8xf32>, vector<8x8xf32> -> vector<8x32xf32>
    %cst_338 = arith.constant dense<0.000000e+00> : vector<8x32xf32>
    %756 = tpu.matmul %755, %670, %cst_338 {dimension_numbers = #tpu.dot_dimension_numbers<[1], [0], [0], [1], [0, 0, 1, 1], [], []>} : vector<8x32xf32>, vector<32x32xf32>, vector<8x32xf32> -> vector<8x32xf32>
    %757 = vector.broadcast %672 : vector<1x32xf32> to vector<8x32xf32>
    %758 = arith.addf %756, %757 : vector<8x32xf32>
    %759 = arith.addf %660, %758 : vector<8x32xf32>
    %760 = arith.addf %759, %660 : vector<8x32xf32>
    %cst_339 = arith.constant dense<0.000000e+00> : vector<8xf32>
    %761 = vector.multi_reduction <add>, %760, %cst_339 [1] : vector<8x32xf32> to vector<8xf32>
    %762 = vector.shape_cast %761 : vector<8xf32> to vector<8x1xf32>
    %cst_340 = arith.constant 3.200000e+01 : f32
    %763 = vector.broadcast %cst_340 : f32 to vector<8x1xf32>
    %764 = arith.divf %762, %763 : vector<8x1xf32>
    %765 = vector.broadcast %764 : vector<8x1xf32> to vector<8x32xf32>
    %766 = arith.subf %760, %765 : vector<8x32xf32>
    %767 = arith.mulf %766, %766 : vector<8x32xf32>
    %cst_341 = arith.constant dense<0.000000e+00> : vector<8xf32>
    %768 = vector.multi_reduction <add>, %767, %cst_341 [1] : vector<8x32xf32> to vector<8xf32>
    %769 = vector.shape_cast %768 : vector<8xf32> to vector<8x1xf32>
    %cst_342 = arith.constant 3.200000e+01 : f32
    %770 = vector.broadcast %cst_342 : f32 to vector<8x1xf32>
    %771 = arith.divf %769, %770 : vector<8x1xf32>
    %cst_343 = arith.constant 9.99999997E-7 : f32
    %772 = vector.broadcast %cst_343 : f32 to vector<8x1xf32>
    %773 = arith.addf %771, %772 : vector<8x1xf32>
    %774 = math.rsqrt %773 : vector<8x1xf32>
    %775 = vector.broadcast %774 : vector<8x1xf32> to vector<8x32xf32>
    %776 = arith.mulf %766, %775 : vector<8x32xf32>
    %c1_344 = arith.constant 1 : index
    %c0_345 = arith.constant 0 : index
    %c0_346 = arith.constant 0 : index
    %777 = vector.load %arg24[%c1_344, %c0_345, %c0_346] : memref<2x32x64xf32, #tpu.memory_space<vmem>>, vector<1x32x64xf32>
    %778 = vector.shape_cast %777 : vector<1x32x64xf32> to vector<32x64xf32>
    %c1_347 = arith.constant 1 : index
    %c0_348 = arith.constant 0 : index
    %c0_349 = arith.constant 0 : index
    %779 = vector.load %arg25[%c1_347, %c0_348, %c0_349] : memref<2x1x64xf32, #tpu.memory_space<vmem>>, vector<1x1x64xf32>
    %780 = vector.shape_cast %779 : vector<1x1x64xf32> to vector<1x64xf32>
    %c1_350 = arith.constant 1 : index
    %c0_351 = arith.constant 0 : index
    %c0_352 = arith.constant 0 : index
    %781 = vector.load %arg26[%c1_350, %c0_351, %c0_352] : memref<2x64x32xf32, #tpu.memory_space<vmem>>, vector<1x64x32xf32>
    %782 = vector.shape_cast %781 : vector<1x64x32xf32> to vector<64x32xf32>
    %c1_353 = arith.constant 1 : index
    %c0_354 = arith.constant 0 : index
    %c0_355 = arith.constant 0 : index
    %783 = vector.load %arg27[%c1_353, %c0_354, %c0_355] : memref<2x1x32xf32, #tpu.memory_space<vmem>>, vector<1x1x32xf32>
    %784 = vector.shape_cast %783 : vector<1x1x32xf32> to vector<1x32xf32>
    %cst_356 = arith.constant dense<0.000000e+00> : vector<8x64xf32>
    %785 = tpu.matmul %776, %778, %cst_356 {dimension_numbers = #tpu.dot_dimension_numbers<[1], [0], [0], [1], [0, 0, 1, 1], [], []>} : vector<8x32xf32>, vector<32x64xf32>, vector<8x64xf32> -> vector<8x64xf32>
    %786 = vector.broadcast %780 : vector<1x64xf32> to vector<8x64xf32>
    %787 = arith.addf %785, %786 : vector<8x64xf32>
    %cst_357 = arith.constant 0.000000e+00 : f32
    %788 = vector.broadcast %cst_357 : f32 to vector<8x64xf32>
    %789 = arith.maximumf %787, %788 : vector<8x64xf32>
    %cst_358 = arith.constant dense<0.000000e+00> : vector<8x32xf32>
    %790 = tpu.matmul %789, %782, %cst_358 {dimension_numbers = #tpu.dot_dimension_numbers<[1], [0], [0], [1], [0, 0, 1, 1], [], []>} : vector<8x64xf32>, vector<64x32xf32>, vector<8x32xf32> -> vector<8x32xf32>
    %791 = vector.broadcast %784 : vector<1x32xf32> to vector<8x32xf32>
    %792 = arith.addf %790, %791 : vector<8x32xf32>
    %793 = arith.addf %776, %792 : vector<8x32xf32>
    %794 = arith.addf %793, %776 : vector<8x32xf32>
    %cst_359 = arith.constant dense<0.000000e+00> : vector<8xf32>
    %795 = vector.multi_reduction <add>, %794, %cst_359 [1] : vector<8x32xf32> to vector<8xf32>
    %796 = vector.shape_cast %795 : vector<8xf32> to vector<8x1xf32>
    %cst_360 = arith.constant 3.200000e+01 : f32
    %797 = vector.broadcast %cst_360 : f32 to vector<8x1xf32>
    %798 = arith.divf %796, %797 : vector<8x1xf32>
    %799 = vector.broadcast %798 : vector<8x1xf32> to vector<8x32xf32>
    %800 = arith.subf %794, %799 : vector<8x32xf32>
    %801 = arith.mulf %800, %800 : vector<8x32xf32>
    %cst_361 = arith.constant dense<0.000000e+00> : vector<8xf32>
    %802 = vector.multi_reduction <add>, %801, %cst_361 [1] : vector<8x32xf32> to vector<8xf32>
    %803 = vector.shape_cast %802 : vector<8xf32> to vector<8x1xf32>
    %cst_362 = arith.constant 3.200000e+01 : f32
    %804 = vector.broadcast %cst_362 : f32 to vector<8x1xf32>
    %805 = arith.divf %803, %804 : vector<8x1xf32>
    %cst_363 = arith.constant 9.99999997E-7 : f32
    %806 = vector.broadcast %cst_363 : f32 to vector<8x1xf32>
    %807 = arith.addf %805, %806 : vector<8x1xf32>
    %808 = math.rsqrt %807 : vector<8x1xf32>
    %809 = vector.broadcast %808 : vector<8x1xf32> to vector<8x32xf32>
    %810 = arith.mulf %800, %809 : vector<8x32xf32>
    %c0_364 = arith.constant 0 : index
    %c0_365 = arith.constant 0 : index
    %811 = vector.load %arg28[%c0_364, %c0_365] : memref<32x32xf32, #tpu.memory_space<vmem>>, vector<32x32xf32>
    %cst_366 = arith.constant dense<0.000000e+00> : vector<8x32xf32>
    %812 = tpu.matmul %810, %811, %cst_366 {dimension_numbers = #tpu.dot_dimension_numbers<[1], [0], [0], [1], [0, 0, 1, 1], [], []>} : vector<8x32xf32>, vector<32x32xf32>, vector<8x32xf32> -> vector<8x32xf32>
    %c0_367 = arith.constant 0 : index
    %c0_368 = arith.constant 0 : index
    %813 = vector.load %arg29[%c0_367, %c0_368] : memref<1x32xf32, #tpu.memory_space<vmem>>, vector<1x32xf32>
    %814 = vector.broadcast %813 : vector<1x32xf32> to vector<8x32xf32>
    %815 = arith.addf %812, %814 : vector<8x32xf32>
    %c0_369 = arith.constant 0 : index
    %c0_370 = arith.constant 0 : index
    %816 = vector.load %arg30[%c0_369, %c0_370] : memref<8x32xf32, #tpu.memory_space<vmem>>, vector<8x32xf32>
    tpu.vector_store %arg30[%c0_369, %c0_370], %815 {strides = array<i32>} : memref<8x32xf32, #tpu.memory_space<vmem>>, vector<8x32xf32>,
    return
  }
  func.func @transform_0(%arg0: i32) -> (i32, i32) {
    %c0_i32 = arith.constant 0 : i32
    %c0_i32_0 = arith.constant 0 : i32
    return %arg0, %c0_i32 : i32, i32
  }
  func.func @transform_1(%arg0: i32) -> (i32, i32) {
    %c0_i32 = arith.constant 0 : i32
    %c0_i32_0 = arith.constant 0 : i32
    return %arg0, %c0_i32 : i32, i32
  }
  func.func @transform_2(%arg0: i32) -> (i32, i32) {
    %c0_i32 = arith.constant 0 : i32
    %c0_i32_0 = arith.constant 0 : i32
    return %arg0, %c0_i32 : i32, i32
  }
  func.func @transform_3(%arg0: i32) -> (i32, i32) {
    %c0_i32 = arith.constant 0 : i32
    %c0_i32_0 = arith.constant 0 : i32
    return %arg0, %c0_i32 : i32, i32
  }
  func.func @transform_4(%arg0: i32) -> (i32, i32) {
    %c0_i32 = arith.constant 0 : i32
    %c0_i32_0 = arith.constant 0 : i32
    return %arg0, %c0_i32 : i32, i32
  }
  func.func @transform_5(%arg0: i32) -> (i32, i32, i32) {
    %c0_i32 = arith.constant 0 : i32
    %c0_i32_0 = arith.constant 0 : i32
    %c0_i32_1 = arith.constant 0 : i32
    %c0_i32_2 = arith.constant 0 : i32
    return %c0_i32, %c0_i32_0, %c0_i32_1 : i32, i32, i32
  }
  func.func @transform_6(%arg0: i32) -> (i32, i32, i32) {
    %c0_i32 = arith.constant 0 : i32
    %c0_i32_0 = arith.constant 0 : i32
    %c0_i32_1 = arith.constant 0 : i32
    %c0_i32_2 = arith.constant 0 : i32
    return %c0_i32, %c0_i32_0, %c0_i32_1 : i32, i32, i32
  }
  func.func @transform_7(%arg0: i32) -> (i32, i32, i32) {
    %c0_i32 = arith.constant 0 : i32
    %c0_i32_0 = arith.constant 0 : i32
    %c0_i32_1 = arith.constant 0 : i32
    %c0_i32_2 = arith.constant 0 : i32
    return %c0_i32, %c0_i32_0, %c0_i32_1 : i32, i32, i32
  }
  func.func @transform_8(%arg0: i32) -> (i32, i32, i32) {
    %c0_i32 = arith.constant 0 : i32
    %c0_i32_0 = arith.constant 0 : i32
    %c0_i32_1 = arith.constant 0 : i32
    %c0_i32_2 = arith.constant 0 : i32
    return %c0_i32, %c0_i32_0, %c0_i32_1 : i32, i32, i32
  }
  func.func @transform_9(%arg0: i32) -> (i32, i32, i32) {
    %c0_i32 = arith.constant 0 : i32
    %c0_i32_0 = arith.constant 0 : i32
    %c0_i32_1 = arith.constant 0 : i32
    %c0_i32_2 = arith.constant 0 : i32
    return %c0_i32, %c0_i32_0, %c0_i32_1 : i32, i32, i32
  }
  func.func @transform_10(%arg0: i32) -> (i32, i32, i32) {
    %c0_i32 = arith.constant 0 : i32
    %c0_i32_0 = arith.constant 0 : i32
    %c0_i32_1 = arith.constant 0 : i32
    %c0_i32_2 = arith.constant 0 : i32
    return %c0_i32, %c0_i32_0, %c0_i32_1 : i32, i32, i32
  }
  func.func @transform_11(%arg0: i32) -> (i32, i32, i32) {
    %c0_i32 = arith.constant 0 : i32
    %c0_i32_0 = arith.constant 0 : i32
    %c0_i32_1 = arith.constant 0 : i32
    %c0_i32_2 = arith.constant 0 : i32
    return %c0_i32, %c0_i32_0, %c0_i32_1 : i32, i32, i32
  }
  func.func @transform_12(%arg0: i32) -> (i32, i32, i32) {
    %c0_i32 = arith.constant 0 : i32
    %c0_i32_0 = arith.constant 0 : i32
    %c0_i32_1 = arith.constant 0 : i32
    %c0_i32_2 = arith.constant 0 : i32
    return %c0_i32, %c0_i32_0, %c0_i32_1 : i32, i32, i32
  }
  func.func @transform_13(%arg0: i32) -> (i32, i32, i32) {
    %c0_i32 = arith.constant 0 : i32
    %c0_i32_0 = arith.constant 0 : i32
    %c0_i32_1 = arith.constant 0 : i32
    %c0_i32_2 = arith.constant 0 : i32
    return %c0_i32, %c0_i32_0, %c0_i32_1 : i32, i32, i32
  }
  func.func @transform_14(%arg0: i32) -> (i32, i32, i32) {
    %c0_i32 = arith.constant 0 : i32
    %c0_i32_0 = arith.constant 0 : i32
    %c0_i32_1 = arith.constant 0 : i32
    %c0_i32_2 = arith.constant 0 : i32
    return %c0_i32, %c0_i32_0, %c0_i32_1 : i32, i32, i32
  }
  func.func @transform_15(%arg0: i32) -> (i32, i32, i32) {
    %c0_i32 = arith.constant 0 : i32
    %c0_i32_0 = arith.constant 0 : i32
    %c0_i32_1 = arith.constant 0 : i32
    %c0_i32_2 = arith.constant 0 : i32
    return %c0_i32, %c0_i32_0, %c0_i32_1 : i32, i32, i32
  }
  func.func @transform_16(%arg0: i32) -> (i32, i32, i32) {
    %c0_i32 = arith.constant 0 : i32
    %c0_i32_0 = arith.constant 0 : i32
    %c0_i32_1 = arith.constant 0 : i32
    %c0_i32_2 = arith.constant 0 : i32
    return %c0_i32, %c0_i32_0, %c0_i32_1 : i32, i32, i32
  }
  func.func @transform_17(%arg0: i32) -> (i32, i32, i32) {
    %c0_i32 = arith.constant 0 : i32
    %c0_i32_0 = arith.constant 0 : i32
    %c0_i32_1 = arith.constant 0 : i32
    %c0_i32_2 = arith.constant 0 : i32
    return %c0_i32, %c0_i32_0, %c0_i32_1 : i32, i32, i32
  }
  func.func @transform_18(%arg0: i32) -> (i32, i32, i32) {
    %c0_i32 = arith.constant 0 : i32
    %c0_i32_0 = arith.constant 0 : i32
    %c0_i32_1 = arith.constant 0 : i32
    %c0_i32_2 = arith.constant 0 : i32
    return %c0_i32, %c0_i32_0, %c0_i32_1 : i32, i32, i32
  }
  func.func @transform_19(%arg0: i32) -> (i32, i32, i32) {
    %c0_i32 = arith.constant 0 : i32
    %c0_i32_0 = arith.constant 0 : i32
    %c0_i32_1 = arith.constant 0 : i32
    %c0_i32_2 = arith.constant 0 : i32
    return %c0_i32, %c0_i32_0, %c0_i32_1 : i32, i32, i32
  }
  func.func @transform_20(%arg0: i32) -> (i32, i32, i32) {
    %c0_i32 = arith.constant 0 : i32
    %c0_i32_0 = arith.constant 0 : i32
    %c0_i32_1 = arith.constant 0 : i32
    %c0_i32_2 = arith.constant 0 : i32
    return %c0_i32, %c0_i32_0, %c0_i32_1 : i32, i32, i32
  }
  func.func @transform_21(%arg0: i32) -> (i32, i32, i32) {
    %c0_i32 = arith.constant 0 : i32
    %c0_i32_0 = arith.constant 0 : i32
    %c0_i32_1 = arith.constant 0 : i32
    %c0_i32_2 = arith.constant 0 : i32
    return %c0_i32, %c0_i32_0, %c0_i32_1 : i32, i32, i32
  }
  func.func @transform_22(%arg0: i32) -> (i32, i32, i32) {
    %c0_i32 = arith.constant 0 : i32
    %c0_i32_0 = arith.constant 0 : i32
    %c0_i32_1 = arith.constant 0 : i32
    %c0_i32_2 = arith.constant 0 : i32
    return %c0_i32, %c0_i32_0, %c0_i32_1 : i32, i32, i32
  }
  func.func @transform_23(%arg0: i32) -> (i32, i32, i32) {
    %c0_i32 = arith.constant 0 : i32
    %c0_i32_0 = arith.constant 0 : i32
    %c0_i32_1 = arith.constant 0 : i32
    %c0_i32_2 = arith.constant 0 : i32
    return %c0_i32, %c0_i32_0, %c0_i32_1 : i32, i32, i32
  }
  func.func @transform_24(%arg0: i32) -> (i32, i32, i32) {
    %c0_i32 = arith.constant 0 : i32
    %c0_i32_0 = arith.constant 0 : i32
    %c0_i32_1 = arith.constant 0 : i32
    %c0_i32_2 = arith.constant 0 : i32
    return %c0_i32, %c0_i32_0, %c0_i32_1 : i32, i32, i32
  }
  func.func @transform_25(%arg0: i32) -> (i32, i32, i32) {
    %c0_i32 = arith.constant 0 : i32
    %c0_i32_0 = arith.constant 0 : i32
    %c0_i32_1 = arith.constant 0 : i32
    %c0_i32_2 = arith.constant 0 : i32
    return %c0_i32, %c0_i32_0, %c0_i32_1 : i32, i32, i32
  }
  func.func @transform_26(%arg0: i32) -> (i32, i32, i32) {
    %c0_i32 = arith.constant 0 : i32
    %c0_i32_0 = arith.constant 0 : i32
    %c0_i32_1 = arith.constant 0 : i32
    %c0_i32_2 = arith.constant 0 : i32
    return %c0_i32, %c0_i32_0, %c0_i32_1 : i32, i32, i32
  }
  func.func @transform_27(%arg0: i32) -> (i32, i32) {
    %c0_i32 = arith.constant 0 : i32
    %c0_i32_0 = arith.constant 0 : i32
    %c0_i32_1 = arith.constant 0 : i32
    return %c0_i32, %c0_i32_0 : i32, i32
  }
  func.func @transform_28(%arg0: i32) -> (i32, i32) {
    %c0_i32 = arith.constant 0 : i32
    %c0_i32_0 = arith.constant 0 : i32
    %c0_i32_1 = arith.constant 0 : i32
    return %c0_i32, %c0_i32_0 : i32, i32
  }
  func.func @transform_29(%arg0: i32) -> (i32, i32) {
    %c0_i32 = arith.constant 0 : i32
    %c0_i32_0 = arith.constant 0 : i32
    return %arg0, %c0_i32 : i32, i32
  }
}

</mosaic_0001>

<bundles_post_ra>
// kernel: transformer_fwd.1
= control target key start
LH: loop header
LB: loop body
LE: loop exit
PB: predicated region body
PF: predicated region fallthrough
CT: control target
= control target key end

     0   :  { %s8714_s6 = smov 1   ;;  %s8715_s10 = smov 2   ;;  %s9834_s0 = inlined_call_operand.smem [shape: u32[30], index: -1, kind: input, shape index: {}] }
   0x1   :  { %s8769_s5 = sld [smem:[%s9834_s0]]   ;;  %s8716_s14 = smov 3  }
   0x2   :  { %s8774_s9 = sld [smem:[%s9834_s0 + %s8714_s6]]   ;;  %s8717_s18 = smov 4  }
   0x3   :  { %s8779_s13 = sld [smem:[%s9834_s0 + %s8715_s10]]   ;;  %s8718_s22 = smov 5  }
   0x4   :  { %s8784_s17 = sld [smem:[%s9834_s0 + %s8716_s14]]   ;;  %s8719_s26 = smov 6  }
   0x5   :  { %s8789_s21 = sld [smem:[%s9834_s0 + %s8717_s18]]   ;;  %s8720_s30 = smov 7  }
   0x6   :  { %s8794_s25 = sld [smem:[%s9834_s0 + %s8718_s22]]   ;;  %s8721_s4 = smov 8  }
   0x7   :  { %9892 = sst [smem:[#allocation5_spill]] %s8769_s5  ;;  %s8722_s10 = smov 9  }
   0x8   :  { %9893 = sst [smem:[#allocation6_spill]] %s8774_s9  ;;  %s8723_s15 = smov 10  }
   0x9   :  { %9894 = sst [smem:[#allocation7_spill]] %s8779_s13  ;;  %s8724_s20 = smov 11  }
   0xa   :  { %9895 = sst [smem:[#allocation8_spill]] %s8784_s17  ;;  %s8726_s1 = smov 13  }
   0xb   :  { %9896 = sst [smem:[#allocation9_spill]] %s8789_s21  ;;  %s8727_s7 = smov 14  }
   0xc   :  { %9897 = sst [smem:[#allocation10_spill]] %s8794_s25  ;;  %s8729_s22 = smov 16  }
   0xd   :  { %s8799_s29 = sld [smem:[%s9834_s0 + %s8719_s26]]   ;;  %s8725_s26 = smov 12  }
   0xe   :  { %s8804_s3 = sld [smem:[%s9834_s0 + %s8720_s30]]   ;;  %s8730_s28 = smov 17  }
   0xf   :  { %s8809_s8 = sld [smem:[%s9834_s0 + %s8721_s4]]  }
  0x10   :  { %s8814_s14 = sld [smem:[%s9834_s0 + %s8722_s10]]  }
  0x11   :  { %s8819_s19 = sld [smem:[%s9834_s0 + %s8723_s15]]   ;;  %s8728_s15 = smov 15  }
  0x12   :  { %s8824_s24 = sld [smem:[%s9834_s0 + %s8724_s20]]  }
  0x13   :  { %9898 = sst [smem:[#allocation11_spill]] %s8799_s29 }
  0x14   :  { %9899 = sst [smem:[#allocation12_spill]] %s8804_s3 }
  0x15   :  { %9900 = sst [smem:[#allocation13_spill]] %s8809_s8 }
  0x16   :  { %9901 = sst [smem:[#allocation14_spill]] %s8814_s14 }
  0x17   :  { %9902 = sst [smem:[#allocation15_spill]] %s8819_s19 }
  0x18   :  { %9903 = sst [smem:[#allocation16_spill]] %s8824_s24 }
  0x19   :  { %s8829_s30 = sld [smem:[%s9834_s0 + %s8725_s26]]  }
  0x1a   :  { %s8834_s6 = sld [smem:[%s9834_s0 + %s8726_s1]]  }
  0x1b   :  { %s8839_s12 = sld [smem:[%s9834_s0 + %s8727_s7]]   ;;  %s8731_s7 = smov 18  }
  0x1c   :  { %s8844_s20 = sld [smem:[%s9834_s0 + %s8728_s15]]   ;;  %s8732_s15 = smov 19  }
  0x1d   :  { %s8849_s27 = sld [smem:[%s9834_s0 + %s8729_s22]]   ;;  %s8733_s22 = smov 20  }
  0x1e   :  { %s8854_s4 = sld [smem:[%s9834_s0 + %s8730_s28]]   ;;  %s8734_s28 = smov 21  }
  0x1f   :  { %9904 = sst [smem:[#allocation17_spill]] %s8829_s30 }
  0x20   :  { %s8859_s21 = sld [smem:[%s9834_s0 + %s8731_s7]]   ;;  %s8735_s7 = smov 22  }
  0x22   :  { %9905 = sst [smem:[#allocation18_spill]] %s8844_s20 }
  0x23   :  { %9906 = sst [smem:[#allocation19_spill]] %s8849_s27 }
  0x24   :  { %9907 = sst [smem:[#allocation20_spill]] %s8854_s4 }
  0x25   :  { %s8864_s20 = sld [smem:[%s9834_s0 + %s8732_s15]]   ;;  %s8736_s15 = smov 23  }
  0x26   :  { %9908 = sst [smem:[#allocation21_spill]] %s8859_s21 }
  0x27   :  { %s8869_s27 = sld [smem:[%s9834_s0 + %s8733_s22]]   ;;  %s8737_s22 = smov 24  }
  0x28   :  { %s8874_s4 = sld [smem:[%s9834_s0 + %s8734_s28]]   ;;  %s8738_s28 = smov 25  }
  0x29   :  { %s8879_s21 = sld [smem:[%s9834_s0 + %s8735_s7]]   ;;  %s8739_s7 = smov 26  }
  0x2b   :  { %9909 = sst [smem:[#allocation22_spill]] %s8864_s20 }
  0x2c   :  { %s8884_s20 = sld [smem:[%s9834_s0 + %s8736_s15]]   ;;  %s8740_s15 = smov 27  }
  0x2d   :  { %9910 = sst [smem:[#allocation23_spill]] %s8869_s27 }
  0x2e   :  { %9911 = sst [smem:[#allocation24_spill]] %s8874_s4 }
  0x2f   :  { %9912 = sst [smem:[#allocation25_spill]] %s8879_s21 }
  0x30   :  { %s8889_s27 = sld [smem:[%s9834_s0 + %s8737_s22]]   ;;  %s8741_s22 = smov 28  }
  0x31   :  { %s8894_s4 = sld [smem:[%s9834_s0 + %s8738_s28]]   ;;  %s8742_s28 = smov 29  }
  0x32   :  { %9913 = sst [smem:[#allocation26_spill]] %s8884_s20 }
  0x33   :  { %s8899_s21 = sld [smem:[%s9834_s0 + %s8739_s7]]  }
  0x34   :  { %s8904_s20 = sld [smem:[%s9834_s0 + %s8740_s15]]  }
  0x36   :  { %9914 = sst [smem:[#allocation27_spill]] %s8889_s27 }
  0x37   :  { %9915 = sst [smem:[#allocation28_spill]] %s8894_s4 }
  0x38   :  { %s8909_s27 = sld [smem:[%s9834_s0 + %s8741_s22]]  }
  0x39   :  { %s8914_s4 = sld [smem:[%s9834_s0 + %s8742_s28]]  }
  0x3e   :  { %9916 = sst [smem:[#allocation29_spill]] %s8909_s27 }
  0x3f   :  { %9917 = sst [smem:[#allocation30_spill]] %s8914_s4 }
  0x40   :  { %64 = vsyncpa [#allocation3], 0 }
  0x41   :  { %66 = vsyncpa [#allocation3 + $0x1], 0  ;;  %s8916_s7 = smov 0   ;;  %s8918_s10 = smov 0  }
  0x42   :  { %s8920_s11 = smov 0   ;;  %s8922_s15 = smov 0  }
  0x43 LB: > { %s9918_s30 = sld [smem:[#allocation17_spill]]  ;;  %s9919_s24 = sld [smem:[#allocation16_spill]]  ;;  %s8712_s15 = sphi %s8922_s15, %s9976_s15   ;;  %s8708_s11 = sphi %s8920_s11, %s9978_s11   ;;  %s8704_s10 = sphi %s8918_s10, %s9980_s10   ;;  %s8700_s7 = sphi %s8916_s7, %s9979_s7  }
  0x44   : > { %s9920_s19 = sld [smem:[#allocation15_spill]]  ;;  %s9921_s14 = sld [smem:[#allocation14_spill]] }
  0x45   : > { %s9922_s8 = sld [smem:[#allocation13_spill]]  ;;  %s9923_s3 = sld [smem:[#allocation12_spill]] }
  0x46   : > { %s9924_s29 = sld [smem:[#allocation11_spill]]  ;;  %s9925_s25 = sld [smem:[#allocation10_spill]] }
  0x47   : > { %9926 = sst [smem:[#allocation31_spill]] %s8700_s7  ;;  %s8937_s0 = sadd.s32 4294967295, %s8712_s15  }
  0x48   : > { %9927 = sst [smem:[#allocation32_spill]] %s8708_s11  ;;  %s7340_s16 = sadd.s32 4294967294, %s8712_s15  }
  0x49   : > { %9928 = sst [smem:[#allocation33_spill]] %s8712_s15  ;;  %s8941_s18 = sadd.s32 1, %s8712_s15  }
  0x4a   : > { %9929 = sst [smem:[#allocation34_spill]] %s8937_s0  ;;  %s713_s22 = sadd.s32 1, %s8708_s11 }
  0x4b   : > { %9930 = sst [smem:[#allocation35_spill]] %s8941_s18  ;;  %s710_s23 = ssub.s32 %s8712_s15, %s8941_s18 }
  0x4c   : > { %p723_p0 = scmp.ne.s32.totalorder %s8708_s11, %s8704_s10  ;;  %p711_p1 = scmp.eq.s32.totalorder %s710_s23, 0 }
  0x4d   : > { %p724_p2 = scmp.eq.s32.totalorder %s8937_s0, 1  ;;  %p729_p3 = scmp.ne.s32.totalorder %s8704_s10, %s8700_s7 }
  0x4e   : > { %p730_p4 = scmp.eq.s32.totalorder %s7340_s16, 1  ;;  %p7343_p7 = scmp.ge.s32.totalorder %s8712_s15, 1 }
  0x4f   : > { %s8952_s26 = scalar_select %p711_p1, %s8708_s11, %s713_s22  }
  0x50   : > { %p8954_p5 = por %p724_p2, %p723_p0  ;;  %p8958_p6 = por %p730_p4, %p729_p3 }
  0x51   : > { %9931 = sst [smem:[#allocation36_spill]] %s8952_s26  ;;  %p855_p8 = scmp.lt.s32.totalorder %s8712_s15, 3 }
  0x52   : > { %s9932_s28 = scalar_select %p8954_p5, 1, 0 }
  0x53   : > { %s9934_s1 = scalar_select %p8958_p6, 1, 0 }
  0x54   : > { %9933 = sst [smem:[#allocation37_spill]] %s9932_s28  ;;  %p856_p9 = pnand %p7343_p7, %p855_p8 }
  0x55   : > { %9935 = sst [smem:[#allocation38_spill]] %s9934_s1  ;;  %v970_v0 = vld [vmem:[%s9925_s25] sm:$0xff] (!%p856_p9)  ;;  %v971_v1 = vld [vmem:[%s9925_s25 + $0x8] sm:$0xff] (!%p856_p9)  ;;  %v972_v2 = vld [vmem:[%s9925_s25 + $0x10] sm:$0xff] (!%p856_p9)  ;;  %s9936_s5 = sld [smem:[#allocation5_spill]] (!%p856_p9)  ;;  %v8743_v3 = vmov (!%p856_p9), 0.0|0.0  }
  0x56   : > { %859 = sbr.rel (%p856_p9) target bundleno = 13575 (0x3507), region = 136  ;;  %8287 = vmatprep.subr.bf16.mxu0 (!%p856_p9), %v8743_v3  ;;  %v8288_v4 = vpack.c.bf16 (!%p856_p9), %v971_v1, %v970_v0  ;;  %v973_v5 = vld [vmem:[%s9925_s25 + $0x18] sm:$0xff] (!%p856_p9)  ;;  %vm8744_vm0 = vmmov (!%p856_p9), 0   ;;  %v8745_v6 = vmov (!%p856_p9), 0.0   ;;  %p946_p10 = scmp.lt.s32.totalorder (!%p856_p9), %s8937_s0, 1  ;;  %vm986_vm1 = vcmask (!%p856_p9), 261120  }
  0x57   : > { %7770 = vmatprep.mubr.msk.f32.mxu0 (!%p856_p9), %vm8744_vm0, %v8745_v6  ;;  %7773 = vmatprep.subr.mxu1 (!%p856_p9), %v8745_v6  ;;  %v8291_v7 = vpack.c.bf16 (!%p856_p9), %v973_v5, %v972_v2  ;;  %v7350_v9 = vld [vmem:[%s9924_s29] ss:$0 sm:$0xff] (!%p856_p9)  ;;  %s9846_s23 = smov (!%p856_p9), 64   ;;  %s9848_s26 = smov (!%p856_p9), 80   ;;  %vm1064_vm2 = vcmask (!%p856_p9), 64512   ;;  %vm1742_vm4 = vcmask (!%p856_p9), 130048  }
  0x58   : > { %7775 = vmatprep.mubr.msk.f32.mxu1 (!%p856_p9), %vm8744_vm0, %v8745_v6  ;;  %8289 = vmatpush3.bf16.msra.mxu0 (!%p856_p9), %v8288_v4  ;;  %s9937_s13 = sld [smem:[#allocation7_spill]] (!%p856_p9)  ;;  %vm1744_vm5 = vcmask (!%p856_p9), 195584   ;;  %vm1941_vm6 = vcmask (!%p856_p9), 523264   ;;  %s9946_s11 = smov (!%p856_p9), 40  }
  0x59   : > { %8290 = vmatprep.subr.bf16.mxu0 (!%p856_p9), %v8743_v3  ;;  %s9947_s18 = smov (!%p856_p9), 8   ;;  %s9948_s1 = smov (!%p856_p9), 16  }
  0x5a   : > { %s9949_s7 = smov (!%p856_p9), 24   ;;  %s9950_s9 = sld [smem:[#allocation6_spill]] (!%p856_p9) }
  0x5b   : > { %s9953_s17 = sld [smem:[#allocation8_spill]] (!%p856_p9)  ;;  %s9960_s15 = sld [smem:[#allocation9_spill]] (!%p856_p9) }
  0x5c   : > { %8292 = vmatpush3.bf16.msra.mxu0 (!%p856_p9), %v8291_v7 }
  0x5d   : > { %s947_s2 = scalar_select %p946_p10, %s8937_s0, 1  ;;  %7793 = vmatprep.subr.mxu0 %v8745_v6 }
  0x5e   : > { %s9966_s0 = sld [smem:[#allocation28_spill]] }
  0x5f   : > { %s8977_s16 = sshll.u32 %s947_s2, 3  ;;  %s9871_s2 = smov 96  }
  0x60   : > { %s949_s22 = scalar_lea.vmem %s9936_s5, %s8977_s16  ;;  %s9850_s5 = smov 120  }
  0x61   : > { %v8981_v8 = vld [vmem:[%s949_s22] sm:$0xff]  ;;  %s9873_s22 = smov 88   ;;  %s965_s28 = scalar_lea.vmem %s9960_s15, %s8977_s16 }
  0x62   : > { %7771 = vmatmul.mubr.msk.f32.vlgmr.msra.gmra.mrb[0].mxu0 %vm986_vm1, %v8981_v8  ;;  %s9961_s15 = sld [smem:[#allocation24_spill]] }
  0x63   : > { %7795 = vmatprep.mubr.msk.f32.mxu0 %vm8744_vm0, %v8745_v6 }
 0x135   : > { %v1056_v10 = vpop.f32.mrb[0].mxu0 }
 0x136   : > { %v8989_v11 = vadd.f32 %v7350_v9, %v1056_v10  ;;  %v7772_v12 = vpop.f32.mrb[1].mxu0 }
 0x138   : > { %1152 = vrot.lane.b32.xlu1 %v8989_v11, %s9846_s23  ;;  %1062 = vrot.lane.b32.xlu0 %v8989_v11, %s9871_s2  ;;  %s957_s23 = scalar_lea.vmem %s9937_s13, %s8977_s16  ;;  %s9941_s13 = smov 80  }
 0x139   : > { %v9012_v18 = vld [vmem:[%s957_s23] sm:$0xff]  ;;  %s9856_s23 = smov 112  }
 0x13a   : > { %vm1060_vm3 = vcmp.eq.s32.totalorder %v9012_v18, 0 }
 0x13c   : > { %1230 = vrot.lane.b32.xlu1 %v8989_v11, %s9873_s22 }
 0x140   : > { %1228 = vrot.lane.b32.xlu1 %v8989_v11, %s9850_s5  ;;  %s9854_s5 = smov 104  }
 0x144   : > { %1397 = vrot.lane.b32.xlu1 %v8989_v11, %s9848_s26  ;;  %s9852_s26 = smov 72  }
 0x1aa   : > { %v1153_v13 = vpop.permute.xlu1 %1152  ;;  %v1063_v14 = vpop.permute.xlu0 %1062 }
 0x1ab   : > { %7774 = vmatpush3.xpose.msk.msra.mxu1 %vm1064_vm2, %v1063_v14 }
 0x1ac   : > { %7778 = vmatprep.subr.mxu1 %v8745_v6 }
 0x1ae   : > { %v1231_v15 = vpop.permute.xlu1 %1230  ;;  %7776 = vmatmul.mubr.msk.f32.vlgmr.msra.gmra.mrb[0].mxu1 %vm1064_vm2, %v8989_v11 }
 0x1af   : > { %7779 = vmatpush3.msra.mxu1 %v1153_v13  ;;  %7780 = vmatprep.mubr.msk.f32.mxu1 %vm8744_vm0, %v8745_v6 }
 0x1b0   : > { %7783 = vmatprep.subr.mxu1 %v8745_v6 }
 0x1b2   : > { %v1229_v16 = vpop.permute.xlu1 %1228 }
 0x1b6   : > { %v1398_v17 = vpop.permute.xlu1 %1397 }
 0x1b7   : > { %7794 = vmatpush3.xpose.msk.msra.mxu0 %vm1064_vm2, %v1398_v17 }
 0x1b8   : > { %7803 = vmatprep.subr.mxu0 %v8745_v6 }
 0x281   : > { %v1135_v19 = vpop.f32.mrb[0].mxu1 }
 0x282   : > { %v1139_v20 = vmul.f32 0.35355338, %v1135_v19  ;;  %v7777_v21 = vpop.f32.mrb[1].mxu1  ;;  %v975_v19 = vld [vmem:[%s9923_s3] sm:$0xff] }
 0x284   : > { %v1140_v22 = vsel %vm1060_vm3, 1e-09, %v1139_v20  ;;  %v976_v20 = vld [vmem:[%s9923_s3 + $0x8] sm:$0xff] }
 0x285   : > { %v1141_v23 = vsel %vm1064_vm2, %v1140_v22, -inf  ;;  %v8294_v21 = vpack.c.bf16 %v976_v20, %v975_v19 }
 0x286   : > { %1142 = vmax.xlane.f32.xlu0 %v1141_v23  ;;  %v978_v23 = vld [vmem:[%s9923_s3 + $0x18] sm:$0xff] }
 0x29c   : > { %1564 = vrot.lane.b32.xlu0 %v8989_v11, %s9852_s26  ;;  %s9862_s26 = smov 56  }
 0x313   : > { %v1143_v24 = vpop.xlane.xlu0 %1142 }
 0x314   : > { %v1144_v25 = vsub.f32 %v1140_v22, %v1143_v24  ;;  %v977_v22 = vld [vmem:[%s9923_s3 + $0x10] sm:$0xff] }
 0x315   : > { %v8297_v24 = vpack.c.bf16 %v978_v23, %v977_v22 }
 0x316   : > { %v1145_v26 = vmul.f32 1.442695, %v1144_v25 }
 0x317   : > { %v1565_v31 = vpop.permute.xlu0 %1564 }
 0x318   : > { %8534 = vpow2.f32 %v1145_v26 }
 0x322   : > { %v8535_v27 = vpop.eup %8534 }
 0x323   : > { %v1147_v28 = vsel %vm1064_vm2, %v8535_v27, 0.0 }
 0x324   : > { %1148 = vadd.xlane.f32.xlu1 %v1147_v28 }
 0x335   : > { %1395 = vrot.lane.b32.xlu1 %v8989_v11, %s9856_s23  ;;  %s9858_s23 = smov 40  }
 0x339   : > { %1562 = vrot.lane.b32.xlu1 %v8989_v11, %s9854_s5  ;;  %s9860_s5 = smov 48  }
 0x3b1   : > { %v1149_v29 = vpop.xlane.xlu1 %1148 }
 0x3b2   : > { %8536 = vrcp.f32 %v1149_v29 }
 0x3b5   : > { %v1396_v30 = vpop.permute.xlu1 %1395 }
 0x3b6   : > { %7796 = vmatmul.mubr.msk.f32.vlgmr.msra.gmra.mrb[2].mxu0 %vm1064_vm2, %v1396_v30 }
 0x3b7   : > { %7804 = vmatpush3.xpose.msk.msra.mxu0 %vm1064_vm2, %v1565_v31  ;;  %7805 = vmatprep.mubr.msk.f32.mxu0 %vm8744_vm0, %v8745_v6 }
 0x3b8   : > { %8293 = vmatprep.subr.bf16.mxu0 %v8743_v3 }
 0x3b9   : > { %v1563_v32 = vpop.permute.xlu1 %1562 }
 0x3ba   : > { %7806 = vmatmul.mubr.msk.f32.vlgmr.msra.gmra.mrb[4].mxu0 %vm1064_vm2, %v1563_v32 }
 0x3bb   : > { %7821 = vmatprep.mubr.msk.f32.mxu0 %vm8744_vm0, %v8745_v6  ;;  %8295 = vmatpush3.bf16.msra.mxu0 %v8294_v21 }
 0x3bc   : > { %v8537_v33 = vpop.eup %8536  ;;  %8296 = vmatprep.subr.bf16.mxu0 %v8743_v3 }
 0x3bd   : > { %v1151_v34 = vmul.f32 %v8537_v33, %v8535_v27 }
 0x3bf   : > { %7781 = vmatmul.mubr.msk.f32.vlgmr.msra.gmra.mrb[2].mxu1 %vm1064_vm2, %v1151_v34  ;;  %8298 = vmatpush3.bf16.msra.mxu0 %v8297_v24 }
 0x3c0   : > { %7784 = vmatpush3.xpose.msk.msra.mxu1 %vm1064_vm2, %v1231_v15  ;;  %7785 = vmatprep.mubr.msk.f32.mxu1 %vm8744_vm0, %v8745_v6 }
 0x3c1   : > { %7788 = vmatprep.subr.mxu1 %v8745_v6  ;;  %8305 = vmatprep.subr.bf16.mxu0 %v8743_v3 }
 0x3c3   : > { %7786 = vmatmul.mubr.msk.f32.vlgmr.msra.gmra.mrb[4].mxu1 %vm1064_vm2, %v1229_v16 }
 0x3c4   : > { %7790 = vmatprep.mubr.msk.f32.mxu1 %vm8744_vm0, %v8745_v6 }
 0x489   : > { %v1469_v35 = vpop.f32.mrb[2].mxu0 }
 0x48a   : > { %v1473_v36 = vmul.f32 0.35355338, %v1469_v35  ;;  %v7797_v37 = vpop.f32.mrb[3].mxu0 }
 0x48b   : > { %v7364_v37 = vld [vmem:[%s9922_s8] ss:$0 sm:$0xff] }
 0x48c   : > { %v1474_v38 = vsel %vm1060_vm3, 1e-09, %v1473_v36 }
 0x48d   : > { %v1636_v39 = vpop.f32.mrb[4].mxu0  ;;  %v1475_v40 = vsel %vm1064_vm2, %v1474_v38, -inf }
 0x48e   : > { %1476 = vmax.xlane.f32.xlu0 %v1475_v40  ;;  %v7807_v41 = vpop.f32.mrb[5].mxu0  ;;  %v1640_v45 = vmul.f32 0.35355338, %v1636_v39 }
 0x490   : > { %v1641_v50 = vsel %vm1060_vm3, 1e-09, %v1640_v45 }
 0x491   : > { %v1642_v51 = vsel %vm1064_vm2, %v1641_v50, -inf }
 0x492   : > { %v9044_v42 = vpop.f32.mrb[2].mxu1 }
 0x493   : > { %v7782_v43 = vpop.f32.mrb[3].mxu1 }
 0x496   : > { %v1302_v44 = vpop.f32.mrb[4].mxu1 }
 0x497   : > { %v1306_v46 = vmul.f32 0.35355338, %v1302_v44  ;;  %v7787_v47 = vpop.f32.mrb[5].mxu1 }
 0x499   : > { %v1307_v48 = vsel %vm1060_vm3, 1e-09, %v1306_v46 }
 0x49a   : > { %v1308_v49 = vsel %vm1064_vm2, %v1307_v48, -inf }
 0x49b   : > { %1309 = vmax.xlane.f32.xlu1 %v1308_v49  ;;  %v1841_v49 = vld [vmem:[%s9921_s14] sm:$0xff] }
 0x49f   : > { %1643 = vmax.xlane.f32.xlu1 %v1642_v51  ;;  %v1843_v51 = vld [vmem:[%s9921_s14 + $0x10] sm:$0xff] }
 0x51b   : > { %v1477_v52 = vpop.xlane.xlu0 %1476 }
 0x51c   : > { %v1478_v53 = vsub.f32 %v1474_v38, %v1477_v52 }
 0x51e   : > { %v1479_v54 = vmul.f32 1.442695, %v1478_v53 }
 0x520   : > { %8538 = vpow2.f32 %v1479_v54  ;;  %v1846_v54 = vld [vmem:[%s9919_s24] sm:$0xff] }
 0x528   : > { %v1310_v55 = vpop.xlane.xlu1 %1309 }
 0x529   : > { %v1311_v63 = vsub.f32 %v1307_v48, %v1310_v55  ;;  %v1847_v55 = vld [vmem:[%s9919_s24 + $0x8] sm:$0xff] }
 0x52a   : > { %v8539_v56 = vpop.eup %8538 }
 0x52b   : > { %v1481_v57 = vsel %vm1064_vm2, %v8539_v56, 0.0  ;;  %v1312_v0 = vmul.f32 1.442695, %v1311_v63 }
 0x52c   : > { %1482 = vadd.xlane.f32.xlu1 %v1481_v57  ;;  %v1644_v58 = vpop.xlane.xlu1 %1643  ;;  %v8306_v57 = vpack.c.bf16 %v1847_v55, %v1846_v54 }
 0x52d   : > { %v1645_v59 = vsub.f32 %v1641_v50, %v1644_v58  ;;  %v1842_v50 = vld [vmem:[%s9921_s14 + $0x8] sm:$0xff]  ;;  %v1849_v58 = vld [vmem:[%s9919_s24 + $0x18] sm:$0xff] }
 0x52e   : > { %v8300_v52 = vpack.c.bf16 %v1842_v50, %v1841_v49 }
 0x52f   : > { %v1646_v60 = vmul.f32 1.442695, %v1645_v59 }
 0x531   : > { %8540 = vpow2.f32 %v1646_v60  ;;  %v1850_v60 = vld [vmem:[%s9919_s24 + $0x20] sm:$0xff] }
 0x532   : > { %8542 = vpow2.f32 %v1312_v0 }
 0x53b   : > { %v8541_v61 = vpop.eup %8540 }
 0x53c   : > { %v1648_v62 = vsel %vm1064_vm2, %v8541_v61, 0.0  ;;  %v8543_v1 = vpop.eup %8542 }
 0x53d   : > { %1319 = vrot.lane.b32.xlu1 %v8989_v11, %s9862_s26  ;;  %1649 = vadd.xlane.f32.xlu0 %v1648_v62  ;;  %v1314_v2 = vsel %vm1064_vm2, %v8543_v1, 0.0  ;;  %s9864_s26 = smov 24  }
 0x553   : > { %1486 = vrot.lane.b32.xlu0 %v8989_v11, %s9860_s5  ;;  %s9866_s5 = smov 16  }
 0x561   : > { %1315 = vadd.xlane.f32.xlu1 %v1314_v2 }
 0x572   : > { %1653 = vrot.lane.b32.xlu1 %v8989_v11, %s9858_s23  ;;  %s9868_s23 = smov 8  }
 0x5b9   : > { %v1483_v4 = vpop.xlane.xlu1 %1482 }
 0x5bd   : > { %v1320_v5 = vpop.permute.xlu1 %1319 }
 0x5be   : > { %7789 = vmatpush3.msra.mxu1 %v1320_v5  ;;  %v1852_v5 = vld [vmem:[%s9919_s24 + $0x30] sm:$0xff] }
 0x5bf   : > { %7798 = vmatprep.subr.mxu1 %v8745_v6 }
 0x5ca   : > { %v1650_v9 = vpop.xlane.xlu0 %1649 }
 0x5ce   : > { %v1487_v14 = vpop.permute.xlu0 %1486 }
 0x5ee   : > { %v1316_v7 = vpop.xlane.xlu1 %1315 }
 0x5ef   : > { %8544 = vrcp.f32 %v1316_v7  ;;  %v1853_v7 = vld [vmem:[%s9919_s24 + $0x38] sm:$0xff] }
 0x5f0   : > { %8546 = vrcp.f32 %v1483_v4 }
 0x5f1   : > { %8548 = vrcp.f32 %v1650_v9  ;;  %v8315_v9 = vpack.c.bf16 %v1853_v7, %v1852_v5 }
 0x5f2   : > { %v1654_v16 = vpop.permute.xlu1 %1653 }
 0x5f9   : > { %v8545_v10 = vpop.eup %8544 }
 0x5fa   : > { %v1318_v12 = vmul.f32 %v8545_v10, %v8543_v1  ;;  %v8547_v13 = vpop.eup %8546  ;;  %v7366_v10 = vld [vmem:[%s9920_s19] ss:$0 sm:$0xff] }
 0x5fb   : > { %v1485_v11 = vmul.f32 %v8547_v13, %v8539_v56  ;;  %v8549_v15 = vpop.eup %8548  ;;  %v1848_v56 = vld [vmem:[%s9919_s24 + $0x10] sm:$0xff] }
 0x5fc   : > { %7791 = vmatmul.mubr.msk.f32.vlgmr.msra.gmra.mrb[6].mxu1 %vm1064_vm2, %v1318_v12  ;;  %v1652_v17 = vmul.f32 %v8549_v15, %v8541_v61  ;;  %v8309_v59 = vpack.c.bf16 %v1849_v58, %v1848_v56  ;;  %v1851_v61 = vld [vmem:[%s9919_s24 + $0x28] sm:$0xff]  ;;  %v7368_v15 = vld [vmem:[%s9918_s30] ss:$0 sm:$0xff] }
 0x5fd   : > { %7799 = vmatpush3.msra.mxu1 %v1487_v14  ;;  %7800 = vmatprep.mubr.msk.f32.mxu1 %vm8744_vm0, %v8745_v6  ;;  %v8312_v62 = vpack.c.bf16 %v1851_v61, %v1850_v60 }
 0x5fe   : > { %7808 = vmatprep.subr.mxu1 %v8745_v6 }
 0x600   : > { %7801 = vmatmul.mubr.msk.f32.vlgmr.msra.gmra.mrb[8].mxu1 %vm1064_vm2, %v1485_v11 }
 0x601   : > { %7809 = vmatpush3.msra.mxu1 %v1654_v16  ;;  %7810 = vmatprep.mubr.msk.f32.mxu1 %vm8744_vm0, %v8745_v6 }
 0x602   : > { %8299 = vmatprep.subr.bf16.mxu1 %v8743_v3 }
 0x604   : > { %7811 = vmatmul.mubr.msk.f32.vlgmr.msra.gmra.mrb[10].mxu1 %vm1064_vm2, %v1652_v17 }
 0x605   : > { %7832 = vmatprep.mubr.msk.f32.mxu1 %vm8744_vm0, %v8745_v6  ;;  %8301 = vmatpush3.bf16.msra.mxu1 %v8300_v52 }
 0x606   : > { %8302 = vmatprep.subr.bf16.mxu1 %v8743_v3 }
 0x6cf   : > { %v1391_v25 = vpop.f32.mrb[6].mxu1 }
 0x6d0   : > { %1730 = vrot.lane.b32.xlu1 %v1391_v25, %s9868_s23  ;;  %v7792_v26 = vpop.f32.mrb[7].mxu1  ;;  %s9940_s23 = smov 104  }
 0x6d3   : > { %v1558_v27 = vpop.f32.mrb[8].mxu1 }
 0x6d4   : > { %1734 = vrot.lane.b32.xlu0 %v1558_v27, %s9866_s5  ;;  %v7802_v28 = vpop.f32.mrb[9].mxu1  ;;  %s9939_s5 = smov 120  }
 0x6d5   : > { %v7370_v28 = vld [vmem:[%s9925_s25 + $0x20] sm:$0xff] }
 0x6d7   : > { %v1725_v29 = vpop.f32.mrb[10].mxu1 }
 0x6d8   : > { %1738 = vrot.lane.b32.xlu1 %v1725_v29, %s9864_s26  ;;  %v7812_v30 = vpop.f32.mrb[11].mxu1  ;;  %v7371_v29 = vld [vmem:[%s9925_s25 + $0x28] sm:$0xff]  ;;  %s9938_s26 = smov 112  }
 0x6d9   : > { %v7372_v30 = vld [vmem:[%s9925_s25 + $0x30] sm:$0xff] }
 0x742   : > { %v1731_v31 = vpop.permute.xlu1 %1730 }
 0x743   : > { %v1741_v33 = vsel %vm1064_vm2, %v9044_v42, %v1731_v31  ;;  %v8318_v31 = vpack.c.bf16 %v7371_v29, %v7370_v28 }
 0x746   : > { %v1735_v32 = vpop.permute.xlu0 %1734 }
 0x747   : > { %v1743_v34 = vsel %vm1742_vm4, %v1741_v33, %v1735_v32  ;;  %v7373_v32 = vld [vmem:[%s9925_s25 + $0x38] sm:$0xff]  ;;  %s9942_s25 = smov 72  }
 0x748   : > { %v8321_v33 = vpack.c.bf16 %v7373_v32, %v7372_v30 }
 0x74a   : > { %v1739_v35 = vpop.permute.xlu1 %1738 }
 0x74b   : > { %v1745_v36 = vsel %vm1744_vm5, %v1743_v34, %v1739_v35 }
 0x74c   : > { %7822 = vmatmul.mubr.msk.f32.vlgmr.msra.gmra.mrb[6].mxu0 %vm986_vm1, %v1745_v36 }
 0x74d   : > { %7851 = vmatprep.mubr.msk.f32.mxu0 %vm8744_vm0, %v8745_v6  ;;  %8307 = vmatpush3.bf16.msra.mxu0 %v8306_v57 }
 0x74e   : > { %8308 = vmatprep.subr.bf16.mxu0 %v8743_v3 }
 0x751   : > { %8310 = vmatpush3.bf16.msra.mxu0 %v8309_v59 }
 0x752   : > { %8311 = vmatprep.subr.bf16.mxu0 %v8743_v3 }
 0x755   : > { %8313 = vmatpush3.bf16.msra.mxu0 %v8312_v62 }
 0x756   : > { %8314 = vmatprep.subr.bf16.mxu0 %v8743_v3 }
 0x759   : > { %8316 = vmatpush3.bf16.msra.mxu0 %v8315_v9 }
 0x75a   : > { %7875 = vmatprep.subr.mxu0 %v8745_v6 }
 0x81f   : > { %v1821_v38 = vpop.f32.mrb[6].mxu0 }
 0x820   : > { %v1822_v39 = vadd.f32 %v7364_v37, %v1821_v38  ;;  %v7823_v40 = vpop.f32.mrb[7].mxu0 }
 0x822   : > { %v1825_v41 = vadd.f32 %v1822_v39, %v8981_v8  ;;  %v7380_v39 = vld [vmem:[%s9924_s29 + $0x1] ss:$0 sm:$0xff]  ;;  %s9945_s29 = smov 48  }
 0x824   : > { %v1826_v42 = vadd.f32 %v1825_v41, %v8981_v8  ;;  %v1844_v8 = vld [vmem:[%s9921_s14 + $0x18] sm:$0xff] }
 0x825   : > { %v8303_v53 = vpack.c.bf16 %v1844_v8, %v1843_v51 }
 0x826   : > { %v1827_v43 = vsel %vm986_vm1, %v1826_v42, 0.0 }
 0x827   : > { %1828 = vadd.xlane.f32.xlu0 %v1827_v43  ;;  %8304 = vmatpush3.bf16.msra.mxu1 %v8303_v53 }
 0x828   : > { %8317 = vmatprep.subr.bf16.mxu1 %v8743_v3 }
 0x8b4   : > { %v1829_v44 = vpop.xlane.xlu0 %1828 }
 0x8b5   : > { %v1831_v45 = vmul.f32 0.03125, %v1829_v44 }
 0x8b7   : > { %v1832_v46 = vsub.f32 %v1826_v42, %v1831_v45 }
 0x8b9   : > { %v1833_v47 = vmul.f32 %v1832_v46, %v1832_v46 }
 0x8bb   : > { %v1834_v48 = vsel %vm986_vm1, %v1833_v47, 0.0 }
 0x8bc   : > { %1835 = vadd.xlane.f32.xlu1 %v1834_v48 }
 0x949   : > { %v1836_v63 = vpop.xlane.xlu1 %1835 }
 0x94a   : > { %v1837_v0 = vmul.f32 0.03125, %v1836_v63 }
 0x94c   : > { %v1838_v1 = vadd.f32 1e-06, %v1837_v0 }
 0x94e   : > { %8550 = vrsqrt.f32 %v1838_v1 }
 0x958   : > { %v8551_v2 = vpop.eup %8550 }
 0x959   : > { %v1840_v4 = vmul.f32 %v8551_v2, %v1832_v46 }
 0x95b   : > { %7833 = vmatmul.mubr.msk.f32.vlgmr.msra.gmra.mrb[12].mxu1 %vm986_vm1, %v1840_v4 }
 0x95c   : > { %7862 = vmatprep.mubr.msk.f32.mxu1 %vm8744_vm0, %v8745_v6  ;;  %8319 = vmatpush3.bf16.msra.mxu1 %v8318_v31 }
 0x95d   : > { %8320 = vmatprep.subr.bf16.mxu1 %v8743_v3 }
 0x960   : > { %8322 = vmatpush3.bf16.msra.mxu1 %v8321_v33 }
 0x961   : > { %7865 = vmatprep.subr.mxu1 %v8745_v6 }
 0xa2e   : > { %v1930_v12 = vpop.f32.mrb[12].mxu1 }
 0xa2f   : > { %v1931_v13 = vadd.f32 %v7366_v10, %v1930_v12  ;;  %v7834_v14 = vpop.f32.mrb[13].mxu1 }
 0xa31   : > { %v1934_v11 = vmax.f32 %v1931_v13, 0.0 }
 0xa33   : > { %7852 = vmatmul.mubr.msk.f32.vlgmr.msra.gmra.mrb[8].mxu0 %vm1941_vm6, %v1934_v11 }
 0xa34   : > { %7877 = vmatprep.mubr.msk.f32.mxu0 %vm8744_vm0, %v8745_v6 }
 0xb06   : > { %v2011_v16 = vpop.f32.mrb[8].mxu0 }
 0xb07   : > { %v2012_v17 = vadd.f32 %v7368_v15, %v2011_v16  ;;  %v7853_v19 = vpop.f32.mrb[9].mxu0 }
 0xb09   : > { %v2015_v20 = vadd.f32 %v2012_v17, %v1840_v4 }
 0xb0b   : > { %v2016_v21 = vadd.f32 %v2015_v20, %v1840_v4 }
 0xb0d   : > { %v2017_v22 = vsel %vm986_vm1, %v2016_v21, 0.0 }
 0xb0e   : > { %2018 = vadd.xlane.f32.xlu0 %v2017_v22 }
 0xb9b   : > { %v2019_v23 = vpop.xlane.xlu0 %2018 }
 0xb9c   : > { %v2020_v24 = vmul.f32 0.03125, %v2019_v23 }
 0xb9e   : > { %v2021_v25 = vsub.f32 %v2016_v21, %v2020_v24 }
 0xba0   : > { %v2022_v26 = vmul.f32 %v2021_v25, %v2021_v25 }
 0xba2   : > { %v2023_v27 = vsel %vm986_vm1, %v2022_v26, 0.0 }
 0xba3   : > { %2024 = vadd.xlane.f32.xlu0 %v2023_v27 }
 0xc30   : > { %v2025_v34 = vpop.xlane.xlu0 %2024 }
 0xc31   : > { %v2026_v35 = vmul.f32 0.03125, %v2025_v34 }
 0xc33   : > { %v2027_v36 = vadd.f32 1e-06, %v2026_v35 }
 0xc35   : > { %8552 = vrsqrt.f32 %v2027_v36 }
 0xc3f   : > { %v8553_v37 = vpop.eup %8552 }
 0xc40   : > { %v9128_v38 = vmul.f32 %v8553_v37, %v2021_v25 }
 0xc42   : > { %7863 = vmatmul.mubr.msk.f32.vlgmr.msra.gmra.mrb[14].mxu1 %vm986_vm1, %v9128_v38 }
 0xc43   : > { %7867 = vmatprep.mubr.msk.f32.mxu1 %vm8744_vm0, %v8745_v6 }
 0xd15   : > { %v2119_v40 = vpop.f32.mrb[14].mxu1 }
 0xd16   : > { %v9135_v41 = vadd.f32 %v7380_v39, %v2119_v40  ;;  %v7864_v42 = vpop.f32.mrb[15].mxu1 }
 0xd18   : > { %2291 = vrot.lane.b32.xlu0 %v9135_v41, %s9873_s22  ;;  %2124 = vrot.lane.b32.xlu1 %v9135_v41, %s9871_s2  ;;  %s9943_s2 = smov 56   ;;  %s9944_s22 = smov 64  }
 0xd1c   : > { %2456 = vrot.lane.b32.xlu0 %v9135_v41, %s9938_s26  ;;  %2289 = vrot.lane.b32.xlu1 %v9135_v41, %s9939_s5 }
 0xd20   : > { %2623 = vrot.lane.b32.xlu0 %v9135_v41, %s9940_s23  ;;  %2458 = vrot.lane.b32.xlu1 %v9135_v41, %s9941_s13 }
 0xd24   : > { %2625 = vrot.lane.b32.xlu1 %v9135_v41, %s9942_s25 }
 0xd8a   : > { %v2292_v43 = vpop.permute.xlu0 %2291  ;;  %v2125_v44 = vpop.permute.xlu1 %2124 }
 0xd8b   : > { %7866 = vmatpush3.xpose.msk.msra.mxu1 %vm1064_vm2, %v2125_v44  ;;  %7876 = vmatpush3.xpose.msk.msra.mxu0 %vm1064_vm2, %v2292_v43 }
 0xd8c   : > { %7885 = vmatprep.subr.mxu0 %v8745_v6  ;;  %7870 = vmatprep.subr.mxu1 %v8745_v6 }
 0xd8e   : > { %7868 = vmatmul.mubr.msk.f32.vlgmr.msra.gmra.mrb[16].mxu1 %vm1064_vm2, %v9135_v41  ;;  %v2290_v45 = vpop.permute.xlu1 %2289  ;;  %v2457_v47 = vpop.permute.xlu0 %2456 }
 0xd8f   : > { %7878 = vmatmul.mubr.msk.f32.vlgmr.msra.gmra.mrb[10].mxu0 %vm1064_vm2, %v2290_v45  ;;  %7872 = vmatprep.mubr.msk.f32.mxu1 %vm8744_vm0, %v8745_v6  ;;  %v7375_v45 = vld [vmem:[%s9923_s3 + $0x20] sm:$0xff] }
 0xd90   : > { %7887 = vmatprep.mubr.msk.f32.mxu0 %vm8744_vm0, %v8745_v6 }
 0xd92   : > { %v2459_v46 = vpop.permute.xlu1 %2458  ;;  %v2624_v49 = vpop.permute.xlu0 %2623 }
 0xd93   : > { %7886 = vmatpush3.xpose.msk.msra.mxu0 %vm1064_vm2, %v2459_v46  ;;  %v7376_v46 = vld [vmem:[%s9923_s3 + $0x28] sm:$0xff] }
 0xd94   : > { %7895 = vmatprep.subr.mxu0 %v8745_v6 }
 0xd96   : > { %7888 = vmatmul.mubr.msk.f32.vlgmr.msra.gmra.mrb[12].mxu0 %vm1064_vm2, %v2457_v47  ;;  %v2626_v48 = vpop.permute.xlu1 %2625  ;;  %v8324_v47 = vpack.c.bf16 %v7376_v46, %v7375_v45  ;;  %v7410_v45 = vld [vmem:[%s9920_s19 + $0x1] ss:$0 sm:$0xff]  ;;  %s9957_s19 = sld [smem:[#allocation20_spill]] }
 0xd97   : > { %7896 = vmatpush3.xpose.msk.msra.mxu0 %vm1064_vm2, %v2626_v48  ;;  %7897 = vmatprep.mubr.msk.f32.mxu0 %vm8744_vm0, %v8745_v6 }
 0xd98   : > { %8323 = vmatprep.subr.bf16.mxu0 %v8743_v3 }
 0xd9a   : > { %7898 = vmatmul.mubr.msk.f32.vlgmr.msra.gmra.mrb[14].mxu0 %vm1064_vm2, %v2624_v49 }
 0xd9b   : > { %7913 = vmatprep.mubr.msk.f32.mxu0 %vm8744_vm0, %v8745_v6  ;;  %8325 = vmatpush3.bf16.msra.mxu0 %v8324_v47 }
 0xd9c   : > { %8326 = vmatprep.subr.bf16.mxu0 %v8743_v3 }
 0xe61   : > { %v2196_v50 = vpop.f32.mrb[16].mxu1 }
 0xe62   : > { %v2200_v51 = vmul.f32 0.35355338, %v2196_v50  ;;  %v7869_v52 = vpop.f32.mrb[17].mxu1  ;;  %v2363_v8 = vpop.f32.mrb[10].mxu0 }
 0xe63   : > { %v2367_v53 = vmul.f32 0.35355338, %v2363_v8  ;;  %v7879_v54 = vpop.f32.mrb[11].mxu0  ;;  %v7377_v52 = vld [vmem:[%s9923_s3 + $0x30] sm:$0xff]  ;;  %v7378_v8 = vld [vmem:[%s9923_s3 + $0x38] sm:$0xff]  ;;  %s953_s3 = scalar_lea.vmem %s9950_s9, %s8977_s16  ;;  %s961_s9 = scalar_lea.vmem %s9953_s17, %s8977_s16 }
 0xe64   : > { %v2201_v55 = vsel %vm1060_vm3, 1e-09, %v2200_v51  ;;  %s9956_s17 = sld [smem:[#allocation19_spill]]  ;;  %s9963_s16 = sld [smem:[#allocation25_spill]] }
 0xe65   : > { %v2202_v56 = vsel %vm1064_vm2, %v2201_v55, -inf  ;;  %v2368_v57 = vsel %vm1060_vm3, 1e-09, %v2367_v53  ;;  %v8327_v53 = vpack.c.bf16 %v7378_v8, %v7377_v52 }
 0xe66   : > { %2203 = vmax.xlane.f32.xlu1 %v2202_v56  ;;  %v2369_v58 = vsel %vm1064_vm2, %v2368_v57, -inf }
 0xe67   : > { %2370 = vmax.xlane.f32.xlu0 %v2369_v58  ;;  %8328 = vmatpush3.bf16.msra.mxu0 %v8327_v53 }
 0xe68   : > { %8335 = vmatprep.subr.bf16.mxu0 %v8743_v3 }
 0xe69   : > { %v2530_v59 = vpop.f32.mrb[12].mxu0 }
 0xe6a   : > { %v2534_v60 = vmul.f32 0.35355338, %v2530_v59  ;;  %v7889_v61 = vpop.f32.mrb[13].mxu0 }
 0xe6c   : > { %v2535_v62 = vsel %vm1060_vm3, 1e-09, %v2534_v60 }
 0xe6d   : > { %v2697_v63 = vpop.f32.mrb[14].mxu0  ;;  %v2536_v0 = vsel %vm1064_vm2, %v2535_v62, -inf }
 0xe6e   : > { %v2701_v1 = vmul.f32 0.35355338, %v2697_v63  ;;  %2537 = vmax.xlane.f32.xlu0 %v2536_v0  ;;  %v7899_v2 = vpop.f32.mrb[15].mxu0  ;;  %v7394_v0 = vld [vmem:[%s9922_s8 + $0x1] ss:$0 sm:$0xff]  ;;  %s9952_s8 = smov 96  }
 0xe70   : > { %v2702_v4 = vsel %vm1060_vm3, 1e-09, %v2701_v1 }
 0xe71   : > { %v2703_v5 = vsel %vm1064_vm2, %v2702_v4, -inf }
 0xe72   : > { %2704 = vmax.xlane.f32.xlu1 %v2703_v5 }
 0xe83   : > { %2380 = vrot.lane.b32.xlu1 %v9135_v41, %s9943_s2 }
 0xef3   : > { %v2204_v7 = vpop.xlane.xlu1 %2203 }
 0xef4   : > { %v2205_v9 = vsub.f32 %v2201_v55, %v2204_v7  ;;  %v2371_v10 = vpop.xlane.xlu0 %2370 }
 0xef5   : > { %v2372_v12 = vsub.f32 %v2368_v57, %v2371_v10 }
 0xef6   : > { %v2206_v13 = vmul.f32 1.442695, %v2205_v9 }
 0xef7   : > { %v2373_v14 = vmul.f32 1.442695, %v2372_v12 }
 0xef8   : > { %8554 = vpow2.f32 %v2206_v13 }
 0xef9   : > { %8556 = vpow2.f32 %v2373_v14 }
 0xefb   : > { %v2538_v23 = vpop.xlane.xlu0 %2537 }
 0xefc   : > { %v2539_v24 = vsub.f32 %v2535_v62, %v2538_v23 }
 0xefe   : > { %v2540_v25 = vmul.f32 1.442695, %v2539_v24  ;;  %v7404_v24 = vld [vmem:[%s9919_s24 + $0x58] sm:$0xff] }
 0xeff   : > { %v2705_v11 = vpop.xlane.xlu1 %2704 }
 0xf00   : > { %v2706_v15 = vsub.f32 %v2702_v4, %v2705_v11 }
 0xf02   : > { %v8555_v16 = vpop.eup %8554  ;;  %v2707_v17 = vmul.f32 1.442695, %v2706_v15  ;;  %v7396_v15 = vld [vmem:[%s9921_s14 + $0x20] sm:$0xff] }
 0xf03   : > { %v8557_v18 = vpop.eup %8556  ;;  %v2208_v19 = vsel %vm1064_vm2, %v8555_v16, 0.0  ;;  %v2381_v28 = vpop.permute.xlu1 %2380 }
 0xf04   : > { %8558 = vpow2.f32 %v2707_v17  ;;  %2209 = vadd.xlane.f32.xlu0 %v2208_v19  ;;  %v2375_v20 = vsel %vm1064_vm2, %v8557_v18, 0.0  ;;  %v7398_v17 = vld [vmem:[%s9921_s14 + $0x30] sm:$0xff] }
 0xf05   : > { %2376 = vadd.xlane.f32.xlu1 %v2375_v20  ;;  %8560 = vpow2.f32 %v2540_v25  ;;  %v7401_v20 = vld [vmem:[%s9919_s24 + $0x40] sm:$0xff] }
 0xf0e   : > { %v8559_v21 = vpop.eup %8558 }
 0xf0f   : > { %v2709_v22 = vsel %vm1064_vm2, %v8559_v21, 0.0  ;;  %v8561_v26 = vpop.eup %8560 }
 0xf10   : > { %2710 = vadd.xlane.f32.xlu1 %v2709_v22  ;;  %v2542_v27 = vsel %vm1064_vm2, %v8561_v26, 0.0  ;;  %v7403_v22 = vld [vmem:[%s9919_s24 + $0x50] sm:$0xff] }
 0xf11   : > { %v8339_v25 = vpack.c.bf16 %v7404_v24, %v7403_v22 }
 0xf1a   : > { %2213 = vrot.lane.b32.xlu0 %v9135_v41, %s9944_s22 }
 0xf21   : > { %2547 = vrot.lane.b32.xlu1 %v9135_v41, %s9945_s29 }
 0xf39   : > { %2543 = vadd.xlane.f32.xlu0 %v2542_v27  ;;  %v7406_v27 = vld [vmem:[%s9919_s24 + $0x68] sm:$0xff] }
 0xf4f   : > { %2714 = vrot.lane.b32.xlu0 %v9135_v41, %s9946_s11 }
 0xf91   : > { %v2210_v29 = vpop.xlane.xlu0 %2209 }
 0xf92   : > { %8562 = vrcp.f32 %v2210_v29  ;;  %v2377_v30 = vpop.xlane.xlu1 %2376 }
 0xf93   : > { %8564 = vrcp.f32 %v2377_v30 }
 0xf95   : > { %v2214_v31 = vpop.permute.xlu0 %2213 }
 0xf96   : > { %7871 = vmatpush3.msra.mxu1 %v2214_v31 }
 0xf97   : > { %7880 = vmatprep.subr.mxu1 %v8745_v6 }
 0xf9c   : > { %v8563_v32 = vpop.eup %8562 }
 0xf9d   : > { %v2711_v33 = vpop.xlane.xlu1 %2710  ;;  %v2212_v34 = vmul.f32 %v8563_v32, %v8555_v16  ;;  %v8565_v35 = vpop.eup %8564  ;;  %v7397_v16 = vld [vmem:[%s9921_s14 + $0x28] sm:$0xff]  ;;  %v3092_v32 = vld [vmem:[%s8834_s6] sm:$0xff] }
 0xf9e   : > { %v2379_v37 = vmul.f32 %v8565_v35, %v8557_v18  ;;  %v8330_v18 = vpack.c.bf16 %v7397_v16, %v7396_v15 }
 0xf9f   : > { %7873 = vmatmul.mubr.msk.f32.vlgmr.msra.gmra.mrb[18].mxu1 %vm1064_vm2, %v2212_v34 }
 0xfa0   : > { %7881 = vmatpush3.msra.mxu1 %v2381_v28  ;;  %7882 = vmatprep.mubr.msk.f32.mxu1 %vm8744_vm0, %v8745_v6 }
 0xfa1   : > { %v2548_v36 = vpop.permute.xlu1 %2547  ;;  %7890 = vmatprep.subr.mxu1 %v8745_v6 }
 0xfa3   : > { %7883 = vmatmul.mubr.msk.f32.vlgmr.msra.gmra.mrb[20].mxu1 %vm1064_vm2, %v2379_v37  ;;  %v3094_v37 = vld [vmem:[%s8834_s6 + $0x10] sm:$0xff] }
 0xfa4   : > { %7891 = vmatpush3.msra.mxu1 %v2548_v36  ;;  %7892 = vmatprep.mubr.msk.f32.mxu1 %vm8744_vm0, %v8745_v6 }
 0xfa5   : > { %7900 = vmatprep.subr.mxu1 %v8745_v6 }
 0xfc6   : > { %v2544_v39 = vpop.xlane.xlu0 %2543 }
 0xfc7   : > { %8566 = vrcp.f32 %v2544_v39  ;;  %v3095_v39 = vld [vmem:[%s8834_s6 + $0x18] sm:$0xff] }
 0xfc8   : > { %8568 = vrcp.f32 %v2711_v33  ;;  %v3093_v33 = vld [vmem:[%s8834_s6 + $0x8] sm:$0xff] }
 0xfc9   : > { %v8348_v35 = vpack.c.bf16 %v3093_v33, %v3092_v32 }
 0xfca   : > { %v2715_v43 = vpop.permute.xlu0 %2714 }
 0xfd1   : > { %v8567_v40 = vpop.eup %8566 }
 0xfd2   : > { %v2546_v41 = vmul.f32 %v8567_v40, %v8561_v26  ;;  %v8569_v42 = vpop.eup %8568  ;;  %v7405_v26 = vld [vmem:[%s9919_s24 + $0x60] sm:$0xff]  ;;  %v8351_v40 = vpack.c.bf16 %v3095_v39, %v3094_v37 }
 0xfd3   : > { %v2713_v44 = vmul.f32 %v8569_v42, %v8559_v21  ;;  %v7402_v21 = vld [vmem:[%s9919_s24 + $0x48] sm:$0xff]  ;;  %v8342_v28 = vpack.c.bf16 %v7406_v27, %v7405_v26  ;;  %v7407_v42 = vld [vmem:[%s9919_s24 + $0x70] sm:$0xff] }
 0xfd4   : > { %7893 = vmatmul.mubr.msk.f32.vlgmr.msra.gmra.mrb[22].mxu1 %vm1064_vm2, %v2546_v41  ;;  %v8336_v23 = vpack.c.bf16 %v7402_v21, %v7401_v20  ;;  %v9260_v41 = vld [vmem:[%s953_s3] sm:$0xff]  ;;  %s9951_s3 = smov 88  }
 0xfd5   : > { %7901 = vmatpush3.msra.mxu1 %v2715_v43  ;;  %7902 = vmatprep.mubr.msk.f32.mxu1 %vm8744_vm0, %v8745_v6  ;;  %v7408_v43 = vld [vmem:[%s9919_s24 + $0x78] sm:$0xff]  ;;  %s9958_s24 = sld [smem:[#allocation23_spill]] }
 0xfd6   : > { %8329 = vmatprep.subr.bf16.mxu1 %v8743_v3 }
 0xfd8   : > { %7903 = vmatmul.mubr.msk.f32.vlgmr.msra.gmra.mrb[24].mxu1 %vm1064_vm2, %v2713_v44  ;;  %v8345_v44 = vpack.c.bf16 %v7408_v43, %v7407_v42 }
 0xfd9   : > { %7924 = vmatprep.mubr.msk.f32.mxu1 %vm8744_vm0, %v8745_v6  ;;  %8331 = vmatpush3.bf16.msra.mxu1 %v8330_v18 }
 0xfda   : > { %8332 = vmatprep.subr.bf16.mxu1 %v8743_v3 }
0x1072   : > { %v2285_v48 = vpop.f32.mrb[18].mxu1 }
0x1073   : > { %v7874_v49 = vpop.f32.mrb[19].mxu1 }
0x1076   : > { %v2452_v50 = vpop.f32.mrb[20].mxu1 }
0x1077   : > { %2791 = vrot.lane.b32.xlu1 %v2452_v50, %s9947_s18  ;;  %v7884_v51 = vpop.f32.mrb[21].mxu1  ;;  %v7414_v50 = vld [vmem:[%s8839_s12] ss:$0 sm:$0xff] }
0x10a7   : > { %v2619_v54 = vpop.f32.mrb[22].mxu1 }
0x10a8   : > { %2795 = vrot.lane.b32.xlu0 %v2619_v54, %s9948_s1  ;;  %v7894_v55 = vpop.f32.mrb[23].mxu1 }
0x10ab   : > { %v2786_v56 = vpop.f32.mrb[24].mxu1 }
0x10ac   : > { %2799 = vrot.lane.b32.xlu1 %v2786_v56, %s9949_s7  ;;  %v7904_v57 = vpop.f32.mrb[25].mxu1 }
0x10e9   : > { %v2792_v58 = vpop.permute.xlu1 %2791 }
0x10ea   : > { %v2802_v60 = vsel %vm1064_vm2, %v2285_v48, %v2792_v58 }
0x111a   : > { %v2796_v59 = vpop.permute.xlu0 %2795 }
0x111b   : > { %v2803_v61 = vsel %vm1742_vm4, %v2802_v60, %v2796_v59 }
0x111e   : > { %v2800_v62 = vpop.permute.xlu1 %2799 }
0x111f   : > { %v2804_v63 = vsel %vm1744_vm5, %v2803_v61, %v2800_v62  ;;  %v9316_v62 = vld [vmem:[%s961_s9] sm:$0xff]  ;;  %s9954_s9 = sld [smem:[#allocation18_spill]] }
0x1120   : > { %7914 = vmatmul.mubr.msk.f32.vlgmr.msra.gmra.mrb[16].mxu0 %vm986_vm1, %v2804_v63  ;;  %vm3181_vm7 = vcmp.eq.s32.totalorder %v9316_v62, 0 }
0x1121   : > { %7943 = vmatprep.mubr.msk.f32.mxu0 %vm8744_vm0, %v8745_v6  ;;  %8337 = vmatpush3.bf16.msra.mxu0 %v8336_v23 }
0x1122   : > { %8338 = vmatprep.subr.bf16.mxu0 %v8743_v3 }
0x1125   : > { %8340 = vmatpush3.bf16.msra.mxu0 %v8339_v25 }
0x1126   : > { %8341 = vmatprep.subr.bf16.mxu0 %v8743_v3 }
0x1129   : > { %8343 = vmatpush3.bf16.msra.mxu0 %v8342_v28 }
0x112a   : > { %8344 = vmatprep.subr.bf16.mxu0 %v8743_v3 }
0x112d   : > { %8346 = vmatpush3.bf16.msra.mxu0 %v8345_v44 }
0x112e   : > { %7967 = vmatprep.subr.mxu0 %v8745_v6 }
0x11f3   : > { %v2880_v1 = vpop.f32.mrb[16].mxu0 }
0x11f4   : > { %v2881_v2 = vadd.f32 %v7394_v0, %v2880_v1  ;;  %v7915_v4 = vpop.f32.mrb[17].mxu0 }
0x11f6   : > { %v2884_v5 = vadd.f32 %v2881_v2, %v9128_v38 }
0x11f8   : > { %v2885_v7 = vadd.f32 %v2884_v5, %v9128_v38  ;;  %v7399_v38 = vld [vmem:[%s9921_s14 + $0x38] sm:$0xff]  ;;  %s9955_s14 = sld [smem:[#allocation22_spill]] }
0x11f9   : > { %v8333_v19 = vpack.c.bf16 %v7399_v38, %v7398_v17 }
0x11fa   : > { %v2886_v9 = vsel %vm986_vm1, %v2885_v7, 0.0 }
0x11fb   : > { %2887 = vadd.xlane.f32.xlu0 %v2886_v9  ;;  %8334 = vmatpush3.bf16.msra.mxu1 %v8333_v19 }
0x11fc   : > { %8347 = vmatprep.subr.bf16.mxu1 %v8743_v3 }
0x1288   : > { %v2888_v10 = vpop.xlane.xlu0 %2887 }
0x1289   : > { %v2889_v12 = vmul.f32 0.03125, %v2888_v10 }
0x128b   : > { %v2890_v13 = vsub.f32 %v2885_v7, %v2889_v12 }
0x128d   : > { %v2891_v14 = vmul.f32 %v2890_v13, %v2890_v13 }
0x128f   : > { %v2892_v11 = vsel %vm986_vm1, %v2891_v14, 0.0 }
0x1290   : > { %2893 = vadd.xlane.f32.xlu1 %v2892_v11 }
0x131d   : > { %v2894_v29 = vpop.xlane.xlu1 %2893 }
0x131e   : > { %v2895_v30 = vmul.f32 0.03125, %v2894_v29 }
0x1320   : > { %v2896_v31 = vadd.f32 1e-06, %v2895_v30 }
0x1322   : > { %8570 = vrsqrt.f32 %v2896_v31 }
0x132c   : > { %v8571_v34 = vpop.eup %8570 }
0x132d   : > { %v9249_v36 = vmul.f32 %v8571_v34, %v2890_v13 }
0x132f   : > { %7925 = vmatmul.mubr.msk.f32.vlgmr.msra.gmra.mrb[26].mxu1 %vm986_vm1, %v9249_v36 }
0x1330   : > { %8349 = vmatpush3.bf16.msra.mxu1 %v8348_v35  ;;  %7954 = vmatprep.mubr.msk.f32.mxu1 %vm8744_vm0, %v8745_v6 }
0x1331   : > { %8350 = vmatprep.subr.bf16.mxu1 %v8743_v3 }
0x1334   : > { %8352 = vmatpush3.bf16.msra.mxu1 %v8351_v40 }
0x1335   : > { %7957 = vmatprep.subr.mxu1 %v8745_v6 }
0x1337   : > { %7955 = vmatmul.mubr.msk.f32.vlgmr.msra.gmra.mrb[28].mxu1 %vm986_vm1, %v9260_v41 }
0x1338   : > { %7959 = vmatprep.mubr.msk.f32.mxu1 %vm8744_vm0, %v8745_v6 }
0x1402   : > { %v2992_v46 = vpop.f32.mrb[26].mxu1 }
0x1403   : > { %v2993_v47 = vadd.f32 %v7410_v45, %v2992_v46  ;;  %v7926_v48 = vpop.f32.mrb[27].mxu1 }
0x1405   : > { %v2996_v49 = vmax.f32 %v2993_v47, 0.0 }
0x1407   : > { %7944 = vmatmul.mubr.msk.f32.vlgmr.msra.gmra.mrb[18].mxu0 %vm1941_vm6, %v2996_v49 }
0x1408   : > { %7969 = vmatprep.mubr.msk.f32.mxu0 %vm8744_vm0, %v8745_v6 }
0x140a   : > { %v3177_v51 = vpop.f32.mrb[28].mxu1 }
0x140b   : > { %v9275_v52 = vadd.f32 %v7414_v50, %v3177_v51  ;;  %v7956_v8 = vpop.f32.mrb[29].mxu1 }
0x140d   : > { %3350 = vrot.lane.b32.xlu1 %v9275_v52, %s9951_s3  ;;  %3183 = vrot.lane.b32.xlu0 %v9275_v52, %s9952_s8 }
0x1411   : > { %3517 = vrot.lane.b32.xlu1 %v9275_v52, %s9941_s13  ;;  %3348 = vrot.lane.b32.xlu0 %v9275_v52, %s9939_s5 }
0x1415   : > { %3684 = vrot.lane.b32.xlu1 %v9275_v52, %s9942_s25  ;;  %3515 = vrot.lane.b32.xlu0 %v9275_v52, %s9938_s26 }
0x1419   : > { %3682 = vrot.lane.b32.xlu0 %v9275_v52, %s9940_s23 }
0x147f   : > { %v3351_v53 = vpop.permute.xlu1 %3350  ;;  %v3184_v54 = vpop.permute.xlu0 %3183 }
0x1480   : > { %7958 = vmatpush3.xpose.msk.msra.mxu1 %vm1064_vm2, %v3184_v54  ;;  %7968 = vmatpush3.xpose.msk.msra.mxu0 %vm1064_vm2, %v3351_v53 }
0x1481   : > { %7977 = vmatprep.subr.mxu0 %v8745_v6  ;;  %7962 = vmatprep.subr.mxu1 %v8745_v6 }
0x1483   : > { %v3518_v55 = vpop.permute.xlu1 %3517  ;;  %7960 = vmatmul.mubr.msk.f32.vlgmr.msra.gmra.mrb[30].mxu1 %vm1064_vm2, %v9275_v52  ;;  %v3349_v56 = vpop.permute.xlu0 %3348 }
0x1484   : > { %7970 = vmatmul.mubr.msk.f32.vlgmr.msra.gmra.mrb[20].mxu0 %vm1064_vm2, %v3349_v56  ;;  %7964 = vmatprep.mubr.msk.f32.mxu1 %vm8744_vm0, %v8745_v6 }
0x1485   : > { %7978 = vmatpush3.xpose.msk.msra.mxu0 %vm1064_vm2, %v3518_v55  ;;  %7979 = vmatprep.mubr.msk.f32.mxu0 %vm8744_vm0, %v8745_v6 }
0x1486   : > { %7987 = vmatprep.subr.mxu0 %v8745_v6 }
0x1487   : > { %v3685_v57 = vpop.permute.xlu1 %3684  ;;  %v3516_v58 = vpop.permute.xlu0 %3515 }
0x1488   : > { %7980 = vmatmul.mubr.msk.f32.vlgmr.msra.gmra.mrb[22].mxu0 %vm1064_vm2, %v3516_v58 }
0x1489   : > { %7988 = vmatpush3.xpose.msk.msra.mxu0 %vm1064_vm2, %v3685_v57  ;;  %7989 = vmatprep.mubr.msk.f32.mxu0 %vm8744_vm0, %v8745_v6 }
0x148a   : > { %8353 = vmatprep.subr.bf16.mxu0 %v8743_v3 }
0x148b   : > { %v3683_v59 = vpop.permute.xlu0 %3682 }
0x148c   : > { %7990 = vmatmul.mubr.msk.f32.vlgmr.msra.gmra.mrb[24].mxu0 %vm1064_vm2, %v3683_v59  ;;  %v3097_v59 = vld [vmem:[%s9954_s9] sm:$0xff] }
0x148d   : > { %8005 = vmatprep.mubr.msk.f32.mxu0 %vm8744_vm0, %v8745_v6 }
0x14da   : > { %v9312_v60 = vpop.f32.mrb[18].mxu0 }
0x14db   : > { %v7945_v61 = vpop.f32.mrb[19].mxu0 }
0x14dc   : > { %v3098_v61 = vld [vmem:[%s9954_s9 + $0x8] sm:$0xff] }
0x1556   : > { %v3255_v63 = vpop.f32.mrb[30].mxu1 }
0x1557   : > { %v3259_v0 = vmul.f32 0.35355338, %v3255_v63  ;;  %v7961_v1 = vpop.f32.mrb[31].mxu1  ;;  %v3422_v2 = vpop.f32.mrb[20].mxu0  ;;  %v8354_v63 = vpack.c.bf16 %v3098_v61, %v3097_v59 }
0x1558   : > { %v3426_v4 = vmul.f32 0.35355338, %v3422_v2  ;;  %v7971_v5 = vpop.f32.mrb[21].mxu0 }
0x1559   : > { %v3260_v7 = vsel %vm3181_vm7, 1e-09, %v3259_v0  ;;  %8355 = vmatpush3.bf16.msra.mxu0 %v8354_v63  ;;  %v3099_v5 = vld [vmem:[%s9954_s9 + $0x10] sm:$0xff] }
0x155a   : > { %v3261_v9 = vsel %vm1064_vm2, %v3260_v7, -inf  ;;  %v3427_v10 = vsel %vm3181_vm7, 1e-09, %v3426_v4  ;;  %8356 = vmatprep.subr.bf16.mxu0 %v8743_v3 }
0x155b   : > { %3262 = vmax.xlane.f32.xlu1 %v3261_v9  ;;  %v3589_v12 = vpop.f32.mrb[22].mxu0  ;;  %v3428_v13 = vsel %vm1064_vm2, %v3427_v10, -inf }
0x155c   : > { %v3593_v14 = vmul.f32 0.35355338, %v3589_v12  ;;  %3429 = vmax.xlane.f32.xlu0 %v3428_v13  ;;  %v7981_v11 = vpop.f32.mrb[23].mxu0 }
0x155d   : > { %v7412_v11 = vld [vmem:[%s9918_s30 + $0x1] ss:$0 sm:$0xff]  ;;  %s9959_s30 = sld [smem:[#allocation21_spill]] }
0x155e   : > { %v3594_v15 = vsel %vm3181_vm7, 1e-09, %v3593_v14 }
0x155f   : > { %v3756_v16 = vpop.f32.mrb[24].mxu0  ;;  %v3595_v17 = vsel %vm1064_vm2, %v3594_v15, -inf }
0x1560   : > { %v3760_v18 = vmul.f32 0.35355338, %v3756_v16  ;;  %3596 = vmax.xlane.f32.xlu0 %v3595_v17  ;;  %v7991_v38 = vpop.f32.mrb[25].mxu0 }
0x1562   : > { %v3761_v19 = vsel %vm3181_vm7, 1e-09, %v3760_v18 }
0x1563   : > { %v3762_v20 = vsel %vm1064_vm2, %v3761_v19, -inf }
0x1564   : > { %3763 = vmax.xlane.f32.xlu1 %v3762_v20 }
0x1575   : > { %3439 = vrot.lane.b32.xlu1 %v9275_v52, %s9943_s2 }
0x15e8   : > { %v3263_v21 = vpop.xlane.xlu1 %3262 }
0x15e9   : > { %v3264_v22 = vsub.f32 %v3260_v7, %v3263_v21  ;;  %v3430_v23 = vpop.xlane.xlu0 %3429  ;;  %v3100_v7 = vld [vmem:[%s9954_s9 + $0x18] sm:$0xff] }
0x15ea   : > { %v3431_v24 = vsub.f32 %v3427_v10, %v3430_v23  ;;  %v8357_v9 = vpack.c.bf16 %v3100_v7, %v3099_v5  ;;  %v7430_v5 = vld [vmem:[%s9959_s30] ss:$0 sm:$0xff] }
0x15eb   : > { %v3265_v25 = vmul.f32 1.442695, %v3264_v22 }
0x15ec   : > { %v3432_v26 = vmul.f32 1.442695, %v3431_v24  ;;  %8358 = vmatpush3.bf16.msra.mxu0 %v8357_v9 }
0x15ed   : > { %8572 = vpow2.f32 %v3265_v25  ;;  %v3597_v37 = vpop.xlane.xlu0 %3596  ;;  %8365 = vmatprep.subr.bf16.mxu0 %v8743_v3 }
0x15ee   : > { %8574 = vpow2.f32 %v3432_v26  ;;  %v3598_v39 = vsub.f32 %v3594_v15, %v3597_v37  ;;  %v3073_v15 = vadd.f32 %v7412_v11, %v9312_v60  ;;  %v7428_v37 = vld [vmem:[%s9956_s17] ss:$0 sm:$0xff] }
0x15f0   : > { %v3599_v40 = vmul.f32 1.442695, %v3598_v39  ;;  %v3076_v16 = vadd.f32 %v3073_v15, %v9249_v36 }
0x15f1   : > { %v3764_v27 = vpop.xlane.xlu1 %3763 }
0x15f2   : > { %v3765_v28 = vsub.f32 %v3761_v19, %v3764_v27  ;;  %v3077_v17 = vadd.f32 %v3076_v16, %v9249_v36  ;;  %v3962_v27 = vld [vmem:[%s9955_s14] sm:$0xff] }
0x15f3   : > { %v9444_v16 = vld [vmem:[%s965_s28] sm:$0xff]  ;;  %s9962_s28 = smov %s9961_s15 }
0x15f4   : > { %v3766_v29 = vmul.f32 1.442695, %v3765_v28  ;;  %v3078_v18 = vsel %vm986_vm1, %v3077_v17, 0.0  ;;  %v3963_v28 = vld [vmem:[%s9955_s14 + $0x8] sm:$0xff]  ;;  %vm4130_vm8 = vcmp.eq.s32.totalorder %v9444_v16, 0 }
0x15f5   : > { %v3440_v44 = vpop.permute.xlu1 %3439 }
0x15f6   : > { %8576 = vpow2.f32 %v3766_v29  ;;  %v8366_v29 = vpack.c.bf16 %v3963_v28, %v3962_v27 }
0x15f7   : > { %v8573_v30 = vpop.eup %8572  ;;  %8578 = vpow2.f32 %v3599_v40 }
0x15f8   : > { %v8575_v31 = vpop.eup %8574  ;;  %v3267_v32 = vsel %vm1064_vm2, %v8573_v30, 0.0 }
0x15f9   : > { %3268 = vadd.xlane.f32.xlu0 %v3267_v32  ;;  %v3434_v33 = vsel %vm1064_vm2, %v8575_v31, 0.0 }
0x15fa   : > { %3435 = vadd.xlane.f32.xlu1 %v3434_v33 }
0x1600   : > { %v8577_v34 = vpop.eup %8576 }
0x1601   : > { %v3768_v35 = vsel %vm1064_vm2, %v8577_v34, 0.0  ;;  %v8579_v42 = vpop.eup %8578 }
0x1602   : > { %3769 = vadd.xlane.f32.xlu1 %v3768_v35  ;;  %v3601_v43 = vsel %vm1064_vm2, %v8579_v42, 0.0 }
0x160f   : > { %3272 = vrot.lane.b32.xlu0 %v9275_v52, %s9944_s22 }
0x1613   : > { %3606 = vrot.lane.b32.xlu1 %v9275_v52, %s9945_s29 }
0x162e   : > { %3602 = vadd.xlane.f32.xlu0 %v3601_v43 }
0x1644   : > { %3773 = vrot.lane.b32.xlu0 %v9275_v52, %s9946_s11 }
0x1686   : > { %v3269_v45 = vpop.xlane.xlu0 %3268 }
0x1687   : > { %8580 = vrcp.f32 %v3269_v45  ;;  %v3436_v46 = vpop.xlane.xlu1 %3435 }
0x1688   : > { %8582 = vrcp.f32 %v3436_v46 }
0x168a   : > { %v3273_v47 = vpop.permute.xlu0 %3272 }
0x168b   : > { %7963 = vmatpush3.msra.mxu1 %v3273_v47 }
0x168c   : > { %7972 = vmatprep.subr.mxu1 %v8745_v6 }
0x168f   : > { %v3770_v50 = vpop.xlane.xlu1 %3769 }
0x1691   : > { %v8581_v48 = vpop.eup %8580 }
0x1692   : > { %v3271_v49 = vmul.f32 %v8581_v48, %v8573_v30  ;;  %v8583_v51 = vpop.eup %8582  ;;  %v3964_v30 = vld [vmem:[%s9955_s14 + $0x10] sm:$0xff] }
0x1693   : > { %v3438_v52 = vmul.f32 %v8583_v51, %v8575_v31  ;;  %v3607_v8 = vpop.permute.xlu1 %3606  ;;  %v3965_v31 = vld [vmem:[%s9955_s14 + $0x18] sm:$0xff]  ;;  %v3957_v51 = vld [vmem:[%s9957_s19] sm:$0xff] }
0x1694   : > { %7965 = vmatmul.mubr.msk.f32.vlgmr.msra.gmra.mrb[32].mxu1 %vm1064_vm2, %v3271_v49  ;;  %v8369_v32 = vpack.c.bf16 %v3965_v31, %v3964_v30 }
0x1695   : > { %7973 = vmatpush3.msra.mxu1 %v3440_v44  ;;  %7974 = vmatprep.mubr.msk.f32.mxu1 %vm8744_vm0, %v8745_v6 }
0x1696   : > { %7982 = vmatprep.subr.mxu1 %v8745_v6 }
0x1698   : > { %7975 = vmatmul.mubr.msk.f32.vlgmr.msra.gmra.mrb[34].mxu1 %vm1064_vm2, %v3438_v52  ;;  %v3958_v52 = vld [vmem:[%s9957_s19 + $0x8] sm:$0xff] }
0x1699   : > { %7983 = vmatpush3.msra.mxu1 %v3607_v8  ;;  %7984 = vmatprep.mubr.msk.f32.mxu1 %vm8744_vm0, %v8745_v6  ;;  %v8360_v8 = vpack.c.bf16 %v3958_v52, %v3957_v51 }
0x169a   : > { %7992 = vmatprep.subr.mxu1 %v8745_v6 }
0x16bb   : > { %v3603_v53 = vpop.xlane.xlu0 %3602 }
0x16bc   : > { %8584 = vrcp.f32 %v3603_v53  ;;  %v3959_v53 = vld [vmem:[%s9957_s19 + $0x10] sm:$0xff] }
0x16bd   : > { %8586 = vrcp.f32 %v3770_v50 }
0x16bf   : > { %v3774_v57 = vpop.permute.xlu0 %3773 }
0x16c6   : > { %v8585_v54 = vpop.eup %8584 }
0x16c7   : > { %v3605_v55 = vmul.f32 %v8585_v54, %v8579_v42  ;;  %v8587_v56 = vpop.eup %8586  ;;  %v3960_v54 = vld [vmem:[%s9957_s19 + $0x18] sm:$0xff] }
0x16c8   : > { %v3772_v58 = vmul.f32 %v8587_v56, %v8577_v34  ;;  %v7432_v56 = vld [vmem:[%s9958_s24] ss:$0 sm:$0xff] }
0x16c9   : > { %7985 = vmatmul.mubr.msk.f32.vlgmr.msra.gmra.mrb[36].mxu1 %vm1064_vm2, %v3605_v55  ;;  %v8363_v55 = vpack.c.bf16 %v3960_v54, %v3959_v53 }
0x16ca   : > { %7993 = vmatpush3.msra.mxu1 %v3774_v57  ;;  %7994 = vmatprep.mubr.msk.f32.mxu1 %vm8744_vm0, %v8745_v6 }
0x16cb   : > { %8359 = vmatprep.subr.bf16.mxu1 %v8743_v3 }
0x16cd   : > { %7995 = vmatmul.mubr.msk.f32.vlgmr.msra.gmra.mrb[38].mxu1 %vm1064_vm2, %v3772_v58 }
0x16ce   : > { %8016 = vmatprep.mubr.msk.f32.mxu1 %vm8744_vm0, %v8745_v6  ;;  %8361 = vmatpush3.bf16.msra.mxu1 %v8360_v8 }
0x16cf   : > { %8362 = vmatprep.subr.bf16.mxu1 %v8743_v3 }
0x16d2   : > { %8364 = vmatpush3.bf16.msra.mxu1 %v8363_v55 }
0x16d3   : > { %8030 = vmatprep.subr.mxu1 %v8745_v6 }
0x1767   : > { %v3344_v0 = vpop.f32.mrb[32].mxu1 }
0x1768   : > { %v7966_v1 = vpop.f32.mrb[33].mxu1 }
0x176b   : > { %v3511_v2 = vpop.f32.mrb[34].mxu1 }
0x176c   : > { %3850 = vrot.lane.b32.xlu1 %v3511_v2, %s9947_s18  ;;  %v7976_v4 = vpop.f32.mrb[35].mxu1 }
0x179c   : > { %v3678_v10 = vpop.f32.mrb[36].mxu1 }
0x179d   : > { %3854 = vrot.lane.b32.xlu0 %v3678_v10, %s9948_s1  ;;  %v7986_v12 = vpop.f32.mrb[37].mxu1 }
0x17a0   : > { %v3845_v13 = vpop.f32.mrb[38].mxu1 }
0x17a1   : > { %3858 = vrot.lane.b32.xlu1 %v3845_v13, %s9949_s7  ;;  %v7996_v14 = vpop.f32.mrb[39].mxu1 }
0x17bc   : > { %3079 = vadd.xlane.f32.xlu0 %v3078_v18 }
0x17de   : > { %v3851_v38 = vpop.permute.xlu1 %3850 }
0x17df   : > { %v3861_v20 = vsel %vm1064_vm2, %v3344_v0, %v3851_v38 }
0x180f   : > { %v3855_v19 = vpop.permute.xlu0 %3854 }
0x1810   : > { %v3862_v21 = vsel %vm1742_vm4, %v3861_v20, %v3855_v19 }
0x1813   : > { %v3859_v22 = vpop.permute.xlu1 %3858 }
0x1814   : > { %v3863_v60 = vsel %vm1744_vm5, %v3862_v21, %v3859_v22 }
0x1815   : > { %8006 = vmatmul.mubr.msk.f32.vlgmr.msra.gmra.mrb[26].mxu0 %vm986_vm1, %v3863_v60 }
0x1816   : > { %8027 = vmatprep.mubr.msk.f32.mxu0 %vm8744_vm0, %v8745_v6  ;;  %8367 = vmatpush3.bf16.msra.mxu0 %v8366_v29 }
0x1817   : > { %8368 = vmatprep.subr.bf16.mxu0 %v8743_v3 }
0x181a   : > { %8370 = vmatpush3.bf16.msra.mxu0 %v8369_v32 }
0x181b   : > { %8040 = vmatprep.subr.mxu0 %v8745_v6 }
0x1849   : > { %v3080_v36 = vpop.xlane.xlu0 %3079 }
0x184a   : > { %v3081_v23 = vmul.f32 0.03125, %v3080_v36 }
0x184c   : > { %v3082_v24 = vsub.f32 %v3077_v17, %v3081_v23 }
0x184e   : > { %v3083_v25 = vmul.f32 %v3082_v24, %v3082_v24 }
0x1850   : > { %v3084_v26 = vsel %vm986_vm1, %v3083_v25, 0.0 }
0x1851   : > { %3085 = vadd.xlane.f32.xlu0 %v3084_v26 }
0x18de   : > { %v3086_v33 = vpop.xlane.xlu0 %3085 }
0x18df   : > { %v3087_v34 = vmul.f32 0.03125, %v3086_v33 }
0x18e1   : > { %v3088_v35 = vadd.f32 1e-06, %v3087_v34 }
0x18e3   : > { %8588 = vrsqrt.f32 %v3088_v35 }
0x18e8   : > { %v3939_v39 = vpop.f32.mrb[26].mxu0 }
0x18e9   : > { %v3940_v40 = vadd.f32 %v7428_v37, %v3939_v39  ;;  %v8007_v42 = vpop.f32.mrb[27].mxu0 }
0x18eb   : > { %v3943_v43 = vadd.f32 %v3940_v40, %v9260_v41 }
0x18ed   : > { %v8589_v44 = vpop.eup %8588  ;;  %v3944_v45 = vsel %vm986_vm1, %v3943_v43, 0.0 }
0x18ee   : > { %3945 = vadd.xlane.f32.xlu1 %v3944_v45  ;;  %v9389_v46 = vmul.f32 %v8589_v44, %v3082_v24 }
0x18f0   : > { %8028 = vmatmul.mubr.msk.f32.vlgmr.msra.gmra.mrb[28].mxu0 %vm986_vm1, %v9389_v46 }
0x18f1   : > { %8042 = vmatprep.mubr.msk.f32.mxu0 %vm8744_vm0, %v8745_v6 }
0x197b   : > { %v3946_v47 = vpop.xlane.xlu1 %3945 }
0x197c   : > { %v3947_v48 = vmul.f32 0.03125, %v3946_v47 }
0x197e   : > { %v3948_v49 = vsub.f32 %v3943_v43, %v3947_v48 }
0x1980   : > { %v3949_v50 = vmul.f32 %v3948_v49, %v3948_v49 }
0x1982   : > { %v3950_v41 = vsel %vm986_vm1, %v3949_v50, 0.0 }
0x1983   : > { %3951 = vadd.xlane.f32.xlu0 %v3950_v41 }
0x19c3   : > { %v4126_v57 = vpop.f32.mrb[28].mxu0 }
0x19c4   : > { %v9403_v58 = vadd.f32 %v7432_v56, %v4126_v57  ;;  %v8029_v59 = vpop.f32.mrb[29].mxu0 }
0x19c6   : > { %4298 = vrot.lane.b32.xlu1 %v9403_v58, %s9939_s5 }
0x19ca   : > { %4465 = vrot.lane.b32.xlu1 %v9403_v58, %s9938_s26 }
0x1a10   : > { %v3952_v61 = vpop.xlane.xlu0 %3951 }
0x1a11   : > { %v3953_v63 = vmul.f32 0.03125, %v3952_v61 }
0x1a13   : > { %v3954_v0 = vadd.f32 1e-06, %v3953_v63 }
0x1a15   : > { %8590 = vrsqrt.f32 %v3954_v0 }
0x1a1f   : > { %v8591_v1 = vpop.eup %8590 }
0x1a20   : > { %v9409_v2 = vmul.f32 %v8591_v1, %v3948_v49 }
0x1a22   : > { %8017 = vmatmul.mubr.msk.f32.vlgmr.msra.gmra.mrb[40].mxu1 %vm986_vm1, %v9409_v2 }
0x1a23   : > { %8031 = vmatpush3.xpose.msk.msra.mxu1 %vm1064_vm2, %v9403_v58  ;;  %8032 = vmatprep.mubr.msk.f32.mxu1 %vm8744_vm0, %v8745_v6 }
0x1a24   : > { %8035 = vmatprep.subr.mxu1 %v8745_v6 }
0x1a38   : > { %v4299_v4 = vpop.permute.xlu1 %4298 }
0x1a39   : > { %8041 = vmatpush3.xpose.msk.msra.mxu0 %vm1064_vm2, %v4299_v4 }
0x1a3a   : > { %8050 = vmatprep.subr.mxu0 %v8745_v6 }
0x1a3c   : > { %v4466_v12 = vpop.permute.xlu1 %4465 }
0x1af5   : > { %v4047_v7 = vpop.f32.mrb[40].mxu1 }
0x1af6   : > { %v4048_v9 = vadd.f32 %v7430_v5, %v4047_v7  ;;  %v8018_v10 = vpop.f32.mrb[41].mxu1 }
0x1af8   : > { %4296 = vrot.lane.b32.xlu0 %v4048_v9, %s9939_s5  ;;  %4463 = vrot.lane.b32.xlu1 %v4048_v9, %s9938_s26 }
0x1af9   : > { %8033 = vmatmul.mubr.msk.f32.vlgmr.msra.gmra.mrb[42].mxu1 %vm1064_vm2, %v4048_v9 }
0x1afa   : > { %8037 = vmatprep.mubr.msk.f32.mxu1 %vm8744_vm0, %v8745_v6 }
0x1afc   : > { %4632 = vrot.lane.b32.xlu0 %v9403_v58, %s9940_s23  ;;  %4630 = vrot.lane.b32.xlu1 %v4048_v9, %s9940_s23 }
0x1b6a   : > { %v4297_v13 = vpop.permute.xlu0 %4296  ;;  %v4464_v14 = vpop.permute.xlu1 %4463 }
0x1b6b   : > { %8043 = vmatmul.mubr.msk.f32.vlgmr.msra.gmra.mrb[30].mxu0 %vm1064_vm2, %v4297_v13 }
0x1b6c   : > { %8051 = vmatpush3.xpose.msk.msra.mxu0 %vm1064_vm2, %v4466_v12  ;;  %8052 = vmatprep.mubr.msk.f32.mxu0 %vm8744_vm0, %v8745_v6 }
0x1b6d   : > { %8060 = vmatprep.subr.mxu0 %v8745_v6 }
0x1b6e   : > { %v4633_v11 = vpop.permute.xlu0 %4632  ;;  %v4631_v15 = vpop.permute.xlu1 %4630 }
0x1b6f   : > { %8053 = vmatmul.mubr.msk.f32.vlgmr.msra.gmra.mrb[32].mxu0 %vm1064_vm2, %v4464_v14 }
0x1b70   : > { %8061 = vmatpush3.xpose.msk.msra.mxu0 %vm1064_vm2, %v4633_v11  ;;  %8062 = vmatprep.mubr.msk.f32.mxu0 %vm8744_vm0, %v8745_v6 }
0x1b71   : > { %8371 = vmatprep.subr.bf16.mxu0 %v8743_v3 }
0x1b73   : > { %8063 = vmatmul.mubr.msk.f32.vlgmr.msra.gmra.mrb[34].mxu0 %vm1064_vm2, %v4631_v15 }
0x1b74   : > { %8078 = vmatprep.mubr.msk.f32.mxu0 %vm8744_vm0, %v8745_v6 }
0x1bcc   : > { %v4203_v17 = vpop.f32.mrb[42].mxu1 }
0x1bcd   : > { %v4207_v18 = vmul.f32 0.35355338, %v4203_v17  ;;  %v8034_v38 = vpop.f32.mrb[43].mxu1  ;;  %v3967_v17 = vld [vmem:[%s9961_s15] sm:$0xff]  ;;  %s9964_s15 = sld [smem:[#allocation26_spill]] }
0x1bcf   : > { %v4208_v19 = vsel %vm4130_vm8, 1e-09, %v4207_v18  ;;  %v3968_v18 = vld [vmem:[%s9962_s28 + $0x8] sm:$0xff] }
0x1bd0   : > { %v4209_v20 = vsel %vm1064_vm2, %v4208_v19, -inf  ;;  %v8372_v38 = vpack.c.bf16 %v3968_v18, %v3967_v17 }
0x1bd1   : > { %4210 = vmax.xlane.f32.xlu0 %v4209_v20  ;;  %v3970_v20 = vld [vmem:[%s9962_s28 + $0x18] sm:$0xff] }
0x1bd2   : > { %8373 = vmatpush3.bf16.msra.mxu0 %v8372_v38 }
0x1bd3   : > { %8374 = vmatprep.subr.bf16.mxu0 %v8743_v3  ;;  %s9965_s4 = smov %s9964_s15 }
0x1c3e   : > { %v4370_v21 = vpop.f32.mrb[30].mxu0 }
0x1c3f   : > { %v4374_v22 = vmul.f32 0.35355338, %v4370_v21  ;;  %v8044_v60 = vpop.f32.mrb[31].mxu0 }
0x1c41   : > { %v4375_v36 = vsel %vm4130_vm8, 1e-09, %v4374_v22 }
0x1c42   : > { %v4537_v23 = vpop.f32.mrb[32].mxu0  ;;  %v4376_v24 = vsel %vm1064_vm2, %v4375_v36, -inf }
0x1c43   : > { %v4541_v25 = vmul.f32 0.35355338, %v4537_v23  ;;  %4377 = vmax.xlane.f32.xlu1 %v4376_v24  ;;  %v8054_v26 = vpop.f32.mrb[33].mxu0 }
0x1c45   : > { %v4542_v27 = vsel %vm4130_vm8, 1e-09, %v4541_v25 }
0x1c46   : > { %v4704_v28 = vpop.f32.mrb[34].mxu0  ;;  %v4543_v29 = vsel %vm1064_vm2, %v4542_v27, -inf }
0x1c47   : > { %v4708_v30 = vmul.f32 0.35355338, %v4704_v28  ;;  %4544 = vmax.xlane.f32.xlu0 %v4543_v29  ;;  %v8064_v31 = vpop.f32.mrb[35].mxu0 }
0x1c49   : > { %v4709_v32 = vsel %vm4130_vm8, 1e-09, %v4708_v30 }
0x1c4a   : > { %v4710_v33 = vsel %vm1064_vm2, %v4709_v32, -inf }
0x1c4b   : > { %4711 = vmax.xlane.f32.xlu0 %v4710_v33 }
0x1c54   : > { %4220 = vrot.lane.b32.xlu1 %v9403_v58, %s9952_s8 }
0x1c5e   : > { %v4211_v34 = vpop.xlane.xlu0 %4210 }
0x1c5f   : > { %v4212_v35 = vsub.f32 %v4208_v19, %v4211_v34  ;;  %v3969_v19 = vld [vmem:[%s9962_s28 + $0x10] sm:$0xff] }
0x1c60   : > { %v8375_v21 = vpack.c.bf16 %v3970_v20, %v3969_v19 }
0x1c61   : > { %v4213_v37 = vmul.f32 1.442695, %v4212_v35 }
0x1c62   : > { %8376 = vmatpush3.bf16.msra.mxu0 %v8375_v21 }
0x1c63   : > { %8592 = vpow2.f32 %v4213_v37  ;;  %8383 = vmatprep.subr.bf16.mxu0 %v8743_v3 }
0x1c6d   : > { %v8593_v39 = vpop.eup %8592 }
0x1c6e   : > { %v4215_v40 = vsel %vm1064_vm2, %v8593_v39, 0.0 }
0x1c78   : > { %4216 = vadd.xlane.f32.xlu1 %v4215_v40 }
0x1cd0   : > { %v4378_v42 = vpop.xlane.xlu1 %4377 }
0x1cd1   : > { %v4379_v43 = vsub.f32 %v4375_v36, %v4378_v42 }
0x1cd3   : > { %v4380_v44 = vmul.f32 1.442695, %v4379_v43 }
0x1cd4   : > { %v4221_v45 = vpop.permute.xlu1 %4220  ;;  %v4545_v47 = vpop.xlane.xlu0 %4544 }
0x1cd5   : > { %8594 = vpow2.f32 %v4380_v44  ;;  %v4546_v48 = vsub.f32 %v4542_v27, %v4545_v47  ;;  %8036 = vmatpush3.msra.mxu1 %v4221_v45 }
0x1cd6   : > { %8045 = vmatprep.subr.mxu1 %v8745_v6 }
0x1cd7   : > { %v4547_v49 = vmul.f32 1.442695, %v4546_v48  ;;  %v4906_v48 = vld [vmem:[%s9964_s15] sm:$0xff]  ;;  %s9967_s15 = sld [smem:[#allocation27_spill]] }
0x1cd8   : > { %v4712_v50 = vpop.xlane.xlu0 %4711 }
0x1cd9   : > { %8596 = vpow2.f32 %v4547_v49  ;;  %v4713_v41 = vsub.f32 %v4709_v32, %v4712_v50  ;;  %v7446_v32 = vld [vmem:[%s9963_s16] ss:$0 sm:$0xff]  ;;  %v4907_v49 = vld [vmem:[%s9965_s4 + $0x8] sm:$0xff]  ;;  %v4908_v50 = vld [vmem:[%s9965_s4 + $0x10] sm:$0xff] }
0x1cdb   : > { %v4714_v51 = vmul.f32 1.442695, %v4713_v41  ;;  %v8378_v41 = vpack.c.bf16 %v4907_v49, %v4906_v48 }
0x1cdd   : > { %8598 = vpow2.f32 %v4714_v51  ;;  %s9968_s27 = smov %s9967_s15 }
0x1cdf   : > { %v8595_v52 = vpop.eup %8594 }
0x1ce0   : > { %v4382_v8 = vsel %vm1064_vm2, %v8595_v52, 0.0 }
0x1ce1   : > { %4383 = vadd.xlane.f32.xlu0 %v4382_v8  ;;  %v4912_v8 = vld [vmem:[%s9966_s0 + $0x8] sm:$0xff] }
0x1ce3   : > { %v8597_v53 = vpop.eup %8596 }
0x1ce4   : > { %v4549_v54 = vsel %vm1064_vm2, %v8597_v53, 0.0 }
0x1ce5   : > { %4550 = vadd.xlane.f32.xlu1 %v4549_v54 }
0x1ce7   : > { %v8599_v55 = vpop.eup %8598 }
0x1ce8   : > { %v4716_v56 = vsel %vm1064_vm2, %v8599_v55, 0.0 }
0x1ce9   : > { %4717 = vadd.xlane.f32.xlu0 %v4716_v56 }
0x1cf6   : > { %4554 = vrot.lane.b32.xlu1 %v9403_v58, %s9941_s13 }
0x1cfa   : > { %4721 = vrot.lane.b32.xlu1 %v9403_v58, %s9942_s25 }
0x1cff   : > { %4387 = vrot.lane.b32.xlu0 %v9403_v58, %s9951_s3 }
0x1d05   : > { %v4217_v57 = vpop.xlane.xlu1 %4216 }
0x1d06   : > { %8600 = vrcp.f32 %v4217_v57  ;;  %v4915_v57 = vld [vmem:[%s9966_s0 + $0x20] sm:$0xff] }
0x1d10   : > { %v8601_v59 = vpop.eup %8600 }
0x1d11   : > { %v4219_v61 = vmul.f32 %v8601_v59, %v8593_v39  ;;  %v4916_v59 = vld [vmem:[%s9966_s0 + $0x28] sm:$0xff] }
0x1d13   : > { %8038 = vmatmul.mubr.msk.f32.vlgmr.msra.gmra.mrb[44].mxu1 %vm1064_vm2, %v4219_v61  ;;  %v8390_v61 = vpack.c.bf16 %v4916_v59, %v4915_v57 }
0x1d14   : > { %8047 = vmatprep.mubr.msk.f32.mxu1 %vm8744_vm0, %v8745_v6 }
0x1d6e   : > { %v4384_v63 = vpop.xlane.xlu0 %4383 }
0x1d6f   : > { %8602 = vrcp.f32 %v4384_v63 }
0x1d72   : > { %v4551_v0 = vpop.xlane.xlu1 %4550 }
0x1d73   : > { %8604 = vrcp.f32 %v4551_v0 }
0x1d76   : > { %v4718_v1 = vpop.xlane.xlu0 %4717  ;;  %v4555_v7 = vpop.permute.xlu1 %4554 }
0x1d77   : > { %8606 = vrcp.f32 %v4718_v1 }
0x1d79   : > { %v8603_v4 = vpop.eup %8602 }
0x1d7a   : > { %v4386_v5 = vmul.f32 %v8603_v4, %v8595_v52  ;;  %v4388_v9 = vpop.permute.xlu0 %4387  ;;  %v4722_v12 = vpop.permute.xlu1 %4721  ;;  %v4911_v52 = vld [vmem:[%s9966_s0] sm:$0xff] }
0x1d7b   : > { %8046 = vmatpush3.msra.mxu1 %v4388_v9  ;;  %v8384_v54 = vpack.c.bf16 %v4912_v8, %v4911_v52  ;;  %v4918_v9 = vld [vmem:[%s9966_s0 + $0x38] sm:$0xff] }
0x1d7c   : > { %8048 = vmatmul.mubr.msk.f32.vlgmr.msra.gmra.mrb[46].mxu1 %vm1064_vm2, %v4386_v5  ;;  %8055 = vmatprep.subr.mxu1 %v8745_v6 }
0x1d7d   : > { %v8605_v58 = vpop.eup %8604  ;;  %8056 = vmatpush3.msra.mxu1 %v4555_v7  ;;  %8057 = vmatprep.mubr.msk.f32.mxu1 %vm8744_vm0, %v8745_v6  ;;  %v4917_v7 = vld [vmem:[%s9966_s0 + $0x30] sm:$0xff] }
0x1d7e   : > { %v4553_v10 = vmul.f32 %v8605_v58, %v8597_v53  ;;  %8065 = vmatprep.subr.mxu1 %v8745_v6  ;;  %v4913_v53 = vld [vmem:[%s9966_s0 + $0x10] sm:$0xff]  ;;  %v8393_v58 = vpack.c.bf16 %v4918_v9, %v4917_v7 }
0x1d80   : > { %8058 = vmatmul.mubr.msk.f32.vlgmr.msra.gmra.mrb[48].mxu1 %vm1064_vm2, %v4553_v10  ;;  %v7448_v10 = vld [vmem:[%s9967_s15] ss:$0 sm:$0xff] }
0x1d81   : > { %v8607_v13 = vpop.eup %8606  ;;  %8066 = vmatpush3.msra.mxu1 %v4722_v12  ;;  %8067 = vmatprep.mubr.msk.f32.mxu1 %vm8744_vm0, %v8745_v6 }
0x1d82   : > { %v4720_v14 = vmul.f32 %v8607_v13, %v8599_v55  ;;  %8377 = vmatprep.subr.bf16.mxu1 %v8743_v3  ;;  %v4914_v55 = vld [vmem:[%s9966_s0 + $0x18] sm:$0xff] }
0x1d83   : > { %v8387_v56 = vpack.c.bf16 %v4914_v55, %v4913_v53 }
0x1d84   : > { %8068 = vmatmul.mubr.msk.f32.vlgmr.msra.gmra.mrb[50].mxu1 %vm1064_vm2, %v4720_v14 }
0x1d85   : > { %8089 = vmatprep.mubr.msk.f32.mxu1 %vm8744_vm0, %v8745_v6  ;;  %8379 = vmatpush3.bf16.msra.mxu1 %v8378_v41 }
0x1d86   : > { %8380 = vmatprep.subr.bf16.mxu1 %v8743_v3 }
0x1de6   : > { %v4292_v11 = vpop.f32.mrb[44].mxu1 }
0x1de7   : > { %v8039_v15 = vpop.f32.mrb[45].mxu1 }
0x1de8   : > { %v7450_v15 = vld [vmem:[%s8899_s21] ss:$0 sm:$0xff] }
0x1e4f   : > { %v4459_v22 = vpop.f32.mrb[46].mxu1 }
0x1e50   : > { %4798 = vrot.lane.b32.xlu0 %v4459_v22, %s9947_s18  ;;  %v8049_v60 = vpop.f32.mrb[47].mxu1 }
0x1e53   : > { %v4626_v36 = vpop.f32.mrb[48].mxu1 }
0x1e54   : > { %4802 = vrot.lane.b32.xlu1 %v4626_v36, %s9948_s1  ;;  %v8059_v23 = vpop.f32.mrb[49].mxu1 }
0x1e57   : > { %v4793_v24 = vpop.f32.mrb[50].mxu1 }
0x1e58   : > { %4806 = vrot.lane.b32.xlu0 %v4793_v24, %s9949_s7  ;;  %v8069_v25 = vpop.f32.mrb[51].mxu1 }
0x1e59   : > { %v7452_v25 = vld [vmem:[%s8834_s6 + $0x20] sm:$0xff] }
0x1ec2   : > { %v4799_v26 = vpop.permute.xlu0 %4798 }
0x1ec3   : > { %v4809_v28 = vsel %vm1064_vm2, %v4292_v11, %v4799_v26  ;;  %v7453_v26 = vld [vmem:[%s8834_s6 + $0x28] sm:$0xff] }
0x1ec6   : > { %v4803_v27 = vpop.permute.xlu1 %4802 }
0x1ec7   : > { %v4810_v29 = vsel %vm1742_vm4, %v4809_v28, %v4803_v27  ;;  %v7454_v27 = vld [vmem:[%s8834_s6 + $0x30] sm:$0xff]  ;;  %v8396_v28 = vpack.c.bf16 %v7453_v26, %v7452_v25 }
0x1eca   : > { %v4807_v30 = vpop.permute.xlu0 %4806 }
0x1ecb   : > { %v4811_v31 = vsel %vm1744_vm5, %v4810_v29, %v4807_v30  ;;  %v7455_v29 = vld [vmem:[%s8834_s6 + $0x38] sm:$0xff] }
0x1ecc   : > { %8079 = vmatmul.mubr.msk.f32.vlgmr.msra.gmra.mrb[36].mxu0 %vm986_vm1, %v4811_v31  ;;  %v8399_v30 = vpack.c.bf16 %v7455_v29, %v7454_v27 }
0x1ecd   : > { %8108 = vmatprep.mubr.msk.f32.mxu0 %vm8744_vm0, %v8745_v6  ;;  %8385 = vmatpush3.bf16.msra.mxu0 %v8384_v54 }
0x1ece   : > { %8386 = vmatprep.subr.bf16.mxu0 %v8743_v3 }
0x1ed1   : > { %8388 = vmatpush3.bf16.msra.mxu0 %v8387_v56 }
0x1ed2   : > { %8389 = vmatprep.subr.bf16.mxu0 %v8743_v3 }
0x1ed5   : > { %8391 = vmatpush3.bf16.msra.mxu0 %v8390_v61 }
0x1ed6   : > { %8392 = vmatprep.subr.bf16.mxu0 %v8743_v3 }
0x1ed9   : > { %8394 = vmatpush3.bf16.msra.mxu0 %v8393_v58 }
0x1eda   : > { %8132 = vmatprep.subr.mxu0 %v8745_v6 }
0x1f9f   : > { %v4887_v33 = vpop.f32.mrb[36].mxu0 }
0x1fa0   : > { %v4888_v34 = vadd.f32 %v7446_v32, %v4887_v33  ;;  %v8080_v35 = vpop.f32.mrb[37].mxu0 }
0x1fa2   : > { %v4891_v37 = vadd.f32 %v4888_v34, %v9409_v2 }
0x1fa4   : > { %v4892_v39 = vadd.f32 %v4891_v37, %v9409_v2  ;;  %v4909_v2 = vld [vmem:[%s9965_s4 + $0x18] sm:$0xff]  ;;  %v7462_v37 = vld [vmem:[%s8839_s12 + $0x1] ss:$0 sm:$0xff] }
0x1fa5   : > { %v8381_v51 = vpack.c.bf16 %v4909_v2, %v4908_v50 }
0x1fa6   : > { %v4893_v40 = vsel %vm986_vm1, %v4892_v39, 0.0 }
0x1fa7   : > { %4894 = vadd.xlane.f32.xlu1 %v4893_v40  ;;  %8382 = vmatpush3.bf16.msra.mxu1 %v8381_v51 }
0x1fa8   : > { %8395 = vmatprep.subr.bf16.mxu1 %v8743_v3 }
0x2034   : > { %v4895_v42 = vpop.xlane.xlu1 %4894 }
0x2035   : > { %v4896_v43 = vmul.f32 0.03125, %v4895_v42 }
0x2037   : > { %v4897_v44 = vsub.f32 %v4892_v39, %v4896_v43 }
0x2039   : > { %v4898_v45 = vmul.f32 %v4897_v44, %v4897_v44 }
0x203b   : > { %v4899_v47 = vsel %vm986_vm1, %v4898_v45, 0.0 }
0x203c   : > { %4900 = vadd.xlane.f32.xlu0 %v4899_v47 }
0x20c9   : > { %v4901_v63 = vpop.xlane.xlu0 %4900 }
0x20ca   : > { %v4902_v0 = vmul.f32 0.03125, %v4901_v63 }
0x20cc   : > { %v4903_v1 = vadd.f32 1e-06, %v4902_v0 }
0x20ce   : > { %8608 = vrsqrt.f32 %v4903_v1 }
0x20d8   : > { %v8609_v4 = vpop.eup %8608 }
0x20d9   : > { %v4905_v5 = vmul.f32 %v8609_v4, %v4897_v44 }
0x20db   : > { %8090 = vmatmul.mubr.msk.f32.vlgmr.msra.gmra.mrb[52].mxu1 %vm986_vm1, %v4905_v5 }
0x20dc   : > { %8119 = vmatprep.mubr.msk.f32.mxu1 %vm8744_vm0, %v8745_v6  ;;  %8397 = vmatpush3.bf16.msra.mxu1 %v8396_v28 }
0x20dd   : > { %8398 = vmatprep.subr.bf16.mxu1 %v8743_v3 }
0x20e0   : > { %8400 = vmatpush3.bf16.msra.mxu1 %v8399_v30 }
0x20e1   : > { %8122 = vmatprep.subr.mxu1 %v8745_v6 }
0x21ae   : > { %v4995_v12 = vpop.f32.mrb[52].mxu1 }
0x21af   : > { %v4996_v13 = vadd.f32 %v7448_v10, %v4995_v12  ;;  %v8091_v14 = vpop.f32.mrb[53].mxu1 }
0x21b1   : > { %v4999_v11 = vmax.f32 %v4996_v13, 0.0 }
0x21b3   : > { %8109 = vmatmul.mubr.msk.f32.vlgmr.msra.gmra.mrb[38].mxu0 %vm1941_vm6, %v4999_v11 }
0x21b4   : > { %8134 = vmatprep.mubr.msk.f32.mxu0 %vm8744_vm0, %v8745_v6 }
0x2286   : > { %v5075_v17 = vpop.f32.mrb[38].mxu0 }
0x2287   : > { %v5076_v18 = vadd.f32 %v7450_v15, %v5075_v17  ;;  %v8110_v38 = vpop.f32.mrb[39].mxu0 }
0x2289   : > { %v5079_v19 = vadd.f32 %v5076_v18, %v4905_v5 }
0x228b   : > { %v5080_v20 = vadd.f32 %v5079_v19, %v4905_v5 }
0x228d   : > { %v5081_v21 = vsel %vm986_vm1, %v5080_v20, 0.0 }
0x228e   : > { %5082 = vadd.xlane.f32.xlu0 %v5081_v21 }
0x231b   : > { %v5083_v22 = vpop.xlane.xlu0 %5082 }
0x231c   : > { %v5084_v60 = vmul.f32 0.03125, %v5083_v22 }
0x231e   : > { %v5085_v36 = vsub.f32 %v5080_v20, %v5084_v60 }
0x2320   : > { %v5086_v23 = vmul.f32 %v5085_v36, %v5085_v36 }
0x2322   : > { %v5087_v24 = vsel %vm986_vm1, %v5086_v23, 0.0 }
0x2323   : > { %5088 = vadd.xlane.f32.xlu1 %v5087_v24 }
0x23b0   : > { %v5089_v31 = vpop.xlane.xlu1 %5088 }
0x23b1   : > { %v5090_v32 = vmul.f32 0.03125, %v5089_v31 }
0x23b3   : > { %v5091_v33 = vadd.f32 1e-06, %v5090_v32 }
0x23b5   : > { %8610 = vrsqrt.f32 %v5091_v33 }
0x23bf   : > { %v8611_v34 = vpop.eup %8610 }
0x23c0   : > { %v9541_v35 = vmul.f32 %v8611_v34, %v5085_v36 }
0x23c2   : > { %8120 = vmatmul.mubr.msk.f32.vlgmr.msra.gmra.mrb[54].mxu1 %vm986_vm1, %v9541_v35 }
0x23c3   : > { %8124 = vmatprep.mubr.msk.f32.mxu1 %vm8744_vm0, %v8745_v6 }
0x2495   : > { %v5183_v39 = vpop.f32.mrb[54].mxu1 }
0x2496   : > { %v9548_v40 = vadd.f32 %v7462_v37, %v5183_v39  ;;  %v8121_v42 = vpop.f32.mrb[55].mxu1 }
0x2498   : > { %5355 = vrot.lane.b32.xlu1 %v9548_v40, %s9951_s3  ;;  %5188 = vrot.lane.b32.xlu0 %v9548_v40, %s9952_s8 }
0x249c   : > { %5353 = vrot.lane.b32.xlu1 %v9548_v40, %s9939_s5  ;;  %5522 = vrot.lane.b32.xlu0 %v9548_v40, %s9941_s13 }
0x24a0   : > { %5520 = vrot.lane.b32.xlu1 %v9548_v40, %s9938_s26  ;;  %5689 = vrot.lane.b32.xlu0 %v9548_v40, %s9942_s25 }
0x24a4   : > { %5687 = vrot.lane.b32.xlu1 %v9548_v40, %s9940_s23 }
0x250a   : > { %v5356_v43 = vpop.permute.xlu1 %5355  ;;  %v5189_v44 = vpop.permute.xlu0 %5188 }
0x250b   : > { %8123 = vmatpush3.xpose.msk.msra.mxu1 %vm1064_vm2, %v5189_v44  ;;  %8133 = vmatpush3.xpose.msk.msra.mxu0 %vm1064_vm2, %v5356_v43 }
0x250c   : > { %8142 = vmatprep.subr.mxu0 %v8745_v6  ;;  %8127 = vmatprep.subr.mxu1 %v8745_v6 }
0x250e   : > { %v5354_v45 = vpop.permute.xlu1 %5353  ;;  %8125 = vmatmul.mubr.msk.f32.vlgmr.msra.gmra.mrb[56].mxu1 %vm1064_vm2, %v9548_v40  ;;  %v5523_v47 = vpop.permute.xlu0 %5522 }
0x250f   : > { %8135 = vmatmul.mubr.msk.f32.vlgmr.msra.gmra.mrb[40].mxu0 %vm1064_vm2, %v5354_v45  ;;  %8129 = vmatprep.mubr.msk.f32.mxu1 %vm8744_vm0, %v8745_v6 }
0x2510   : > { %8143 = vmatpush3.xpose.msk.msra.mxu0 %vm1064_vm2, %v5523_v47  ;;  %8144 = vmatprep.mubr.msk.f32.mxu0 %vm8744_vm0, %v8745_v6 }
0x2511   : > { %8152 = vmatprep.subr.mxu0 %v8745_v6 }
0x2512   : > { %v5521_v48 = vpop.permute.xlu1 %5520  ;;  %v5690_v49 = vpop.permute.xlu0 %5689 }
0x2513   : > { %8145 = vmatmul.mubr.msk.f32.vlgmr.msra.gmra.mrb[42].mxu0 %vm1064_vm2, %v5521_v48  ;;  %v7457_v48 = vld [vmem:[%s9954_s9 + $0x20] sm:$0xff] }
0x2514   : > { %8153 = vmatpush3.xpose.msk.msra.mxu0 %vm1064_vm2, %v5690_v49  ;;  %8154 = vmatprep.mubr.msk.f32.mxu0 %vm8744_vm0, %v8745_v6  ;;  %v7458_v49 = vld [vmem:[%s9954_s9 + $0x28] sm:$0xff] }
0x2515   : > { %8401 = vmatprep.subr.bf16.mxu0 %v8743_v3 }
0x2516   : > { %v5688_v50 = vpop.permute.xlu1 %5687 }
0x2517   : > { %8155 = vmatmul.mubr.msk.f32.vlgmr.msra.gmra.mrb[44].mxu0 %vm1064_vm2, %v5688_v50  ;;  %v8402_v50 = vpack.c.bf16 %v7458_v49, %v7457_v48 }
0x2518   : > { %8170 = vmatprep.mubr.msk.f32.mxu0 %vm8744_vm0, %v8745_v6 }
0x2519   : > { %8403 = vmatpush3.bf16.msra.mxu0 %v8402_v50 }
0x251a   : > { %8404 = vmatprep.subr.bf16.mxu0 %v8743_v3 }
0x25e1   : > { %v5260_v41 = vpop.f32.mrb[56].mxu1 }
0x25e2   : > { %v5264_v2 = vmul.f32 0.35355338, %v5260_v41  ;;  %v8126_v51 = vpop.f32.mrb[57].mxu1  ;;  %v5427_v52 = vpop.f32.mrb[40].mxu0  ;;  %v7459_v41 = vld [vmem:[%s9954_s9 + $0x30] sm:$0xff] }
0x25e3   : > { %v5431_v8 = vmul.f32 0.35355338, %v5427_v52  ;;  %v8136_v53 = vpop.f32.mrb[41].mxu0 }
0x25e4   : > { %v5265_v54 = vsel %vm3181_vm7, 1e-09, %v5264_v2  ;;  %v7460_v2 = vld [vmem:[%s9954_s9 + $0x38] sm:$0xff] }
0x25e5   : > { %v5432_v55 = vsel %vm3181_vm7, 1e-09, %v5431_v8  ;;  %v5266_v56 = vsel %vm1064_vm2, %v5265_v54, -inf  ;;  %v8405_v51 = vpack.c.bf16 %v7460_v2, %v7459_v41 }
0x25e6   : > { %5267 = vmax.xlane.f32.xlu0 %v5266_v56  ;;  %v5594_v57 = vpop.f32.mrb[42].mxu0  ;;  %v5433_v59 = vsel %vm1064_vm2, %v5432_v55, -inf }
0x25e7   : > { %v5598_v61 = vmul.f32 0.35355338, %v5594_v57  ;;  %5434 = vmax.xlane.f32.xlu1 %v5433_v59  ;;  %v8146_v63 = vpop.f32.mrb[43].mxu0  ;;  %8406 = vmatpush3.bf16.msra.mxu0 %v8405_v51 }
0x25e8   : > { %8413 = vmatprep.subr.bf16.mxu0 %v8743_v3  ;;  %v7483_v63 = vld [vmem:[%s9955_s14 + $0x20] sm:$0xff] }
0x25e9   : > { %v5599_v0 = vsel %vm3181_vm7, 1e-09, %v5598_v61 }
0x25ea   : > { %v5761_v1 = vpop.f32.mrb[44].mxu0  ;;  %v5600_v4 = vsel %vm1064_vm2, %v5599_v0, -inf }
0x25eb   : > { %v5765_v5 = vmul.f32 0.35355338, %v5761_v1  ;;  %5601 = vmax.xlane.f32.xlu0 %v5600_v4  ;;  %v8156_v7 = vpop.f32.mrb[45].mxu0 }
0x25ed   : > { %v5766_v9 = vsel %vm3181_vm7, 1e-09, %v5765_v5 }
0x25ee   : > { %v5767_v58 = vsel %vm1064_vm2, %v5766_v9, -inf }
0x25ef   : > { %5768 = vmax.xlane.f32.xlu0 %v5767_v58  ;;  %v7485_v58 = vld [vmem:[%s9955_s14 + $0x30] sm:$0xff] }
0x25f8   : > { %5277 = vrot.lane.b32.xlu1 %v9548_v40, %s9944_s22 }
0x2673   : > { %v5268_v10 = vpop.xlane.xlu0 %5267 }
0x2674   : > { %v5269_v12 = vsub.f32 %v5265_v54, %v5268_v10  ;;  %v5435_v13 = vpop.xlane.xlu1 %5434  ;;  %v7486_v10 = vld [vmem:[%s9955_s14 + $0x38] sm:$0xff] }
0x2675   : > { %v5436_v14 = vsub.f32 %v5432_v55, %v5435_v13  ;;  %v8417_v13 = vpack.c.bf16 %v7486_v10, %v7485_v58 }
0x2676   : > { %v5270_v11 = vmul.f32 1.442695, %v5269_v12 }
0x2677   : > { %v5437_v15 = vmul.f32 1.442695, %v5436_v14  ;;  %v7476_v14 = vld [vmem:[%s9956_s17 + $0x1] ss:$0 sm:$0xff] }
0x2678   : > { %8612 = vpow2.f32 %v5270_v11  ;;  %v5278_v17 = vpop.permute.xlu1 %5277  ;;  %v5602_v18 = vpop.xlane.xlu0 %5601 }
0x2679   : > { %8614 = vpow2.f32 %v5437_v15  ;;  %v5603_v38 = vsub.f32 %v5599_v0, %v5602_v18  ;;  %8128 = vmatpush3.msra.mxu1 %v5278_v17  ;;  %v7484_v0 = vld [vmem:[%s9955_s14 + $0x28] sm:$0xff] }
0x267a   : > { %8137 = vmatprep.subr.mxu1 %v8745_v6  ;;  %v8414_v5 = vpack.c.bf16 %v7484_v0, %v7483_v63 }
0x267b   : > { %v5604_v62 = vmul.f32 1.442695, %v5603_v38 }
0x267c   : > { %v5769_v19 = vpop.xlane.xlu0 %5768 }
0x267d   : > { %8616 = vpow2.f32 %v5604_v62  ;;  %v5770_v20 = vsub.f32 %v5766_v9, %v5769_v19 }
0x267f   : > { %v5771_v21 = vmul.f32 1.442695, %v5770_v20 }
0x2681   : > { %8618 = vpow2.f32 %v5771_v21 }
0x2682   : > { %v8613_v22 = vpop.eup %8612 }
0x2683   : > { %v8615_v60 = vpop.eup %8614  ;;  %v5272_v36 = vsel %vm1064_vm2, %v8613_v22, 0.0 }
0x2684   : > { %5273 = vadd.xlane.f32.xlu1 %v5272_v36  ;;  %v5439_v23 = vsel %vm1064_vm2, %v8615_v60, 0.0  ;;  %v7478_v36 = vld [vmem:[%s9957_s19 + $0x20] sm:$0xff] }
0x2685   : > { %5440 = vadd.xlane.f32.xlu0 %v5439_v23  ;;  %v7479_v23 = vld [vmem:[%s9957_s19 + $0x28] sm:$0xff] }
0x2687   : > { %v8617_v24 = vpop.eup %8616 }
0x2688   : > { %v5606_v25 = vsel %vm1064_vm2, %v8617_v24, 0.0 }
0x2689   : > { %5607 = vadd.xlane.f32.xlu1 %v5606_v25  ;;  %v8408_v25 = vpack.c.bf16 %v7479_v23, %v7478_v36 }
0x268b   : > { %v8619_v26 = vpop.eup %8618 }
0x268c   : > { %v5773_v27 = vsel %vm1064_vm2, %v8619_v26, 0.0 }
0x268d   : > { %5774 = vadd.xlane.f32.xlu0 %v5773_v27  ;;  %v7481_v27 = vld [vmem:[%s9957_s19 + $0x38] sm:$0xff] }
0x269a   : > { %5611 = vrot.lane.b32.xlu1 %v9548_v40, %s9945_s29 }
0x269e   : > { %5778 = vrot.lane.b32.xlu1 %v9548_v40, %s9946_s11 }
0x26a3   : > { %5444 = vrot.lane.b32.xlu0 %v9548_v40, %s9943_s2 }
0x2711   : > { %v5274_v28 = vpop.xlane.xlu1 %5273 }
0x2712   : > { %8620 = vrcp.f32 %v5274_v28  ;;  %v5441_v29 = vpop.xlane.xlu0 %5440 }
0x2713   : > { %8622 = vrcp.f32 %v5441_v29 }
0x2716   : > { %v5608_v30 = vpop.xlane.xlu1 %5607 }
0x2717   : > { %8624 = vrcp.f32 %v5608_v30 }
0x271a   : > { %v5775_v31 = vpop.xlane.xlu0 %5774  ;;  %v5612_v40 = vpop.permute.xlu1 %5611 }
0x271b   : > { %8626 = vrcp.f32 %v5775_v31 }
0x271c   : > { %v8621_v32 = vpop.eup %8620 }
0x271d   : > { %v5276_v33 = vmul.f32 %v8621_v32, %v8613_v22  ;;  %v8623_v34 = vpop.eup %8622 }
0x271e   : > { %v5445_v37 = vpop.permute.xlu0 %5444  ;;  %v5443_v39 = vmul.f32 %v8623_v34, %v8615_v60  ;;  %v5779_v45 = vpop.permute.xlu1 %5778 }
0x271f   : > { %8130 = vmatmul.mubr.msk.f32.vlgmr.msra.gmra.mrb[58].mxu1 %vm1064_vm2, %v5276_v33 }
0x2720   : > { %8138 = vmatpush3.msra.mxu1 %v5445_v37  ;;  %8139 = vmatprep.mubr.msk.f32.mxu1 %vm8744_vm0, %v8745_v6  ;;  %v7493_v37 = vld [vmem:[%s9959_s30 + $0x1] ss:$0 sm:$0xff] }
0x2721   : > { %8147 = vmatprep.subr.mxu1 %v8745_v6  ;;  %v8625_v42 = vpop.eup %8624 }
0x2722   : > { %v5610_v43 = vmul.f32 %v8625_v42, %v8617_v24  ;;  %v7495_v24 = vld [vmem:[%s9958_s24 + $0x1] ss:$0 sm:$0xff] }
0x2723   : > { %8140 = vmatmul.mubr.msk.f32.vlgmr.msra.gmra.mrb[60].mxu1 %vm1064_vm2, %v5443_v39 }
0x2724   : > { %8148 = vmatpush3.msra.mxu1 %v5612_v40  ;;  %8149 = vmatprep.mubr.msk.f32.mxu1 %vm8744_vm0, %v8745_v6 }
0x2725   : > { %8157 = vmatprep.subr.mxu1 %v8745_v6  ;;  %v8627_v44 = vpop.eup %8626 }
0x2726   : > { %v5777_v47 = vmul.f32 %v8627_v44, %v8619_v26  ;;  %v7480_v26 = vld [vmem:[%s9957_s19 + $0x30] sm:$0xff] }
0x2727   : > { %8150 = vmatmul.mubr.msk.f32.vlgmr.msra.gmra.mrb[62].mxu1 %vm1064_vm2, %v5610_v43 }
0x2728   : > { %8158 = vmatpush3.msra.mxu1 %v5779_v45  ;;  %8159 = vmatprep.mubr.msk.f32.mxu1 %vm8744_vm0, %v8745_v6 }
0x2729   : > { %8407 = vmatprep.subr.bf16.mxu1 %v8743_v3 }
0x272b   : > { %8160 = vmatmul.mubr.msk.f32.vlgmr.msra.gmra.mrb[64].mxu1 %vm1064_vm2, %v5777_v47 }
0x272c   : > { %8181 = vmatprep.mubr.msk.f32.mxu1 %vm8744_vm0, %v8745_v6  ;;  %8409 = vmatpush3.bf16.msra.mxu1 %v8408_v25 }
0x272d   : > { %8410 = vmatprep.subr.bf16.mxu1 %v8743_v3 }
0x27f2   : > { %v5349_v52 = vpop.f32.mrb[58].mxu1 }
0x27f3   : > { %v8131_v8 = vpop.f32.mrb[59].mxu1 }
0x27f6   : > { %v5516_v53 = vpop.f32.mrb[60].mxu1 }
0x27f7   : > { %5855 = vrot.lane.b32.xlu0 %v5516_v53, %s9947_s18  ;;  %v8141_v54 = vpop.f32.mrb[61].mxu1 }
0x27fa   : > { %v5683_v55 = vpop.f32.mrb[62].mxu1 }
0x27fb   : > { %5859 = vrot.lane.b32.xlu1 %v5683_v55, %s9948_s1  ;;  %v8151_v56 = vpop.f32.mrb[63].mxu1 }
0x27fe   : > { %v5850_v57 = vpop.f32.mrb[64].mxu1 }
0x27ff   : > { %5863 = vrot.lane.b32.xlu0 %v5850_v57, %s9949_s7  ;;  %v8161_v59 = vpop.f32.mrb[65].mxu1 }
0x2869   : > { %v5856_v61 = vpop.permute.xlu0 %5855 }
0x286a   : > { %v5866_v4 = vsel %vm1064_vm2, %v5349_v52, %v5856_v61 }
0x286d   : > { %v5860_v1 = vpop.permute.xlu1 %5859 }
0x286e   : > { %v5867_v7 = vsel %vm1742_vm4, %v5866_v4, %v5860_v1 }
0x2871   : > { %v5864_v9 = vpop.permute.xlu0 %5863 }
0x2872   : > { %v5868_v12 = vsel %vm1744_vm5, %v5867_v7, %v5864_v9 }
0x2873   : > { %8171 = vmatmul.mubr.msk.f32.vlgmr.msra.gmra.mrb[46].mxu0 %vm986_vm1, %v5868_v12 }
0x2874   : > { %8415 = vmatpush3.bf16.msra.mxu0 %v8414_v5  ;;  %8192 = vmatprep.mubr.msk.f32.mxu0 %vm8744_vm0, %v8745_v6 }
0x2875   : > { %8416 = vmatprep.subr.bf16.mxu0 %v8743_v3 }
0x2878   : > { %8418 = vmatpush3.bf16.msra.mxu0 %v8417_v13 }
0x2879   : > { %8205 = vmatprep.subr.mxu0 %v8745_v6 }
0x287b   : > { %8193 = vmatmul.mubr.msk.f32.vlgmr.msra.gmra.mrb[48].mxu0 %vm986_vm1, %v9389_v46 }
0x287c   : > { %8207 = vmatprep.mubr.msk.f32.mxu0 %vm8744_vm0, %v8745_v6 }
0x2946   : > { %v5944_v11 = vpop.f32.mrb[46].mxu0 }
0x2947   : > { %v5945_v15 = vadd.f32 %v7476_v14, %v5944_v11  ;;  %v8172_v17 = vpop.f32.mrb[47].mxu0 }
0x2949   : > { %v5948_v18 = vadd.f32 %v5945_v15, %v9541_v35  ;;  %v8411_v35 = vpack.c.bf16 %v7481_v27, %v7480_v26 }
0x294b   : > { %v5949_v38 = vsel %vm986_vm1, %v5948_v18, 0.0  ;;  %8412 = vmatpush3.bf16.msra.mxu1 %v8411_v35 }
0x294c   : > { %5950 = vadd.xlane.f32.xlu1 %v5949_v38  ;;  %8195 = vmatprep.subr.mxu1 %v8745_v6 }
0x294e   : > { %v6134_v62 = vpop.f32.mrb[48].mxu0 }
0x294f   : > { %v8194_v19 = vpop.f32.mrb[49].mxu0  ;;  %v9659_v28 = vadd.f32 %v7495_v24, %v6134_v62 }
0x29d9   : > { %v5951_v46 = vpop.xlane.xlu1 %5950 }
0x29da   : > { %v5952_v20 = vmul.f32 0.03125, %v5951_v46 }
0x29dc   : > { %v5953_v21 = vsub.f32 %v5948_v18, %v5952_v20 }
0x29de   : > { %v5954_v22 = vmul.f32 %v5953_v21, %v5953_v21 }
0x29e0   : > { %v5955_v60 = vsel %vm986_vm1, %v5954_v22, 0.0 }
0x29e1   : > { %5956 = vadd.xlane.f32.xlu0 %v5955_v60 }
0x29f7   : > { %6305 = vrot.lane.b32.xlu0 %v9659_v28, %s9939_s5 }
0x2a6e   : > { %v5957_v29 = vpop.xlane.xlu0 %5956 }
0x2a6f   : > { %v5958_v30 = vmul.f32 0.03125, %v5957_v29 }
0x2a71   : > { %v5959_v31 = vadd.f32 1e-06, %v5958_v30 }
0x2a72   : > { %v6306_v32 = vpop.permute.xlu0 %6305 }
0x2a73   : > { %8628 = vrsqrt.f32 %v5959_v31  ;;  %8206 = vmatpush3.xpose.msk.msra.mxu0 %vm1064_vm2, %v6306_v32 }
0x2a74   : > { %8215 = vmatprep.subr.mxu0 %v8745_v6 }
0x2a7d   : > { %v8629_v33 = vpop.eup %8628 }
0x2a7e   : > { %v9667_v34 = vmul.f32 %v8629_v33, %v5953_v21 }
0x2a80   : > { %8182 = vmatmul.mubr.msk.f32.vlgmr.msra.gmra.mrb[66].mxu1 %vm986_vm1, %v9667_v34 }
0x2a81   : > { %8196 = vmatpush3.xpose.msk.msra.mxu1 %vm1064_vm2, %v9659_v28  ;;  %8197 = vmatprep.mubr.msk.f32.mxu1 %vm8744_vm0, %v8745_v6 }
0x2a82   : > { %8200 = vmatprep.subr.mxu1 %v8745_v6 }
0x2b53   : > { %v6058_v39 = vpop.f32.mrb[66].mxu1 }
0x2b54   : > { %v6059_v40 = vadd.f32 %v7493_v37, %v6058_v39  ;;  %v8183_v42 = vpop.f32.mrb[67].mxu1 }
0x2b56   : > { %6303 = vrot.lane.b32.xlu1 %v6059_v40, %s9939_s5  ;;  %6470 = vrot.lane.b32.xlu0 %v6059_v40, %s9938_s26  ;;  %s9969_s5 = sld [smem:[#allocation29_spill]] }
0x2b57   : > { %8198 = vmatmul.mubr.msk.f32.vlgmr.msra.gmra.mrb[68].mxu1 %vm1064_vm2, %v6059_v40 }
0x2b58   : > { %8202 = vmatprep.mubr.msk.f32.mxu1 %vm8744_vm0, %v8745_v6 }
0x2b5a   : > { %6472 = vrot.lane.b32.xlu1 %v9659_v28, %s9938_s26  ;;  %6637 = vrot.lane.b32.xlu0 %v6059_v40, %s9940_s23 }
0x2b5e   : > { %6639 = vrot.lane.b32.xlu1 %v9659_v28, %s9940_s23  ;;  %s8760_s23 = smov [#allocation2]  }
0x2bc8   : > { %v6304_v43 = vpop.permute.xlu1 %6303  ;;  %v6471_v45 = vpop.permute.xlu0 %6470 }
0x2bc9   : > { %8208 = vmatmul.mubr.msk.f32.vlgmr.msra.gmra.mrb[50].mxu0 %vm1064_vm2, %v6304_v43 }
0x2bca   : > { %8217 = vmatprep.mubr.msk.f32.mxu0 %vm8744_vm0, %v8745_v6 }
0x2bcc   : > { %v6473_v44 = vpop.permute.xlu1 %6472  ;;  %v6638_v48 = vpop.permute.xlu0 %6637 }
0x2bcd   : > { %8216 = vmatpush3.xpose.msk.msra.mxu0 %vm1064_vm2, %v6473_v44 }
0x2bce   : > { %8225 = vmatprep.subr.mxu0 %v8745_v6 }
0x2bd0   : > { %v6640_v47 = vpop.permute.xlu1 %6639  ;;  %8218 = vmatmul.mubr.msk.f32.vlgmr.msra.gmra.mrb[52].mxu0 %vm1064_vm2, %v6471_v45  ;;  %v7488_v45 = vld [vmem:[%s9962_s28 + $0x20] sm:$0xff] }
0x2bd1   : > { %8226 = vmatpush3.xpose.msk.msra.mxu0 %vm1064_vm2, %v6640_v47  ;;  %8227 = vmatprep.mubr.msk.f32.mxu0 %vm8744_vm0, %v8745_v6  ;;  %v7489_v47 = vld [vmem:[%s9962_s28 + $0x28] sm:$0xff] }
0x2bd2   : > { %8419 = vmatprep.subr.bf16.mxu0 %v8743_v3 }
0x2bd4   : > { %8228 = vmatmul.mubr.msk.f32.vlgmr.msra.gmra.mrb[54].mxu0 %vm1064_vm2, %v6638_v48  ;;  %v8420_v48 = vpack.c.bf16 %v7489_v47, %v7488_v45 }
0x2bd5   : > { %8243 = vmatprep.mubr.msk.f32.mxu0 %vm8744_vm0, %v8745_v6 }
0x2bd6   : > { %8421 = vmatpush3.bf16.msra.mxu0 %v8420_v48 }
0x2bd7   : > { %8422 = vmatprep.subr.bf16.mxu0 %v8743_v3 }
0x2c2a   : > { %v6210_v49 = vpop.f32.mrb[68].mxu1 }
0x2c2b   : > { %v6214_v50 = vmul.f32 0.35355338, %v6210_v49  ;;  %v8199_v41 = vpop.f32.mrb[69].mxu1  ;;  %v7490_v49 = vld [vmem:[%s9962_s28 + $0x30] sm:$0xff] }
0x2c2d   : > { %v6215_v2 = vsel %vm4130_vm8, 1e-09, %v6214_v50  ;;  %v7491_v50 = vld [vmem:[%s9962_s28 + $0x38] sm:$0xff] }
0x2c2e   : > { %v6216_v51 = vsel %vm1064_vm2, %v6215_v2, -inf  ;;  %v8423_v41 = vpack.c.bf16 %v7491_v50, %v7490_v49 }
0x2c2f   : > { %6217 = vmax.xlane.f32.xlu1 %v6216_v51 }
0x2c30   : > { %8424 = vmatpush3.bf16.msra.mxu0 %v8423_v41 }
0x2c31   : > { %8431 = vmatprep.subr.bf16.mxu0 %v8743_v3 }
0x2c9c   : > { %v6377_v52 = vpop.f32.mrb[50].mxu0 }
0x2c9d   : > { %v6381_v8 = vmul.f32 0.35355338, %v6377_v52  ;;  %v8209_v53 = vpop.f32.mrb[51].mxu0 }
0x2c9f   : > { %v6382_v54 = vsel %vm4130_vm8, 1e-09, %v6381_v8 }
0x2ca0   : > { %v6383_v55 = vsel %vm1064_vm2, %v6382_v54, -inf }
0x2ca1   : > { %6384 = vmax.xlane.f32.xlu0 %v6383_v55 }
0x2ca3   : > { %v6544_v56 = vpop.f32.mrb[52].mxu0 }
0x2ca4   : > { %v6548_v57 = vmul.f32 0.35355338, %v6544_v56  ;;  %v8219_v59 = vpop.f32.mrb[53].mxu0 }
0x2ca6   : > { %v6549_v61 = vsel %vm4130_vm8, 1e-09, %v6548_v57 }
0x2ca7   : > { %v6711_v63 = vpop.f32.mrb[54].mxu0  ;;  %v6550_v0 = vsel %vm1064_vm2, %v6549_v61, -inf }
0x2ca8   : > { %v6715_v1 = vmul.f32 0.35355338, %v6711_v63  ;;  %6551 = vmax.xlane.f32.xlu0 %v6550_v0  ;;  %v8229_v4 = vpop.f32.mrb[55].mxu0  ;;  %v7509_v0 = vld [vmem:[%s9963_s16 + $0x1] ss:$0 sm:$0xff] }
0x2caa   : > { %v6716_v5 = vsel %vm4130_vm8, 1e-09, %v6715_v1 }
0x2cab   : > { %v6717_v7 = vsel %vm1064_vm2, %v6716_v5, -inf }
0x2cac   : > { %6718 = vmax.xlane.f32.xlu1 %v6717_v7 }
0x2cbc   : > { %v6218_v9 = vpop.xlane.xlu1 %6217 }
0x2cbd   : > { %v6219_v58 = vsub.f32 %v6215_v2, %v6218_v9  ;;  %6394 = vrot.lane.b32.xlu1 %v9659_v28, %s9951_s3  ;;  %s8654_s3 = sshll.u32 %s8760_s23, 4  ;;  %s8655_s3 = int_to_ptr.vmem [resolvable:$false] %s8654_s3 }
0x2cbe   : > { %s8656_s15 = scalar_lea.vmem %s8655_s3, 256 }
0x2cbf   : > { %v6220_v10 = vmul.f32 1.442695, %v6219_v58 }
0x2cc1   : > { %8630 = vpow2.f32 %v6220_v10 }
0x2ccb   : > { %v8631_v12 = vpop.eup %8630 }
0x2ccc   : > { %v6222_v13 = vsel %vm1064_vm2, %v8631_v12, 0.0 }
0x2ccd   : > { %6223 = vadd.xlane.f32.xlu0 %v6222_v13 }
0x2ce3   : > { %6227 = vrot.lane.b32.xlu0 %v9659_v28, %s9952_s8  ;;  %s943_s8 = sand.u32 1, %s8704_s10  }
0x2ce4   : > { %s7191_s2 = scalar_lea.sflag [#allocation3], %s943_s8 }
0x2d2e   : > { %v6385_v14 = vpop.xlane.xlu0 %6384 }
0x2d2f   : > { %v6386_v16 = vsub.f32 %v6382_v54, %v6385_v14 }
0x2d31   : > { %v6387_v11 = vmul.f32 1.442695, %v6386_v16 }
0x2d33   : > { %8632 = vpow2.f32 %v6387_v11  ;;  %v7511_v11 = vld [vmem:[%s9965_s4 + $0x20] sm:$0xff] }
0x2d35   : > { %v6552_v15 = vpop.xlane.xlu0 %6551 }
0x2d36   : > { %v6553_v17 = vsub.f32 %v6549_v61, %v6552_v15  ;;  %v7512_v15 = vld [vmem:[%s9965_s4 + $0x28] sm:$0xff] }
0x2d38   : > { %v6554_v18 = vmul.f32 1.442695, %v6553_v17  ;;  %v8426_v17 = vpack.c.bf16 %v7512_v15, %v7511_v11 }
0x2d39   : > { %v6719_v38 = vpop.xlane.xlu1 %6718 }
0x2d3a   : > { %8634 = vpow2.f32 %v6554_v18  ;;  %v6720_v62 = vsub.f32 %v6716_v5, %v6719_v38  ;;  %v7514_v18 = vld [vmem:[%s9965_s4 + $0x38] sm:$0xff] }
0x2d3c   : > { %v6721_v19 = vmul.f32 1.442695, %v6720_v62  ;;  %v7516_v62 = vld [vmem:[%s9966_s0 + $0x40] sm:$0xff] }
0x2d3d   : > { %v8633_v46 = vpop.eup %8632  ;;  %v6395_v27 = vpop.permute.xlu1 %6394 }
0x2d3e   : > { %8636 = vpow2.f32 %v6721_v19  ;;  %v6389_v20 = vsel %vm1064_vm2, %v8633_v46, 0.0  ;;  %v7517_v19 = vld [vmem:[%s9966_s0 + $0x48] sm:$0xff] }
0x2d3f   : > { %6390 = vadd.xlane.f32.xlu1 %v6389_v20  ;;  %v8432_v20 = vpack.c.bf16 %v7517_v19, %v7516_v62 }
0x2d44   : > { %v8635_v21 = vpop.eup %8634 }
0x2d45   : > { %v6556_v22 = vsel %vm1064_vm2, %v8635_v21, 0.0 }
0x2d46   : > { %6557 = vadd.xlane.f32.xlu0 %v6556_v22 }
0x2d48   : > { %v8637_v60 = vpop.eup %8636 }
0x2d49   : > { %v6723_v36 = vsel %vm1064_vm2, %v8637_v60, 0.0 }
0x2d4a   : > { %6724 = vadd.xlane.f32.xlu1 %v6723_v36  ;;  %v7521_v36 = vld [vmem:[%s9966_s0 + $0x68] sm:$0xff] }
0x2d5a   : > { %v6224_v23 = vpop.xlane.xlu0 %6223 }
0x2d5b   : > { %8638 = vrcp.f32 %v6224_v23  ;;  %6561 = vrot.lane.b32.xlu1 %v9659_v28, %s9941_s13  ;;  %s9970_s13 = sld [smem:[#allocation34_spill]] }
0x2d5c   : > { %6728 = vrot.lane.b32.xlu0 %v9659_v28, %s9942_s25  ;;  %s9971_s25 = sld [smem:[#allocation30_spill]] }
0x2d5e   : > { %v6228_v24 = vpop.permute.xlu0 %6227 }
0x2d5f   : > { %8201 = vmatpush3.msra.mxu1 %v6228_v24 }
0x2d60   : > { %8210 = vmatprep.subr.mxu1 %v8745_v6 }
0x2d61   : > { %s7532_s11 = sshll.u32 %s9970_s13, 7 }
0x2d65   : > { %v8639_v25 = vpop.eup %8638 }
0x2d66   : > { %v6226_v26 = vmul.f32 %v8639_v25, %v8631_v12 }
0x2d68   : > { %8203 = vmatmul.mubr.msk.f32.vlgmr.msra.gmra.mrb[70].mxu1 %vm1064_vm2, %v6226_v26 }
0x2d69   : > { %8211 = vmatpush3.msra.mxu1 %v6395_v27  ;;  %8212 = vmatprep.mubr.msk.f32.mxu1 %vm8744_vm0, %v8745_v6 }
0x2d6a   : > { %8220 = vmatprep.subr.mxu1 %v8745_v6 }
0x2dcc   : > { %v6391_v35 = vpop.xlane.xlu1 %6390 }
0x2dcd   : > { %8640 = vrcp.f32 %v6391_v35 }
0x2dd3   : > { %v6558_v29 = vpop.xlane.xlu0 %6557 }
0x2dd4   : > { %8642 = vrcp.f32 %v6558_v29  ;;  %v7522_v29 = vld [vmem:[%s9966_s0 + $0x70] sm:$0xff] }
0x2dd7   : > { %v8641_v28 = vpop.eup %8640  ;;  %v6725_v30 = vpop.xlane.xlu1 %6724 }
0x2dd8   : > { %v6393_v31 = vmul.f32 %v8641_v28, %v8633_v46  ;;  %8644 = vrcp.f32 %v6725_v30  ;;  %v6729_v39 = vpop.permute.xlu0 %6728  ;;  %v7518_v46 = vld [vmem:[%s9966_s0 + $0x50] sm:$0xff]  ;;  %v7523_v28 = vld [vmem:[%s9966_s0 + $0x78] sm:$0xff] }
0x2dd9   : > { %v8441_v30 = vpack.c.bf16 %v7523_v28, %v7522_v29 }
0x2dda   : > { %8213 = vmatmul.mubr.msk.f32.vlgmr.msra.gmra.mrb[72].mxu1 %vm1064_vm2, %v6393_v31  ;;  %v7525_v31 = vld [vmem:[%s9968_s27 + $0x1] ss:$0 sm:$0xff] }
0x2ddb   : > { %v6562_v32 = vpop.permute.xlu1 %6561  ;;  %8222 = vmatprep.mubr.msk.f32.mxu1 %vm8744_vm0, %v8745_v6 }
0x2ddc   : > { %8221 = vmatpush3.msra.mxu1 %v6562_v32 }
0x2ddd   : > { %8230 = vmatprep.subr.mxu1 %v8745_v6 }
0x2dde   : > { %v8643_v33 = vpop.eup %8642 }
0x2ddf   : > { %v6560_v37 = vmul.f32 %v8643_v33, %v8635_v21  ;;  %v7519_v21 = vld [vmem:[%s9966_s0 + $0x58] sm:$0xff] }
0x2de0   : > { %v8435_v22 = vpack.c.bf16 %v7519_v21, %v7518_v46 }
0x2de1   : > { %8223 = vmatmul.mubr.msk.f32.vlgmr.msra.gmra.mrb[74].mxu1 %vm1064_vm2, %v6560_v37 }
0x2de2   : > { %v8645_v40 = vpop.eup %8644  ;;  %8231 = vmatpush3.msra.mxu1 %v6729_v39  ;;  %8232 = vmatprep.mubr.msk.f32.mxu1 %vm8744_vm0, %v8745_v6 }
0x2de3   : > { %v6727_v42 = vmul.f32 %v8645_v40, %v8637_v60  ;;  %8425 = vmatprep.subr.bf16.mxu1 %v8743_v3  ;;  %v7520_v60 = vld [vmem:[%s9966_s0 + $0x60] sm:$0xff] }
0x2de4   : > { %v8438_v23 = vpack.c.bf16 %v7521_v36, %v7520_v60  ;;  %v7527_v40 = vld [vmem:[%s8899_s21 + $0x1] ss:$0 sm:$0xff] }
0x2de5   : > { %8233 = vmatmul.mubr.msk.f32.vlgmr.msra.gmra.mrb[76].mxu1 %vm1064_vm2, %v6727_v42 }
0x2de6   : > { %8254 = vmatprep.mubr.msk.f32.mxu1 %vm8744_vm0, %v8745_v6  ;;  %8427 = vmatpush3.bf16.msra.mxu1 %v8426_v17 }
0x2de7   : > { %8428 = vmatprep.subr.bf16.mxu1 %v8743_v3 }
0x2e3b   : > { %v6299_v43 = vpop.f32.mrb[70].mxu1 }
0x2e3c   : > { %v8204_v44 = vpop.f32.mrb[71].mxu1 }
0x2ead   : > { %v6466_v2 = vpop.f32.mrb[72].mxu1 }
0x2eae   : > { %6805 = vrot.lane.b32.xlu1 %v6466_v2, %s9947_s18  ;;  %v8214_v51 = vpop.f32.mrb[73].mxu1 }
0x2eaf   : > { %v7105_v51 = vld [vmem:[%s8904_s20] sm:$0xff] }
0x2eb4   : > { %v6633_v52 = vpop.f32.mrb[74].mxu1 }
0x2eb5   : > { %6809 = vrot.lane.b32.xlu0 %v6633_v52, %s9948_s1  ;;  %v8224_v8 = vpop.f32.mrb[75].mxu1  ;;  %v7106_v52 = vld [vmem:[%s8904_s20 + $0x8] sm:$0xff]  ;;  %s9795_s1 = scalar_lea.hbm %s9971_s25, %s7532_s11 }
0x2eb6   : > { %v8444_v8 = vpack.c.bf16 %v7106_v52, %v7105_v51 }
0x2eb8   : > { %v6800_v53 = vpop.f32.mrb[76].mxu1 }
0x2eb9   : > { %6813 = vrot.lane.b32.xlu1 %v6800_v53, %s9949_s7  ;;  %v8234_v54 = vpop.f32.mrb[77].mxu1  ;;  %v7107_v53 = vld [vmem:[%s8904_s20 + $0x10] sm:$0xff]  ;;  %s7344_s7 = sshll.u32 %s943_s8, 3 }
0x2eba   : > { %v7108_v54 = vld [vmem:[%s8904_s20 + $0x18] sm:$0xff]  ;;  %s945_s18 = scalar_lea.vmem [#allocation2], %s7344_s7 }
0x2ebb   : > { %s7204_s26 = sshll.u32 %s945_s18, 4  ;;  %s9797_s26 = int_to_ptr.vmem [resolvable:$true] %s7204_s26 }
0x2ebc   : > { %s8650_s22 = scalar_lea.vmem %s9797_s26, 128  ;;  %p8657_p0 = scmp.lt.s32.totalorder %s9797_s26, %s8655_s3 }
0x2ebd   : > { %p8651_p11 = scmp.ne.s32.totalorder %s9797_s26, %s8650_s22  ;;  %p8658_p1 = scmp.lt.s32.totalorder %s8656_s15, %s8650_s22 }
0x2ebf   : > { %p8652_p12 = pnand %p8651_p11, %p8954_p5  ;;  %p8659_p2 = por %p8658_p1, %p8657_p0 }
0x2ec1   : > { %p8653_p13 = pneg %p8652_p12 }
0x2ec3   : > { %p8660_p3 = pnand %p8659_p2, %p8653_p13 }
0x2f20   : > { %v6806_v55 = vpop.permute.xlu1 %6805 }
0x2f21   : > { %v6816_v57 = vsel %vm1064_vm2, %v6299_v43, %v6806_v55  ;;  %v8447_v55 = vpack.c.bf16 %v7108_v54, %v7107_v53 }
0x2f27   : > { %v6810_v56 = vpop.permute.xlu0 %6809 }
0x2f28   : > { %v6817_v59 = vsel %vm1742_vm4, %v6816_v57, %v6810_v56 }
0x2f2b   : > { %v6814_v61 = vpop.permute.xlu1 %6813 }
0x2f2c   : > { %v6818_v63 = vsel %vm1744_vm5, %v6817_v59, %v6814_v61 }
0x2f2d   : > { %8244 = vmatmul.mubr.msk.f32.vlgmr.msra.gmra.mrb[56].mxu0 %vm986_vm1, %v6818_v63 }
0x2f2e   : > { %8273 = vmatprep.mubr.msk.f32.mxu0 %vm8744_vm0, %v8745_v6  ;;  %8433 = vmatpush3.bf16.msra.mxu0 %v8432_v20 }
0x2f2f   : > { %8434 = vmatprep.subr.bf16.mxu0 %v8743_v3 }
0x2f32   : > { %8436 = vmatpush3.bf16.msra.mxu0 %v8435_v22 }
0x2f33   : > { %8437 = vmatprep.subr.bf16.mxu0 %v8743_v3 }
0x2f36   : > { %8439 = vmatpush3.bf16.msra.mxu0 %v8438_v23 }
0x2f37   : > { %8440 = vmatprep.subr.bf16.mxu0 %v8743_v3 }
0x2f3a   : > { %8442 = vmatpush3.bf16.msra.mxu0 %v8441_v30 }
0x3000   : > { %v6894_v1 = vpop.f32.mrb[56].mxu0 }
0x3001   : > { %v6895_v4 = vadd.f32 %v7509_v0, %v6894_v1  ;;  %v8245_v5 = vpop.f32.mrb[57].mxu0  ;;  %v7529_v0 = vld [vmem:[%s9969_s5] ss:$0 sm:$0xff] }
0x3003   : > { %v6898_v7 = vadd.f32 %v6895_v4, %v9667_v34 }
0x3005   : > { %v6899_v9 = vadd.f32 %v6898_v7, %v9667_v34  ;;  %v7513_v34 = vld [vmem:[%s9965_s4 + $0x30] sm:$0xff] }
0x3006   : > { %v8429_v38 = vpack.c.bf16 %v7514_v18, %v7513_v34 }
0x3007   : > { %v6900_v58 = vsel %vm986_vm1, %v6899_v9, 0.0 }
0x3008   : > { %6901 = vadd.xlane.f32.xlu0 %v6900_v58  ;;  %8430 = vmatpush3.bf16.msra.mxu1 %v8429_v38 }
0x3009   : > { %8443 = vmatprep.subr.bf16.mxu1 %v8743_v3 }
0x3095   : > { %v6902_v10 = vpop.xlane.xlu0 %6901 }
0x3096   : > { %v6903_v12 = vmul.f32 0.03125, %v6902_v10 }
0x3098   : > { %v6904_v13 = vsub.f32 %v6899_v9, %v6903_v12 }
0x309a   : > { %v6905_v14 = vmul.f32 %v6904_v13, %v6904_v13 }
0x309c   : > { %v6906_v16 = vsel %vm986_vm1, %v6905_v14, 0.0 }
0x309d   : > { %6907 = vadd.xlane.f32.xlu1 %v6906_v16 }
0x312a   : > { %v6908_v24 = vpop.xlane.xlu1 %6907 }
0x312b   : > { %v6909_v25 = vmul.f32 0.03125, %v6908_v24 }
0x312d   : > { %v6910_v26 = vadd.f32 1e-06, %v6909_v25 }
0x312f   : > { %8646 = vrsqrt.f32 %v6910_v26 }
0x3139   : > { %v8647_v27 = vpop.eup %8646 }
0x313a   : > { %v6912_v35 = vmul.f32 %v8647_v27, %v6904_v13 }
0x313c   : > { %8255 = vmatmul.mubr.msk.f32.vlgmr.msra.gmra.mrb[78].mxu1 %vm986_vm1, %v6912_v35 }
0x313d   : > { %8284 = vmatprep.mubr.msk.f32.mxu1 %vm8744_vm0, %v8745_v6  ;;  %8445 = vmatpush3.bf16.msra.mxu1 %v8444_v8 }
0x313e   : > { %8446 = vmatprep.subr.bf16.mxu1 %v8743_v3 }
0x3141   : > { %8448 = vmatpush3.bf16.msra.mxu1 %v8447_v55 }
0x320f   : > { %v7006_v32 = vpop.f32.mrb[78].mxu1 }
0x3210   : > { %v7007_v33 = vadd.f32 %v7525_v31, %v7006_v32  ;;  %v8256_v37 = vpop.f32.mrb[79].mxu1 }
0x3212   : > { %v7010_v39 = vmax.f32 %v7007_v33, 0.0 }
0x3214   : > { %8274 = vmatmul.mubr.msk.f32.vlgmr.msra.gmra.mrb[58].mxu0 %vm1941_vm6, %v7010_v39 }
0x32e7   : > { %v7086_v42 = vpop.f32.mrb[58].mxu0 }
0x32e8   : > { %v7087_v43 = vadd.f32 %v7527_v40, %v7086_v42  ;;  %v8275_v44 = vpop.f32.mrb[59].mxu0 }
0x32ea   : > { %v7090_v45 = vadd.f32 %v7087_v43, %v6912_v35 }
0x32ec   : > { %v7091_v6 = vadd.f32 %v7090_v45, %v6912_v35 }
0x32ee   : > { %v7092_v47 = vsel %vm986_vm1, %v7091_v6, 0.0 }
0x32ef   : > { %7093 = vadd.xlane.f32.xlu0 %v7092_v47 }
0x337c   : > { %v7094_v48 = vpop.xlane.xlu0 %7093 }
0x337d   : > { %v7095_v49 = vmul.f32 0.03125, %v7094_v48 }
0x337f   : > { %v7096_v50 = vsub.f32 %v7091_v6, %v7095_v49 }
0x3381   : > { %v7097_v41 = vmul.f32 %v7096_v50, %v7096_v50 }
0x3383   : > { %v7098_v2 = vsel %vm986_vm1, %v7097_v41, 0.0 }
0x3384   : > { %7099 = vadd.xlane.f32.xlu0 %v7098_v2 }
0x3411   : > { %v7100_v56 = vpop.xlane.xlu0 %7099 }
0x3412   : > { %v7101_v57 = vmul.f32 0.03125, %v7100_v56 }
0x3414   : > { %v7102_v59 = vadd.f32 1e-06, %v7101_v57 }
0x3416   : > { %8648 = vrsqrt.f32 %v7102_v59 }
0x3420   : > { %v8649_v61 = vpop.eup %8648 }
0x3421   : > { %v7104_v63 = vmul.f32 %v8649_v61, %v7096_v50 }
0x3423   : > { %8285 = vmatmul.mubr.msk.f32.vlgmr.msra.gmra.mrb[80].mxu1 %vm986_vm1, %v7104_v63 }
0x34f6   : > { %v7185_v3 = vpop.f32.mrb[80].mxu1 }
0x34f7   : > { %v7186_v1 = vadd.f32 %v7529_v0, %v7185_v3  ;;  %v8286_v4 = vpop.f32.mrb[81].mxu1 }
0x34f9   : > { %7189 = vst.msk [vmem:[%s945_s18] sm:$0xff] %vm986_vm1, %v7186_v1 }
0x34fa   : > { %8663 = shalt.err (!%p8660_p3)
}
0x34fb   : > { %s8664_s5 = scalar_lea.hbm %s9795_s1, 128  ;;  %s8668_s13 = scalar_lea.hbm %s9971_s25, 256 }
0x34fc   : > { %p8665_p4 = scmp.ne.s32.totalorder %s9795_s1, %s8664_s5  ;;  %p8669_p9 = scmp.lt.u32.totalorder %s9795_s1, %s9971_s25 }
0x34fd   : > { %p8670_p10 = scmp.lt.u32.totalorder %s8668_s13, %s8664_s5  ;;  %p8672_p12 = scmp.lt.u32.totalorder %s8664_s5, %s9795_s1 }
0x34fe   : > { %p8666_p7 = pnand %p8665_p4, %p8954_p5 }
0x34ff   : > { %p8671_p11 = por %p8670_p10, %p8669_p9 }
0x3500   : > { %p8667_p8 = pneg %p8666_p7 }
0x3501   : > { %p8673_p0 = por %p8672_p12, %p8671_p11 }
0x3503   : > { %p8674_p13 = pnand %p8673_p0, %p8667_p8 }
0x3505   : > { %8677 = shalt.err (!%p8674_p13)
}
0x3506   : > { %8449 = dma.vmem_to_hbm [thread:$0]  (%p8954_p5), %s9797_s26, 128, %s9795_s1, %s7191_s2  }
0x3507 PF: > { %s9973_s8 = sld [smem:[#allocation33_spill]]  ;;  %s9974_s7 = sld [smem:[#allocation31_spill]] }
0x350d   : > { %p8455_p1 = scmp.ge.s32.totalorder %s9973_s8, 2  ;;  %s7216_s18 = sand.u32 1, %s9974_s7  }
0x350e   : > { %s7217_s22 = scalar_lea.sflag [#allocation3], %s7216_s18 }
0x350f   : > { %p8452_p2 = pnand %p8455_p1, %p8958_p6 }
0x3511   : > { %8695 = dma.done.wait (!%p8452_p2), %s7217_s22, 128  }
0x3512   : > { %8697 = vsyncadd (!%p8452_p2), %s7217_s22, 4294967168  ;;  %s9976_s15 = sld [smem:[#allocation35_spill]]  ;;  %s9977_s23 = sld [smem:[#allocation32_spill]] }
0x3513   : > { %s9978_s11 = sld [smem:[#allocation36_spill]]  ;;  %s9979_s7 = smov %s8704_s10 }
0x3518   : > { %p69_p3 = scmp.ge.s32.totalorder %s9976_s15, 4   ;;  %s9980_s10 = smov %s9977_s23 }
0x351a   :  { %71 = sbr.rel (!%p69_p3) target bundleno = 67 (0x43), region = 234 }
0x3521   :  { %7222 = vsyncpa [#allocation3], 1 }
0x3522   :  { %7224 = vsyncpa [#allocation3 + $0x1], 1 }

</bundles_post_ra>
